<compile_context>
chip_gen: v5e
topology: v5e:2x2
jax: 0.10.0
libtpu: 0.0.40
codegen_flags: <defaults>
</compile_context>

<pallas_src>
import math

import jax
import jax.numpy as jnp
from jax import lax
from jax.experimental import pallas as pl
from jax.experimental.pallas import tpu as pltpu

# ---------------- model config (matches the PyTorch module) -------------------
D_MODEL = 32
N_CLASSES = 10
IMG_SIZE = (16, 16)
PATCH_SIZE = (4, 4)
N_CHANNELS = 4
N_HEADS = 4
N_LAYERS = 2
BATCH = 2

HEAD_DIM = D_MODEL // N_HEADS
N_PATCHES = (IMG_SIZE[0] // PATCH_SIZE[0]) * (IMG_SIZE[1] // PATCH_SIZE[1])
SEQ = N_PATCHES + 1                       # +1 for cls token
TOK = BATCH * SEQ                         # total tokens in the fused slab
R_MLP = 4
D_MLP = D_MODEL * R_MLP
LN_EPS = 1e-5
NEG_INF = -1e9
CLS_PAD = 128                             # lane-dense classifier landing width
CLS_ROWS = min(TOK, ((BATCH + 7) // 8) * 8)   # one sublane tile holds all cls rows
K_PATCH = N_CHANNELS * PATCH_SIZE[0] * PATCH_SIZE[1]


# ---------------- in-kernel helpers -------------------------------------------
def _erf_f32(x):
    # float32 erf via the Eigen/XLA rational approximation.  Estrin-style
    # evaluation (paired even/odd powers) shortens the serial FMA chain; the
    # final division is an EUP approx reciprocal + one Newton step (~f32 exact).
    x = jnp.clip(x, -4.0, 4.0)
    y = x * x
    a0, a1, a2, a3, a4, a5, a6 = (
        -2.72614225801306e-10, 2.77068142495902e-08, -2.10102402082508e-06,
        -5.69250639462346e-05, -7.34990630326855e-04, -2.95459980854025e-03,
        -1.60960333262415e-02)
    b0, b1, b2, b3, b4 = (
        -1.45660718464996e-05, -2.13374055278905e-04, -1.68282697438203e-03,
        -7.37332916720468e-03, -1.42647390514189e-02)
    y2 = y * y
    y4 = y2 * y2
    # numerator: a0 y^6 + a1 y^5 + a2 y^4 + a3 y^3 + a4 y^2 + a5 y + a6
    c0 = a5 * y + a6
    c1 = a3 * y + a4
    c2 = a1 * y + a2
    p = (a0 * y2 + c2) * y4 + (c1 * y2 + c0)
    num = p * x
    # denominator: b0 y^4 + b1 y^3 + b2 y^2 + b3 y + b4
    d0 = b3 * y + b4
    d1 = b1 * y + b2
    q = (b0 * y2 + d1) * y2 + d0
    r = pl.reciprocal(q, approx=True)
    r = r * (2.0 - q * r)                 # one Newton step restores f32 accuracy
    return num * r


def _gelu_exact(x):
    # PyTorch nn.GELU() default = exact (erf-based) GELU.
    return 0.5 * x * (1.0 + _erf_f32(x * (1.0 / math.sqrt(2.0))))


def _layernorm(x, gamma, beta):
    # one-pass LN: the two cross-lane reductions are independent.
    mu = jnp.mean(x, axis=-1, keepdims=True)
    msq = jnp.mean(x * x, axis=-1, keepdims=True)
    var = msq - mu * mu
    return (x - mu) * lax.rsqrt(var + LN_EPS) * gamma + beta


def _softmax_last(x):
    x = x - jnp.max(x, axis=-1, keepdims=True)
    e = jnp.exp(x)
    return e * pl.reciprocal(jnp.sum(e, axis=-1, keepdims=True), approx=True)


# ---------------- the single fused Pallas kernel -------------------------------
def _vit_fused_kernel(patches_ref, pw_ref, base_ref,
                      ln1g_ref, ln1b_ref,
                      wq_ref, bq_ref, wk_ref, bk_ref, wv_ref, bv_ref,
                      wo_ref, bo_ref,
                      ln2g_ref, ln2b_ref,
                      w1_ref, b1_ref, w2_ref, b2_ref,
                      cw_ref, cb_ref, out_ref):
    # Token layout (cls-first): rows [0, B) are the cls tokens of batch 0..B-1,
    # rows B + b*N_PATCHES + p are patch p of batch b.
    # patches_ref: (TOK, K)   cls rows are zero
    # base_ref:    (TOK, D)   cls_token + PE + folded conv bias
    # wq/wk/wv:    (L, H, D, hd)  (wq/bq already carry the 1/sqrt(hd) scale)
    # wo:          (L, H, hd, D)  per-head slice of the output projection

    # ---- block-diagonal additive mask generated in-kernel (VPU iota/compares) --
    ridx = lax.broadcasted_iota(jnp.int32, (TOK, TOK), 0)
    cidx = lax.broadcasted_iota(jnp.int32, (TOK, TOK), 1)

    def batch_id(idx):
        pb = jnp.zeros(idx.shape, jnp.int32)
        for b in range(1, BATCH):                 # static unroll (B-1 compares)
            pb = pb + (idx >= BATCH + b * N_PATCHES).astype(jnp.int32)
        return jnp.where(idx < BATCH, idx, pb)

    mask = jnp.where(batch_id(ridx) == batch_id(cidx),
                     0.0, NEG_INF).astype(jnp.float32)

    # ---- patch embedding (im2col matmul) + cls token + positional encoding ----
    x = (jnp.dot(patches_ref[...], pw_ref[...],
                 preferred_element_type=jnp.float32)
         + base_ref[...])                                   # (TOK, D)

    # ---- transformer encoder blocks (statically unrolled) ----
    for l in range(N_LAYERS):
        h = _layernorm(x, ln1g_ref[l], ln1b_ref[l])

        attn = None
        for hh in range(N_HEADS):                           # static unroll
            q = (jnp.dot(h, wq_ref[l, hh], preferred_element_type=jnp.float32)
                 + bq_ref[l, hh])                           # scale pre-folded
            k = (jnp.dot(h, wk_ref[l, hh], preferred_element_type=jnp.float32)
                 + bk_ref[l, hh])
            v = (jnp.dot(h, wv_ref[l, hh], preferred_element_type=jnp.float32)
                 + bv_ref[l, hh])
            s = lax.dot_general(q, k, (((1,), (1,)), ((), ())),
                                preferred_element_type=jnp.float32) + mask
            a = _softmax_last(s)
            o = jnp.dot(a, v, preferred_element_type=jnp.float32)
            # fold the head concat into the output projection: accumulate
            # (A_h @ V_h) @ Wo[h*hd:(h+1)*hd, :]  -> lane-dense (TOK, D)
            c = jnp.dot(o, wo_ref[l, hh], preferred_element_type=jnp.float32)
            attn = c if attn is None else attn + c
        x = x + attn + bo_ref[l]

        # LN2 + MLP
        h2 = _layernorm(x, ln2g_ref[l], ln2b_ref[l])
        m = jnp.dot(h2, w1_ref[l], preferred_element_type=jnp.float32) + b1_ref[l]
        m = _gelu_exact(m)
        m = jnp.dot(m, w2_ref[l], preferred_element_type=jnp.float32) + b2_ref[l]
        x = x + m

    # ---- classifier on the first sublane tile only (cls rows live there) ----
    x_cls = x[0:CLS_ROWS, :]                                # (8, D) static slice
    logits = (jnp.dot(x_cls, cw_ref[...], preferred_element_type=jnp.float32)
              + cb_ref[...])                                # (8, 128) lane-dense
    out_ref[...] = _softmax_last(logits)

    # TODO(synk): per-head attn_weights buffers (self.attn_weights side effects)
    # are not materialized; they are not part of the module's forward output.


def vit_fused_call(patches_padded, pw, base, lw, cw_pad, cb_pad):
    args = (patches_padded, pw, base,
            lw["ln1_g"], lw["ln1_b"],
            lw["wq"], lw["bq"], lw["wk"], lw["bk"], lw["wv"], lw["bv"],
            lw["wo_h"], lw["bo"],
            lw["ln2_g"], lw["ln2_b"],
            lw["w1"], lw["b1"], lw["w2"], lw["b2"],
            cw_pad, cb_pad)

    flops = (2 * TOK * K_PATCH * D_MODEL
             + N_LAYERS * (3 * N_HEADS * 2 * TOK * D_MODEL * HEAD_DIM
                           + 2 * N_HEADS * 2 * TOK * TOK * HEAD_DIM
                           + N_HEADS * 2 * TOK * HEAD_DIM * D_MODEL
                           + 2 * 2 * TOK * D_MODEL * D_MLP)
             + 2 * CLS_ROWS * D_MODEL * CLS_PAD)
    transcendentals = (N_LAYERS * N_HEADS * TOK * TOK     # attention softmax exp
                       + N_LAYERS * TOK * D_MLP           # GELU erf rational
                       + CLS_ROWS * CLS_PAD)              # classifier softmax
    bytes_accessed = (sum(int(a.size) * 4 for a in args)
                      + CLS_ROWS * CLS_PAD * 4)

    return pl.pallas_call(
        _vit_fused_kernel,
        out_shape=jax.ShapeDtypeStruct((CLS_ROWS, CLS_PAD), jnp.float32),
        in_specs=[pl.BlockSpec(memory_space=pltpu.MemorySpace.VMEM)
                  for _ in args],
        out_specs=pl.BlockSpec(memory_space=pltpu.MemorySpace.VMEM),
        cost_estimate=pl.CostEstimate(flops=flops,
                                      transcendentals=transcendentals,
                                      bytes_accessed=bytes_accessed),
    )(*args)


# ---------------- host-side glue (plain JAX) -----------------------------------
def extract_patches(images):
    # images: (B, C, H, W) -> (B, n_patches, C*ph*pw); patch order row-major,
    # inner flatten order (c, kh, kw) to match Conv2d weight flattening.
    B, C, H, W = images.shape
    ph, pw = PATCH_SIZE
    x = images.reshape(B, C, H // ph, ph, W // pw, pw)
    x = x.transpose(0, 2, 4, 1, 3, 5)               # (B, Hp, Wp, C, ph, pw)
    return x.reshape(B, (H // ph) * (W // pw), C * ph * pw)


def sinusoidal_pe(seq, d):
    position = jnp.arange(seq, dtype=jnp.float32)[:, None]
    div_term = jnp.exp(jnp.arange(0, d, 2, dtype=jnp.float32)
                       * (-math.log(10000.0) / d))
    pe = jnp.zeros((seq, d), dtype=jnp.float32)
    pe = pe.at[:, 0::2].set(jnp.sin(position * div_term))
    pe = pe.at[:, 1::2].set(jnp.cos(position * div_term))
    return pe                                        # (seq, d)


def init_params(key):
    keys = iter(jax.random.split(key, 256))

    def nrm(shape, scale=0.02):
        return (scale * jax.random.normal(next(keys), shape)).astype(jnp.float32)

    params = {
        "patch_w": nrm((K_PATCH, D_MODEL)),
        "patch_b": nrm((1, D_MODEL)),
        "cls_token": nrm((1, 1, D_MODEL), scale=1.0),   # torch.randn
        "cls_w": nrm((D_MODEL, N_CLASSES)),
        "cls_b": nrm((1, N_CLASSES)),
    }
    acc = {k: [] for k in ("ln1_g", "ln1_b", "wq", "bq", "wk", "bk", "wv", "bv",
                           "wo", "bo", "ln2_g", "ln2_b", "w1", "b1", "w2", "b2")}
    for _ in range(N_LAYERS):
        acc["ln1_g"].append(jnp.ones((1, D_MODEL), jnp.float32))
        acc["ln1_b"].append(jnp.zeros((1, D_MODEL), jnp.float32))
        # per-head Q/K/V Linear(d_model, head_dim) — head-stacked (H, D, hd)
        acc["wq"].append(jnp.stack([nrm((D_MODEL, HEAD_DIM)) for _ in range(N_HEADS)]))
        acc["bq"].append(jnp.stack([nrm((1, HEAD_DIM)) for _ in range(N_HEADS)]))
        acc["wk"].append(jnp.stack([nrm((D_MODEL, HEAD_DIM)) for _ in range(N_HEADS)]))
        acc["bk"].append(jnp.stack([nrm((1, HEAD_DIM)) for _ in range(N_HEADS)]))
        acc["wv"].append(jnp.stack([nrm((D_MODEL, HEAD_DIM)) for _ in range(N_HEADS)]))
        acc["bv"].append(jnp.stack([nrm((1, HEAD_DIM)) for _ in range(N_HEADS)]))
        acc["wo"].append(nrm((D_MODEL, D_MODEL)))
        acc["bo"].append(nrm((1, D_MODEL)))
        acc["ln2_g"].append(jnp.ones((1, D_MODEL), jnp.float32))
        acc["ln2_b"].append(jnp.zeros((1, D_MODEL), jnp.float32))
        acc["w1"].append(nrm((D_MODEL, D_MLP)))
        acc["b1"].append(nrm((1, D_MLP)))
        acc["w2"].append(nrm((D_MLP, D_MODEL)))
        acc["b2"].append(nrm((1, D_MODEL)))
    params["layers"] = {k: jnp.stack(v, axis=0) for k, v in acc.items()}
    return params


@jax.jit
def vit_forward(images, params):
    B = images.shape[0]

    # im2col, cls-first token order: rows [0,B) are zero "patches" for the cls
    # slots, then all patches of batch 0, batch 1, ...  -> (TOK, K)
    patches = extract_patches(images)                               # (B, P, K)
    patches_flat = patches.reshape(B * N_PATCHES, K_PATCH)
    patches_padded = jnp.concatenate(
        [jnp.zeros((B, K_PATCH), jnp.float32), patches_flat], axis=0)

    # additive base slab: cls rows get cls_token + pe[0]; patch rows get
    # pe[1+p] + conv bias (bias folded here since cls rows see zero patches).
    pe = sinusoidal_pe(SEQ, D_MODEL)                                # (S, D)
    cls_base = params["cls_token"].reshape(1, D_MODEL) + pe[:1]     # (1, D)
    patch_base = pe[1:] + params["patch_b"]                         # (P, D)
    base = jnp.concatenate([jnp.tile(cls_base, (B, 1)),
                            jnp.tile(patch_base, (B, 1))], axis=0)  # (TOK, D)

    # fold 1/sqrt(head_dim) into the Q projection; expose Wo per head.
    scale = 1.0 / math.sqrt(HEAD_DIM)
    lw = dict(params["layers"])
    lw["wq"] = lw["wq"] * scale
    lw["bq"] = lw["bq"] * scale
    lw["wo_h"] = lw["wo"].reshape(N_LAYERS, N_HEADS, HEAD_DIM, D_MODEL)

    # classifier weights padded to a lane-dense 128-wide tile; pad classes get
    # a -1e9 bias so the in-kernel softmax over 128 lanes equals softmax over
    # the real N_CLASSES.
    cw_pad = jnp.zeros((D_MODEL, CLS_PAD), jnp.float32
                       ).at[:, :N_CLASSES].set(params["cls_w"])
    cb_pad = jnp.full((1, CLS_PAD), NEG_INF, jnp.float32
                      ).at[:, :N_CLASSES].set(params["cls_b"])

    probs_tile = vit_fused_call(patches_padded, params["patch_w"], base,
                                lw, cw_pad, cb_pad)                 # (8, 128)
    # rows [0, B) are the cls tokens; keep only the real classes.
    return probs_tile[:B, :N_CLASSES]


if __name__ == "__main__":
    key = jax.random.PRNGKey(0)
    pkey, xkey = jax.random.split(key)
    params = init_params(pkey)
    images = jax.random.normal(
        xkey, (BATCH, N_CHANNELS, IMG_SIZE[0], IMG_SIZE[1]), dtype=jnp.float32)

    out = jax.block_until_ready(vit_forward(images, params))
    assert out.shape == (BATCH, N_CLASSES), out.shape
    assert bool(jnp.all(jnp.isfinite(out)))
    print("KERNEL_OK")
</pallas_src>

<mosaic_0001>
module attributes {stable_mosaic.version = 11 : i64} {
  func.func @_vit_fused_kernel(%arg0: memref<34x64xf32, #tpu.memory_space<vmem>>, %arg1: memref<64x32xf32, #tpu.memory_space<vmem>>, %arg2: memref<34x32xf32, #tpu.memory_space<vmem>>, %arg3: memref<2x1x32xf32, #tpu.memory_space<vmem>>, %arg4: memref<2x1x32xf32, #tpu.memory_space<vmem>>, %arg5: memref<2x4x32x8xf32, #tpu.memory_space<vmem>>, %arg6: memref<2x4x1x8xf32, #tpu.memory_space<vmem>>, %arg7: memref<2x4x32x8xf32, #tpu.memory_space<vmem>>, %arg8: memref<2x4x1x8xf32, #tpu.memory_space<vmem>>, %arg9: memref<2x4x32x8xf32, #tpu.memory_space<vmem>>, %arg10: memref<2x4x1x8xf32, #tpu.memory_space<vmem>>, %arg11: memref<2x4x8x32xf32, #tpu.memory_space<vmem>>, %arg12: memref<2x1x32xf32, #tpu.memory_space<vmem>>, %arg13: memref<2x1x32xf32, #tpu.memory_space<vmem>>, %arg14: memref<2x1x32xf32, #tpu.memory_space<vmem>>, %arg15: memref<2x32x128xf32, #tpu.memory_space<vmem>>, %arg16: memref<2x1x128xf32, #tpu.memory_space<vmem>>, %arg17: memref<2x128x32xf32, #tpu.memory_space<vmem>>, %arg18: memref<2x1x32xf32, #tpu.memory_space<vmem>>, %arg19: memref<32x128xf32, #tpu.memory_space<vmem>>, %arg20: memref<1x128xf32, #tpu.memory_space<vmem>>, %arg21: memref<8x128xf32, #tpu.memory_space<vmem>>) attributes {dimension_semantics = [], scalar_prefetch = 0 : i64, scratch_operands = 0 : i64, tpu.core_type = #tpu.core_type<tc>} {
    %0 = tpu.iota {dimensions = array<i32: 0>} : vector<34x34xi32>
    %1 = tpu.iota {dimensions = array<i32: 1>} : vector<34x34xi32>
    %c0_i32 = arith.constant 0 : i32
    %2 = vector.broadcast %c0_i32 : i32 to vector<34x34xi32>
    %c18_i32 = arith.constant 18 : i32
    %3 = vector.broadcast %c18_i32 : i32 to vector<34x34xi32>
    %4 = arith.cmpi sge, %0, %3 : vector<34x34xi32>
    %5 = arith.extui %4 : vector<34x34xi1> to vector<34x34xi32>
    %6 = arith.addi %2, %5 : vector<34x34xi32>
    %c2_i32 = arith.constant 2 : i32
    %7 = vector.broadcast %c2_i32 : i32 to vector<34x34xi32>
    %8 = arith.cmpi slt, %0, %7 : vector<34x34xi32>
    %9 = arith.select %8, %0, %6 : vector<34x34xi1>, vector<34x34xi32>
    %c0_i32_0 = arith.constant 0 : i32
    %10 = vector.broadcast %c0_i32_0 : i32 to vector<34x34xi32>
    %c18_i32_1 = arith.constant 18 : i32
    %11 = vector.broadcast %c18_i32_1 : i32 to vector<34x34xi32>
    %12 = arith.cmpi sge, %1, %11 : vector<34x34xi32>
    %13 = arith.extui %12 : vector<34x34xi1> to vector<34x34xi32>
    %14 = arith.addi %10, %13 : vector<34x34xi32>
    %c2_i32_2 = arith.constant 2 : i32
    %15 = vector.broadcast %c2_i32_2 : i32 to vector<34x34xi32>
    %16 = arith.cmpi slt, %1, %15 : vector<34x34xi32>
    %17 = arith.select %16, %1, %14 : vector<34x34xi1>, vector<34x34xi32>
    %18 = arith.cmpi eq, %9, %17 : vector<34x34xi32>
    %cst = arith.constant 0.000000e+00 : f32
    %cst_3 = arith.constant -1.000000e+09 : f32
    %19 = vector.broadcast %cst : f32 to vector<34x34xf32>
    %20 = vector.broadcast %cst_3 : f32 to vector<34x34xf32>
    %21 = arith.select %18, %19, %20 : vector<34x34xi1>, vector<34x34xf32>
    %c0 = arith.constant 0 : index
    %c0_4 = arith.constant 0 : index
    %22 = vector.load %arg0[%c0, %c0_4] : memref<34x64xf32, #tpu.memory_space<vmem>>, vector<34x64xf32>
    %c0_5 = arith.constant 0 : index
    %c0_6 = arith.constant 0 : index
    %23 = vector.load %arg1[%c0_5, %c0_6] : memref<64x32xf32, #tpu.memory_space<vmem>>, vector<64x32xf32>
    %cst_7 = arith.constant dense<0.000000e+00> : vector<34x32xf32>
    %24 = tpu.matmul %22, %23, %cst_7 {dimension_numbers = #tpu.dot_dimension_numbers<[1], [0], [0], [1], [0, 0, 1, 1], [], []>} : vector<34x64xf32>, vector<64x32xf32>, vector<34x32xf32> -> vector<34x32xf32>
    %c0_8 = arith.constant 0 : index
    %c0_9 = arith.constant 0 : index
    %25 = vector.load %arg2[%c0_8, %c0_9] : memref<34x32xf32, #tpu.memory_space<vmem>>, vector<34x32xf32>
    %26 = arith.addf %24, %25 : vector<34x32xf32>
    %c0_10 = arith.constant 0 : index
    %c0_11 = arith.constant 0 : index
    %c0_12 = arith.constant 0 : index
    %27 = vector.load %arg3[%c0_10, %c0_11, %c0_12] : memref<2x1x32xf32, #tpu.memory_space<vmem>>, vector<1x1x32xf32>
    %28 = vector.shape_cast %27 : vector<1x1x32xf32> to vector<1x32xf32>
    %c0_13 = arith.constant 0 : index
    %c0_14 = arith.constant 0 : index
    %c0_15 = arith.constant 0 : index
    %29 = vector.load %arg4[%c0_13, %c0_14, %c0_15] : memref<2x1x32xf32, #tpu.memory_space<vmem>>, vector<1x1x32xf32>
    %30 = vector.shape_cast %29 : vector<1x1x32xf32> to vector<1x32xf32>
    %cst_16 = arith.constant dense<0.000000e+00> : vector<34xf32>
    %31 = vector.multi_reduction <add>, %26, %cst_16 [1] : vector<34x32xf32> to vector<34xf32>
    %32 = vector.shape_cast %31 : vector<34xf32> to vector<34x1xf32>
    %cst_17 = arith.constant 3.200000e+01 : f32
    %33 = vector.broadcast %cst_17 : f32 to vector<34x1xf32>
    %34 = arith.divf %32, %33 : vector<34x1xf32>
    %35 = arith.mulf %26, %26 : vector<34x32xf32>
    %cst_18 = arith.constant dense<0.000000e+00> : vector<34xf32>
    %36 = vector.multi_reduction <add>, %35, %cst_18 [1] : vector<34x32xf32> to vector<34xf32>
    %37 = vector.shape_cast %36 : vector<34xf32> to vector<34x1xf32>
    %cst_19 = arith.constant 3.200000e+01 : f32
    %38 = vector.broadcast %cst_19 : f32 to vector<34x1xf32>
    %39 = arith.divf %37, %38 : vector<34x1xf32>
    %40 = arith.mulf %34, %34 : vector<34x1xf32>
    %41 = arith.subf %39, %40 : vector<34x1xf32>
    %42 = vector.broadcast %34 : vector<34x1xf32> to vector<34x32xf32>
    %43 = arith.subf %26, %42 : vector<34x32xf32>
    %cst_20 = arith.constant 9.99999974E-6 : f32
    %44 = vector.broadcast %cst_20 : f32 to vector<34x1xf32>
    %45 = arith.addf %41, %44 : vector<34x1xf32>
    %46 = math.rsqrt %45 : vector<34x1xf32>
    %47 = vector.broadcast %46 : vector<34x1xf32> to vector<34x32xf32>
    %48 = arith.mulf %43, %47 : vector<34x32xf32>
    %49 = vector.broadcast %28 : vector<1x32xf32> to vector<34x32xf32>
    %50 = arith.mulf %48, %49 : vector<34x32xf32>
    %51 = vector.broadcast %30 : vector<1x32xf32> to vector<34x32xf32>
    %52 = arith.addf %50, %51 : vector<34x32xf32>
    %c0_21 = arith.constant 0 : index
    %c0_22 = arith.constant 0 : index
    %c0_23 = arith.constant 0 : index
    %c0_24 = arith.constant 0 : index
    %53 = vector.load %arg5[%c0_21, %c0_22, %c0_23, %c0_24] : memref<2x4x32x8xf32, #tpu.memory_space<vmem>>, vector<1x1x32x8xf32>
    %54 = vector.shape_cast %53 : vector<1x1x32x8xf32> to vector<32x8xf32>
    %cst_25 = arith.constant dense<0.000000e+00> : vector<34x8xf32>
    %55 = tpu.matmul %52, %54, %cst_25 {dimension_numbers = #tpu.dot_dimension_numbers<[1], [0], [0], [1], [0, 0, 1, 1], [], []>} : vector<34x32xf32>, vector<32x8xf32>, vector<34x8xf32> -> vector<34x8xf32>
    %c0_26 = arith.constant 0 : index
    %c0_27 = arith.constant 0 : index
    %c0_28 = arith.constant 0 : index
    %c0_29 = arith.constant 0 : index
    %56 = vector.load %arg6[%c0_26, %c0_27, %c0_28, %c0_29] : memref<2x4x1x8xf32, #tpu.memory_space<vmem>>, vector<1x1x1x8xf32>
    %57 = vector.shape_cast %56 : vector<1x1x1x8xf32> to vector<1x8xf32>
    %58 = vector.broadcast %57 : vector<1x8xf32> to vector<34x8xf32>
    %59 = arith.addf %55, %58 : vector<34x8xf32>
    %c0_30 = arith.constant 0 : index
    %c0_31 = arith.constant 0 : index
    %c0_32 = arith.constant 0 : index
    %c0_33 = arith.constant 0 : index
    %60 = vector.load %arg7[%c0_30, %c0_31, %c0_32, %c0_33] : memref<2x4x32x8xf32, #tpu.memory_space<vmem>>, vector<1x1x32x8xf32>
    %61 = vector.shape_cast %60 : vector<1x1x32x8xf32> to vector<32x8xf32>
    %cst_34 = arith.constant dense<0.000000e+00> : vector<34x8xf32>
    %62 = tpu.matmul %52, %61, %cst_34 {dimension_numbers = #tpu.dot_dimension_numbers<[1], [0], [0], [1], [0, 0, 1, 1], [], []>} : vector<34x32xf32>, vector<32x8xf32>, vector<34x8xf32> -> vector<34x8xf32>
    %c0_35 = arith.constant 0 : index
    %c0_36 = arith.constant 0 : index
    %c0_37 = arith.constant 0 : index
    %c0_38 = arith.constant 0 : index
    %63 = vector.load %arg8[%c0_35, %c0_36, %c0_37, %c0_38] : memref<2x4x1x8xf32, #tpu.memory_space<vmem>>, vector<1x1x1x8xf32>
    %64 = vector.shape_cast %63 : vector<1x1x1x8xf32> to vector<1x8xf32>
    %65 = vector.broadcast %64 : vector<1x8xf32> to vector<34x8xf32>
    %66 = arith.addf %62, %65 : vector<34x8xf32>
    %c0_39 = arith.constant 0 : index
    %c0_40 = arith.constant 0 : index
    %c0_41 = arith.constant 0 : index
    %c0_42 = arith.constant 0 : index
    %67 = vector.load %arg9[%c0_39, %c0_40, %c0_41, %c0_42] : memref<2x4x32x8xf32, #tpu.memory_space<vmem>>, vector<1x1x32x8xf32>
    %68 = vector.shape_cast %67 : vector<1x1x32x8xf32> to vector<32x8xf32>
    %cst_43 = arith.constant dense<0.000000e+00> : vector<34x8xf32>
    %69 = tpu.matmul %52, %68, %cst_43 {dimension_numbers = #tpu.dot_dimension_numbers<[1], [0], [0], [1], [0, 0, 1, 1], [], []>} : vector<34x32xf32>, vector<32x8xf32>, vector<34x8xf32> -> vector<34x8xf32>
    %c0_44 = arith.constant 0 : index
    %c0_45 = arith.constant 0 : index
    %c0_46 = arith.constant 0 : index
    %c0_47 = arith.constant 0 : index
    %70 = vector.load %arg10[%c0_44, %c0_45, %c0_46, %c0_47] : memref<2x4x1x8xf32, #tpu.memory_space<vmem>>, vector<1x1x1x8xf32>
    %71 = vector.shape_cast %70 : vector<1x1x1x8xf32> to vector<1x8xf32>
    %72 = vector.broadcast %71 : vector<1x8xf32> to vector<34x8xf32>
    %73 = arith.addf %69, %72 : vector<34x8xf32>
    %cst_48 = arith.constant dense<0.000000e+00> : vector<34x34xf32>
    %74 = tpu.matmul %59, %66, %cst_48 {dimension_numbers = #tpu.dot_dimension_numbers<[1], [1], [0], [0], [0, 0, 1, 0], [], []>} : vector<34x8xf32>, vector<34x8xf32>, vector<34x34xf32> -> vector<34x34xf32>
    %75 = arith.addf %74, %21 : vector<34x34xf32>
    %cst_49 = arith.constant dense<0xFF800000> : vector<34xf32>
    %76 = vector.multi_reduction <maximumf>, %75, %cst_49 [1] : vector<34x34xf32> to vector<34xf32>
    %77 = vector.shape_cast %76 : vector<34xf32> to vector<34x1xf32>
    %78 = vector.broadcast %77 : vector<34x1xf32> to vector<34x34xf32>
    %79 = arith.subf %75, %78 : vector<34x34xf32>
    %80 = math.exp %79 : vector<34x34xf32>
    %cst_50 = arith.constant dense<0.000000e+00> : vector<34xf32>
    %81 = vector.multi_reduction <add>, %80, %cst_50 [1] : vector<34x34xf32> to vector<34xf32>
    %82 = vector.shape_cast %81 : vector<34xf32> to vector<34x1xf32>
    %83 = tpu.reciprocal %82 {approx = true} : vector<34x1xf32> -> vector<34x1xf32>
    %84 = vector.broadcast %83 : vector<34x1xf32> to vector<34x34xf32>
    %85 = arith.mulf %80, %84 : vector<34x34xf32>
    %cst_51 = arith.constant dense<0.000000e+00> : vector<34x8xf32>
    %86 = tpu.matmul %85, %73, %cst_51 {dimension_numbers = #tpu.dot_dimension_numbers<[1], [0], [0], [1], [0, 0, 1, 1], [], []>} : vector<34x34xf32>, vector<34x8xf32>, vector<34x8xf32> -> vector<34x8xf32>
    %c0_52 = arith.constant 0 : index
    %c0_53 = arith.constant 0 : index
    %c0_54 = arith.constant 0 : index
    %c0_55 = arith.constant 0 : index
    %87 = vector.load %arg11[%c0_52, %c0_53, %c0_54, %c0_55] : memref<2x4x8x32xf32, #tpu.memory_space<vmem>>, vector<1x1x8x32xf32>
    %88 = vector.shape_cast %87 : vector<1x1x8x32xf32> to vector<8x32xf32>
    %cst_56 = arith.constant dense<0.000000e+00> : vector<34x32xf32>
    %89 = tpu.matmul %86, %88, %cst_56 {dimension_numbers = #tpu.dot_dimension_numbers<[1], [0], [0], [1], [0, 0, 1, 1], [], []>} : vector<34x8xf32>, vector<8x32xf32>, vector<34x32xf32> -> vector<34x32xf32>
    %c0_57 = arith.constant 0 : index
    %c1 = arith.constant 1 : index
    %c0_58 = arith.constant 0 : index
    %c0_59 = arith.constant 0 : index
    %90 = vector.load %arg5[%c0_57, %c1, %c0_58, %c0_59] : memref<2x4x32x8xf32, #tpu.memory_space<vmem>>, vector<1x1x32x8xf32>
    %91 = vector.shape_cast %90 : vector<1x1x32x8xf32> to vector<32x8xf32>
    %cst_60 = arith.constant dense<0.000000e+00> : vector<34x8xf32>
    %92 = tpu.matmul %52, %91, %cst_60 {dimension_numbers = #tpu.dot_dimension_numbers<[1], [0], [0], [1], [0, 0, 1, 1], [], []>} : vector<34x32xf32>, vector<32x8xf32>, vector<34x8xf32> -> vector<34x8xf32>
    %c0_61 = arith.constant 0 : index
    %c1_62 = arith.constant 1 : index
    %c0_63 = arith.constant 0 : index
    %c0_64 = arith.constant 0 : index
    %93 = vector.load %arg6[%c0_61, %c1_62, %c0_63, %c0_64] : memref<2x4x1x8xf32, #tpu.memory_space<vmem>>, vector<1x1x1x8xf32>
    %94 = vector.shape_cast %93 : vector<1x1x1x8xf32> to vector<1x8xf32>
    %95 = vector.broadcast %94 : vector<1x8xf32> to vector<34x8xf32>
    %96 = arith.addf %92, %95 : vector<34x8xf32>
    %c0_65 = arith.constant 0 : index
    %c1_66 = arith.constant 1 : index
    %c0_67 = arith.constant 0 : index
    %c0_68 = arith.constant 0 : index
    %97 = vector.load %arg7[%c0_65, %c1_66, %c0_67, %c0_68] : memref<2x4x32x8xf32, #tpu.memory_space<vmem>>, vector<1x1x32x8xf32>
    %98 = vector.shape_cast %97 : vector<1x1x32x8xf32> to vector<32x8xf32>
    %cst_69 = arith.constant dense<0.000000e+00> : vector<34x8xf32>
    %99 = tpu.matmul %52, %98, %cst_69 {dimension_numbers = #tpu.dot_dimension_numbers<[1], [0], [0], [1], [0, 0, 1, 1], [], []>} : vector<34x32xf32>, vector<32x8xf32>, vector<34x8xf32> -> vector<34x8xf32>
    %c0_70 = arith.constant 0 : index
    %c1_71 = arith.constant 1 : index
    %c0_72 = arith.constant 0 : index
    %c0_73 = arith.constant 0 : index
    %100 = vector.load %arg8[%c0_70, %c1_71, %c0_72, %c0_73] : memref<2x4x1x8xf32, #tpu.memory_space<vmem>>, vector<1x1x1x8xf32>
    %101 = vector.shape_cast %100 : vector<1x1x1x8xf32> to vector<1x8xf32>
    %102 = vector.broadcast %101 : vector<1x8xf32> to vector<34x8xf32>
    %103 = arith.addf %99, %102 : vector<34x8xf32>
    %c0_74 = arith.constant 0 : index
    %c1_75 = arith.constant 1 : index
    %c0_76 = arith.constant 0 : index
    %c0_77 = arith.constant 0 : index
    %104 = vector.load %arg9[%c0_74, %c1_75, %c0_76, %c0_77] : memref<2x4x32x8xf32, #tpu.memory_space<vmem>>, vector<1x1x32x8xf32>
    %105 = vector.shape_cast %104 : vector<1x1x32x8xf32> to vector<32x8xf32>
    %cst_78 = arith.constant dense<0.000000e+00> : vector<34x8xf32>
    %106 = tpu.matmul %52, %105, %cst_78 {dimension_numbers = #tpu.dot_dimension_numbers<[1], [0], [0], [1], [0, 0, 1, 1], [], []>} : vector<34x32xf32>, vector<32x8xf32>, vector<34x8xf32> -> vector<34x8xf32>
    %c0_79 = arith.constant 0 : index
    %c1_80 = arith.constant 1 : index
    %c0_81 = arith.constant 0 : index
    %c0_82 = arith.constant 0 : index
    %107 = vector.load %arg10[%c0_79, %c1_80, %c0_81, %c0_82] : memref<2x4x1x8xf32, #tpu.memory_space<vmem>>, vector<1x1x1x8xf32>
    %108 = vector.shape_cast %107 : vector<1x1x1x8xf32> to vector<1x8xf32>
    %109 = vector.broadcast %108 : vector<1x8xf32> to vector<34x8xf32>
    %110 = arith.addf %106, %109 : vector<34x8xf32>
    %cst_83 = arith.constant dense<0.000000e+00> : vector<34x34xf32>
    %111 = tpu.matmul %96, %103, %cst_83 {dimension_numbers = #tpu.dot_dimension_numbers<[1], [1], [0], [0], [0, 0, 1, 0], [], []>} : vector<34x8xf32>, vector<34x8xf32>, vector<34x34xf32> -> vector<34x34xf32>
    %112 = arith.addf %111, %21 : vector<34x34xf32>
    %cst_84 = arith.constant dense<0xFF800000> : vector<34xf32>
    %113 = vector.multi_reduction <maximumf>, %112, %cst_84 [1] : vector<34x34xf32> to vector<34xf32>
    %114 = vector.shape_cast %113 : vector<34xf32> to vector<34x1xf32>
    %115 = vector.broadcast %114 : vector<34x1xf32> to vector<34x34xf32>
    %116 = arith.subf %112, %115 : vector<34x34xf32>
    %117 = math.exp %116 : vector<34x34xf32>
    %cst_85 = arith.constant dense<0.000000e+00> : vector<34xf32>
    %118 = vector.multi_reduction <add>, %117, %cst_85 [1] : vector<34x34xf32> to vector<34xf32>
    %119 = vector.shape_cast %118 : vector<34xf32> to vector<34x1xf32>
    %120 = tpu.reciprocal %119 {approx = true} : vector<34x1xf32> -> vector<34x1xf32>
    %121 = vector.broadcast %120 : vector<34x1xf32> to vector<34x34xf32>
    %122 = arith.mulf %117, %121 : vector<34x34xf32>
    %cst_86 = arith.constant dense<0.000000e+00> : vector<34x8xf32>
    %123 = tpu.matmul %122, %110, %cst_86 {dimension_numbers = #tpu.dot_dimension_numbers<[1], [0], [0], [1], [0, 0, 1, 1], [], []>} : vector<34x34xf32>, vector<34x8xf32>, vector<34x8xf32> -> vector<34x8xf32>
    %c0_87 = arith.constant 0 : index
    %c1_88 = arith.constant 1 : index
    %c0_89 = arith.constant 0 : index
    %c0_90 = arith.constant 0 : index
    %124 = vector.load %arg11[%c0_87, %c1_88, %c0_89, %c0_90] : memref<2x4x8x32xf32, #tpu.memory_space<vmem>>, vector<1x1x8x32xf32>
    %125 = vector.shape_cast %124 : vector<1x1x8x32xf32> to vector<8x32xf32>
    %cst_91 = arith.constant dense<0.000000e+00> : vector<34x32xf32>
    %126 = tpu.matmul %123, %125, %cst_91 {dimension_numbers = #tpu.dot_dimension_numbers<[1], [0], [0], [1], [0, 0, 1, 1], [], []>} : vector<34x8xf32>, vector<8x32xf32>, vector<34x32xf32> -> vector<34x32xf32>
    %127 = arith.addf %89, %126 : vector<34x32xf32>
    %c0_92 = arith.constant 0 : index
    %c2 = arith.constant 2 : index
    %c0_93 = arith.constant 0 : index
    %c0_94 = arith.constant 0 : index
    %128 = vector.load %arg5[%c0_92, %c2, %c0_93, %c0_94] : memref<2x4x32x8xf32, #tpu.memory_space<vmem>>, vector<1x1x32x8xf32>
    %129 = vector.shape_cast %128 : vector<1x1x32x8xf32> to vector<32x8xf32>
    %cst_95 = arith.constant dense<0.000000e+00> : vector<34x8xf32>
    %130 = tpu.matmul %52, %129, %cst_95 {dimension_numbers = #tpu.dot_dimension_numbers<[1], [0], [0], [1], [0, 0, 1, 1], [], []>} : vector<34x32xf32>, vector<32x8xf32>, vector<34x8xf32> -> vector<34x8xf32>
    %c0_96 = arith.constant 0 : index
    %c2_97 = arith.constant 2 : index
    %c0_98 = arith.constant 0 : index
    %c0_99 = arith.constant 0 : index
    %131 = vector.load %arg6[%c0_96, %c2_97, %c0_98, %c0_99] : memref<2x4x1x8xf32, #tpu.memory_space<vmem>>, vector<1x1x1x8xf32>
    %132 = vector.shape_cast %131 : vector<1x1x1x8xf32> to vector<1x8xf32>
    %133 = vector.broadcast %132 : vector<1x8xf32> to vector<34x8xf32>
    %134 = arith.addf %130, %133 : vector<34x8xf32>
    %c0_100 = arith.constant 0 : index
    %c2_101 = arith.constant 2 : index
    %c0_102 = arith.constant 0 : index
    %c0_103 = arith.constant 0 : index
    %135 = vector.load %arg7[%c0_100, %c2_101, %c0_102, %c0_103] : memref<2x4x32x8xf32, #tpu.memory_space<vmem>>, vector<1x1x32x8xf32>
    %136 = vector.shape_cast %135 : vector<1x1x32x8xf32> to vector<32x8xf32>
    %cst_104 = arith.constant dense<0.000000e+00> : vector<34x8xf32>
    %137 = tpu.matmul %52, %136, %cst_104 {dimension_numbers = #tpu.dot_dimension_numbers<[1], [0], [0], [1], [0, 0, 1, 1], [], []>} : vector<34x32xf32>, vector<32x8xf32>, vector<34x8xf32> -> vector<34x8xf32>
    %c0_105 = arith.constant 0 : index
    %c2_106 = arith.constant 2 : index
    %c0_107 = arith.constant 0 : index
    %c0_108 = arith.constant 0 : index
    %138 = vector.load %arg8[%c0_105, %c2_106, %c0_107, %c0_108] : memref<2x4x1x8xf32, #tpu.memory_space<vmem>>, vector<1x1x1x8xf32>
    %139 = vector.shape_cast %138 : vector<1x1x1x8xf32> to vector<1x8xf32>
    %140 = vector.broadcast %139 : vector<1x8xf32> to vector<34x8xf32>
    %141 = arith.addf %137, %140 : vector<34x8xf32>
    %c0_109 = arith.constant 0 : index
    %c2_110 = arith.constant 2 : index
    %c0_111 = arith.constant 0 : index
    %c0_112 = arith.constant 0 : index
    %142 = vector.load %arg9[%c0_109, %c2_110, %c0_111, %c0_112] : memref<2x4x32x8xf32, #tpu.memory_space<vmem>>, vector<1x1x32x8xf32>
    %143 = vector.shape_cast %142 : vector<1x1x32x8xf32> to vector<32x8xf32>
    %cst_113 = arith.constant dense<0.000000e+00> : vector<34x8xf32>
    %144 = tpu.matmul %52, %143, %cst_113 {dimension_numbers = #tpu.dot_dimension_numbers<[1], [0], [0], [1], [0, 0, 1, 1], [], []>} : vector<34x32xf32>, vector<32x8xf32>, vector<34x8xf32> -> vector<34x8xf32>
    %c0_114 = arith.constant 0 : index
    %c2_115 = arith.constant 2 : index
    %c0_116 = arith.constant 0 : index
    %c0_117 = arith.constant 0 : index
    %145 = vector.load %arg10[%c0_114, %c2_115, %c0_116, %c0_117] : memref<2x4x1x8xf32, #tpu.memory_space<vmem>>, vector<1x1x1x8xf32>
    %146 = vector.shape_cast %145 : vector<1x1x1x8xf32> to vector<1x8xf32>
    %147 = vector.broadcast %146 : vector<1x8xf32> to vector<34x8xf32>
    %148 = arith.addf %144, %147 : vector<34x8xf32>
    %cst_118 = arith.constant dense<0.000000e+00> : vector<34x34xf32>
    %149 = tpu.matmul %134, %141, %cst_118 {dimension_numbers = #tpu.dot_dimension_numbers<[1], [1], [0], [0], [0, 0, 1, 0], [], []>} : vector<34x8xf32>, vector<34x8xf32>, vector<34x34xf32> -> vector<34x34xf32>
    %150 = arith.addf %149, %21 : vector<34x34xf32>
    %cst_119 = arith.constant dense<0xFF800000> : vector<34xf32>
    %151 = vector.multi_reduction <maximumf>, %150, %cst_119 [1] : vector<34x34xf32> to vector<34xf32>
    %152 = vector.shape_cast %151 : vector<34xf32> to vector<34x1xf32>
    %153 = vector.broadcast %152 : vector<34x1xf32> to vector<34x34xf32>
    %154 = arith.subf %150, %153 : vector<34x34xf32>
    %155 = math.exp %154 : vector<34x34xf32>
    %cst_120 = arith.constant dense<0.000000e+00> : vector<34xf32>
    %156 = vector.multi_reduction <add>, %155, %cst_120 [1] : vector<34x34xf32> to vector<34xf32>
    %157 = vector.shape_cast %156 : vector<34xf32> to vector<34x1xf32>
    %158 = tpu.reciprocal %157 {approx = true} : vector<34x1xf32> -> vector<34x1xf32>
    %159 = vector.broadcast %158 : vector<34x1xf32> to vector<34x34xf32>
    %160 = arith.mulf %155, %159 : vector<34x34xf32>
    %cst_121 = arith.constant dense<0.000000e+00> : vector<34x8xf32>
    %161 = tpu.matmul %160, %148, %cst_121 {dimension_numbers = #tpu.dot_dimension_numbers<[1], [0], [0], [1], [0, 0, 1, 1], [], []>} : vector<34x34xf32>, vector<34x8xf32>, vector<34x8xf32> -> vector<34x8xf32>
    %c0_122 = arith.constant 0 : index
    %c2_123 = arith.constant 2 : index
    %c0_124 = arith.constant 0 : index
    %c0_125 = arith.constant 0 : index
    %162 = vector.load %arg11[%c0_122, %c2_123, %c0_124, %c0_125] : memref<2x4x8x32xf32, #tpu.memory_space<vmem>>, vector<1x1x8x32xf32>
    %163 = vector.shape_cast %162 : vector<1x1x8x32xf32> to vector<8x32xf32>
    %cst_126 = arith.constant dense<0.000000e+00> : vector<34x32xf32>
    %164 = tpu.matmul %161, %163, %cst_126 {dimension_numbers = #tpu.dot_dimension_numbers<[1], [0], [0], [1], [0, 0, 1, 1], [], []>} : vector<34x8xf32>, vector<8x32xf32>, vector<34x32xf32> -> vector<34x32xf32>
    %165 = arith.addf %127, %164 : vector<34x32xf32>
    %c0_127 = arith.constant 0 : index
    %c3 = arith.constant 3 : index
    %c0_128 = arith.constant 0 : index
    %c0_129 = arith.constant 0 : index
    %166 = vector.load %arg5[%c0_127, %c3, %c0_128, %c0_129] : memref<2x4x32x8xf32, #tpu.memory_space<vmem>>, vector<1x1x32x8xf32>
    %167 = vector.shape_cast %166 : vector<1x1x32x8xf32> to vector<32x8xf32>
    %cst_130 = arith.constant dense<0.000000e+00> : vector<34x8xf32>
    %168 = tpu.matmul %52, %167, %cst_130 {dimension_numbers = #tpu.dot_dimension_numbers<[1], [0], [0], [1], [0, 0, 1, 1], [], []>} : vector<34x32xf32>, vector<32x8xf32>, vector<34x8xf32> -> vector<34x8xf32>
    %c0_131 = arith.constant 0 : index
    %c3_132 = arith.constant 3 : index
    %c0_133 = arith.constant 0 : index
    %c0_134 = arith.constant 0 : index
    %169 = vector.load %arg6[%c0_131, %c3_132, %c0_133, %c0_134] : memref<2x4x1x8xf32, #tpu.memory_space<vmem>>, vector<1x1x1x8xf32>
    %170 = vector.shape_cast %169 : vector<1x1x1x8xf32> to vector<1x8xf32>
    %171 = vector.broadcast %170 : vector<1x8xf32> to vector<34x8xf32>
    %172 = arith.addf %168, %171 : vector<34x8xf32>
    %c0_135 = arith.constant 0 : index
    %c3_136 = arith.constant 3 : index
    %c0_137 = arith.constant 0 : index
    %c0_138 = arith.constant 0 : index
    %173 = vector.load %arg7[%c0_135, %c3_136, %c0_137, %c0_138] : memref<2x4x32x8xf32, #tpu.memory_space<vmem>>, vector<1x1x32x8xf32>
    %174 = vector.shape_cast %173 : vector<1x1x32x8xf32> to vector<32x8xf32>
    %cst_139 = arith.constant dense<0.000000e+00> : vector<34x8xf32>
    %175 = tpu.matmul %52, %174, %cst_139 {dimension_numbers = #tpu.dot_dimension_numbers<[1], [0], [0], [1], [0, 0, 1, 1], [], []>} : vector<34x32xf32>, vector<32x8xf32>, vector<34x8xf32> -> vector<34x8xf32>
    %c0_140 = arith.constant 0 : index
    %c3_141 = arith.constant 3 : index
    %c0_142 = arith.constant 0 : index
    %c0_143 = arith.constant 0 : index
    %176 = vector.load %arg8[%c0_140, %c3_141, %c0_142, %c0_143] : memref<2x4x1x8xf32, #tpu.memory_space<vmem>>, vector<1x1x1x8xf32>
    %177 = vector.shape_cast %176 : vector<1x1x1x8xf32> to vector<1x8xf32>
    %178 = vector.broadcast %177 : vector<1x8xf32> to vector<34x8xf32>
    %179 = arith.addf %175, %178 : vector<34x8xf32>
    %c0_144 = arith.constant 0 : index
    %c3_145 = arith.constant 3 : index
    %c0_146 = arith.constant 0 : index
    %c0_147 = arith.constant 0 : index
    %180 = vector.load %arg9[%c0_144, %c3_145, %c0_146, %c0_147] : memref<2x4x32x8xf32, #tpu.memory_space<vmem>>, vector<1x1x32x8xf32>
    %181 = vector.shape_cast %180 : vector<1x1x32x8xf32> to vector<32x8xf32>
    %cst_148 = arith.constant dense<0.000000e+00> : vector<34x8xf32>
    %182 = tpu.matmul %52, %181, %cst_148 {dimension_numbers = #tpu.dot_dimension_numbers<[1], [0], [0], [1], [0, 0, 1, 1], [], []>} : vector<34x32xf32>, vector<32x8xf32>, vector<34x8xf32> -> vector<34x8xf32>
    %c0_149 = arith.constant 0 : index
    %c3_150 = arith.constant 3 : index
    %c0_151 = arith.constant 0 : index
    %c0_152 = arith.constant 0 : index
    %183 = vector.load %arg10[%c0_149, %c3_150, %c0_151, %c0_152] : memref<2x4x1x8xf32, #tpu.memory_space<vmem>>, vector<1x1x1x8xf32>
    %184 = vector.shape_cast %183 : vector<1x1x1x8xf32> to vector<1x8xf32>
    %185 = vector.broadcast %184 : vector<1x8xf32> to vector<34x8xf32>
    %186 = arith.addf %182, %185 : vector<34x8xf32>
    %cst_153 = arith.constant dense<0.000000e+00> : vector<34x34xf32>
    %187 = tpu.matmul %172, %179, %cst_153 {dimension_numbers = #tpu.dot_dimension_numbers<[1], [1], [0], [0], [0, 0, 1, 0], [], []>} : vector<34x8xf32>, vector<34x8xf32>, vector<34x34xf32> -> vector<34x34xf32>
    %188 = arith.addf %187, %21 : vector<34x34xf32>
    %cst_154 = arith.constant dense<0xFF800000> : vector<34xf32>
    %189 = vector.multi_reduction <maximumf>, %188, %cst_154 [1] : vector<34x34xf32> to vector<34xf32>
    %190 = vector.shape_cast %189 : vector<34xf32> to vector<34x1xf32>
    %191 = vector.broadcast %190 : vector<34x1xf32> to vector<34x34xf32>
    %192 = arith.subf %188, %191 : vector<34x34xf32>
    %193 = math.exp %192 : vector<34x34xf32>
    %cst_155 = arith.constant dense<0.000000e+00> : vector<34xf32>
    %194 = vector.multi_reduction <add>, %193, %cst_155 [1] : vector<34x34xf32> to vector<34xf32>
    %195 = vector.shape_cast %194 : vector<34xf32> to vector<34x1xf32>
    %196 = tpu.reciprocal %195 {approx = true} : vector<34x1xf32> -> vector<34x1xf32>
    %197 = vector.broadcast %196 : vector<34x1xf32> to vector<34x34xf32>
    %198 = arith.mulf %193, %197 : vector<34x34xf32>
    %cst_156 = arith.constant dense<0.000000e+00> : vector<34x8xf32>
    %199 = tpu.matmul %198, %186, %cst_156 {dimension_numbers = #tpu.dot_dimension_numbers<[1], [0], [0], [1], [0, 0, 1, 1], [], []>} : vector<34x34xf32>, vector<34x8xf32>, vector<34x8xf32> -> vector<34x8xf32>
    %c0_157 = arith.constant 0 : index
    %c3_158 = arith.constant 3 : index
    %c0_159 = arith.constant 0 : index
    %c0_160 = arith.constant 0 : index
    %200 = vector.load %arg11[%c0_157, %c3_158, %c0_159, %c0_160] : memref<2x4x8x32xf32, #tpu.memory_space<vmem>>, vector<1x1x8x32xf32>
    %201 = vector.shape_cast %200 : vector<1x1x8x32xf32> to vector<8x32xf32>
    %cst_161 = arith.constant dense<0.000000e+00> : vector<34x32xf32>
    %202 = tpu.matmul %199, %201, %cst_161 {dimension_numbers = #tpu.dot_dimension_numbers<[1], [0], [0], [1], [0, 0, 1, 1], [], []>} : vector<34x8xf32>, vector<8x32xf32>, vector<34x32xf32> -> vector<34x32xf32>
    %203 = arith.addf %165, %202 : vector<34x32xf32>
    %204 = arith.addf %26, %203 : vector<34x32xf32>
    %c0_162 = arith.constant 0 : index
    %c0_163 = arith.constant 0 : index
    %c0_164 = arith.constant 0 : index
    %205 = vector.load %arg12[%c0_162, %c0_163, %c0_164] : memref<2x1x32xf32, #tpu.memory_space<vmem>>, vector<1x1x32xf32>
    %206 = vector.shape_cast %205 : vector<1x1x32xf32> to vector<1x32xf32>
    %207 = vector.broadcast %206 : vector<1x32xf32> to vector<34x32xf32>
    %208 = arith.addf %204, %207 : vector<34x32xf32>
    %c0_165 = arith.constant 0 : index
    %c0_166 = arith.constant 0 : index
    %c0_167 = arith.constant 0 : index
    %209 = vector.load %arg13[%c0_165, %c0_166, %c0_167] : memref<2x1x32xf32, #tpu.memory_space<vmem>>, vector<1x1x32xf32>
    %210 = vector.shape_cast %209 : vector<1x1x32xf32> to vector<1x32xf32>
    %c0_168 = arith.constant 0 : index
    %c0_169 = arith.constant 0 : index
    %c0_170 = arith.constant 0 : index
    %211 = vector.load %arg14[%c0_168, %c0_169, %c0_170] : memref<2x1x32xf32, #tpu.memory_space<vmem>>, vector<1x1x32xf32>
    %212 = vector.shape_cast %211 : vector<1x1x32xf32> to vector<1x32xf32>
    %cst_171 = arith.constant dense<0.000000e+00> : vector<34xf32>
    %213 = vector.multi_reduction <add>, %208, %cst_171 [1] : vector<34x32xf32> to vector<34xf32>
    %214 = vector.shape_cast %213 : vector<34xf32> to vector<34x1xf32>
    %cst_172 = arith.constant 3.200000e+01 : f32
    %215 = vector.broadcast %cst_172 : f32 to vector<34x1xf32>
    %216 = arith.divf %214, %215 : vector<34x1xf32>
    %217 = arith.mulf %208, %208 : vector<34x32xf32>
    %cst_173 = arith.constant dense<0.000000e+00> : vector<34xf32>
    %218 = vector.multi_reduction <add>, %217, %cst_173 [1] : vector<34x32xf32> to vector<34xf32>
    %219 = vector.shape_cast %218 : vector<34xf32> to vector<34x1xf32>
    %cst_174 = arith.constant 3.200000e+01 : f32
    %220 = vector.broadcast %cst_174 : f32 to vector<34x1xf32>
    %221 = arith.divf %219, %220 : vector<34x1xf32>
    %222 = arith.mulf %216, %216 : vector<34x1xf32>
    %223 = arith.subf %221, %222 : vector<34x1xf32>
    %224 = vector.broadcast %216 : vector<34x1xf32> to vector<34x32xf32>
    %225 = arith.subf %208, %224 : vector<34x32xf32>
    %cst_175 = arith.constant 9.99999974E-6 : f32
    %226 = vector.broadcast %cst_175 : f32 to vector<34x1xf32>
    %227 = arith.addf %223, %226 : vector<34x1xf32>
    %228 = math.rsqrt %227 : vector<34x1xf32>
    %229 = vector.broadcast %228 : vector<34x1xf32> to vector<34x32xf32>
    %230 = arith.mulf %225, %229 : vector<34x32xf32>
    %231 = vector.broadcast %210 : vector<1x32xf32> to vector<34x32xf32>
    %232 = arith.mulf %230, %231 : vector<34x32xf32>
    %233 = vector.broadcast %212 : vector<1x32xf32> to vector<34x32xf32>
    %234 = arith.addf %232, %233 : vector<34x32xf32>
    %c0_176 = arith.constant 0 : index
    %c0_177 = arith.constant 0 : index
    %c0_178 = arith.constant 0 : index
    %235 = vector.load %arg15[%c0_176, %c0_177, %c0_178] : memref<2x32x128xf32, #tpu.memory_space<vmem>>, vector<1x32x128xf32>
    %236 = vector.shape_cast %235 : vector<1x32x128xf32> to vector<32x128xf32>
    %cst_179 = arith.constant dense<0.000000e+00> : vector<34x128xf32>
    %237 = tpu.matmul %234, %236, %cst_179 {dimension_numbers = #tpu.dot_dimension_numbers<[1], [0], [0], [1], [0, 0, 1, 1], [], []>} : vector<34x32xf32>, vector<32x128xf32>, vector<34x128xf32> -> vector<34x128xf32>
    %c0_180 = arith.constant 0 : index
    %c0_181 = arith.constant 0 : index
    %c0_182 = arith.constant 0 : index
    %238 = vector.load %arg16[%c0_180, %c0_181, %c0_182] : memref<2x1x128xf32, #tpu.memory_space<vmem>>, vector<1x1x128xf32>
    %239 = vector.shape_cast %238 : vector<1x1x128xf32> to vector<1x128xf32>
    %240 = vector.broadcast %239 : vector<1x128xf32> to vector<34x128xf32>
    %241 = arith.addf %237, %240 : vector<34x128xf32>
    %cst_183 = arith.constant 5.000000e-01 : f32
    %242 = vector.broadcast %cst_183 : f32 to vector<34x128xf32>
    %243 = arith.mulf %242, %241 : vector<34x128xf32>
    %cst_184 = arith.constant 0.707106769 : f32
    %244 = vector.broadcast %cst_184 : f32 to vector<34x128xf32>
    %245 = arith.mulf %241, %244 : vector<34x128xf32>
    %cst_185 = arith.constant -4.000000e+00 : f32
    %cst_186 = arith.constant 4.000000e+00 : f32
    %246 = vector.broadcast %cst_185 : f32 to vector<34x128xf32>
    %247 = arith.maximumf %246, %245 : vector<34x128xf32>
    %248 = vector.broadcast %cst_186 : f32 to vector<34x128xf32>
    %249 = arith.minimumf %248, %247 : vector<34x128xf32>
    %250 = arith.mulf %249, %249 : vector<34x128xf32>
    %251 = arith.mulf %250, %250 : vector<34x128xf32>
    %252 = arith.mulf %251, %251 : vector<34x128xf32>
    %cst_187 = arith.constant -2.954600e-03 : f32
    %253 = vector.broadcast %cst_187 : f32 to vector<34x128xf32>
    %254 = arith.mulf %253, %250 : vector<34x128xf32>
    %cst_188 = arith.constant -0.0160960332 : f32
    %255 = vector.broadcast %cst_188 : f32 to vector<34x128xf32>
    %256 = arith.addf %254, %255 : vector<34x128xf32>
    %cst_189 = arith.constant -5.69250624E-5 : f32
    %257 = vector.broadcast %cst_189 : f32 to vector<34x128xf32>
    %258 = arith.mulf %257, %250 : vector<34x128xf32>
    %cst_190 = arith.constant -7.34990637E-4 : f32
    %259 = vector.broadcast %cst_190 : f32 to vector<34x128xf32>
    %260 = arith.addf %258, %259 : vector<34x128xf32>
    %cst_191 = arith.constant 2.77068146E-8 : f32
    %261 = vector.broadcast %cst_191 : f32 to vector<34x128xf32>
    %262 = arith.mulf %261, %250 : vector<34x128xf32>
    %cst_192 = arith.constant -2.10102394E-6 : f32
    %263 = vector.broadcast %cst_192 : f32 to vector<34x128xf32>
    %264 = arith.addf %262, %263 : vector<34x128xf32>
    %cst_193 = arith.constant -2.72614237E-10 : f32
    %265 = vector.broadcast %cst_193 : f32 to vector<34x128xf32>
    %266 = arith.mulf %265, %251 : vector<34x128xf32>
    %267 = arith.addf %266, %264 : vector<34x128xf32>
    %268 = arith.mulf %267, %252 : vector<34x128xf32>
    %269 = arith.mulf %260, %251 : vector<34x128xf32>
    %270 = arith.addf %269, %256 : vector<34x128xf32>
    %271 = arith.addf %268, %270 : vector<34x128xf32>
    %272 = arith.mulf %271, %249 : vector<34x128xf32>
    %cst_194 = arith.constant -0.00737332925 : f32
    %273 = vector.broadcast %cst_194 : f32 to vector<34x128xf32>
    %274 = arith.mulf %273, %250 : vector<34x128xf32>
    %cst_195 = arith.constant -0.0142647391 : f32
    %275 = vector.broadcast %cst_195 : f32 to vector<34x128xf32>
    %276 = arith.addf %274, %275 : vector<34x128xf32>
    %cst_196 = arith.constant -2.13374049E-4 : f32
    %277 = vector.broadcast %cst_196 : f32 to vector<34x128xf32>
    %278 = arith.mulf %277, %250 : vector<34x128xf32>
    %cst_197 = arith.constant -0.00168282702 : f32
    %279 = vector.broadcast %cst_197 : f32 to vector<34x128xf32>
    %280 = arith.addf %278, %279 : vector<34x128xf32>
    %cst_198 = arith.constant -1.45660715E-5 : f32
    %281 = vector.broadcast %cst_198 : f32 to vector<34x128xf32>
    %282 = arith.mulf %281, %251 : vector<34x128xf32>
    %283 = arith.addf %282, %280 : vector<34x128xf32>
    %284 = arith.mulf %283, %251 : vector<34x128xf32>
    %285 = arith.addf %284, %276 : vector<34x128xf32>
    %286 = tpu.reciprocal %285 {approx = true} : vector<34x128xf32> -> vector<34x128xf32>
    %287 = arith.mulf %285, %286 : vector<34x128xf32>
    %cst_199 = arith.constant 2.000000e+00 : f32
    %288 = vector.broadcast %cst_199 : f32 to vector<34x128xf32>
    %289 = arith.subf %288, %287 : vector<34x128xf32>
    %290 = arith.mulf %286, %289 : vector<34x128xf32>
    %291 = arith.mulf %272, %290 : vector<34x128xf32>
    %cst_200 = arith.constant 1.000000e+00 : f32
    %292 = vector.broadcast %cst_200 : f32 to vector<34x128xf32>
    %293 = arith.addf %292, %291 : vector<34x128xf32>
    %294 = arith.mulf %243, %293 : vector<34x128xf32>
    %c0_201 = arith.constant 0 : index
    %c0_202 = arith.constant 0 : index
    %c0_203 = arith.constant 0 : index
    %295 = vector.load %arg17[%c0_201, %c0_202, %c0_203] : memref<2x128x32xf32, #tpu.memory_space<vmem>>, vector<1x128x32xf32>
    %296 = vector.shape_cast %295 : vector<1x128x32xf32> to vector<128x32xf32>
    %cst_204 = arith.constant dense<0.000000e+00> : vector<34x32xf32>
    %297 = tpu.matmul %294, %296, %cst_204 {dimension_numbers = #tpu.dot_dimension_numbers<[1], [0], [0], [1], [0, 0, 1, 1], [], []>} : vector<34x128xf32>, vector<128x32xf32>, vector<34x32xf32> -> vector<34x32xf32>
    %c0_205 = arith.constant 0 : index
    %c0_206 = arith.constant 0 : index
    %c0_207 = arith.constant 0 : index
    %298 = vector.load %arg18[%c0_205, %c0_206, %c0_207] : memref<2x1x32xf32, #tpu.memory_space<vmem>>, vector<1x1x32xf32>
    %299 = vector.shape_cast %298 : vector<1x1x32xf32> to vector<1x32xf32>
    %300 = vector.broadcast %299 : vector<1x32xf32> to vector<34x32xf32>
    %301 = arith.addf %297, %300 : vector<34x32xf32>
    %302 = arith.addf %208, %301 : vector<34x32xf32>
    %c1_208 = arith.constant 1 : index
    %c0_209 = arith.constant 0 : index
    %c0_210 = arith.constant 0 : index
    %303 = vector.load %arg3[%c1_208, %c0_209, %c0_210] : memref<2x1x32xf32, #tpu.memory_space<vmem>>, vector<1x1x32xf32>
    %304 = vector.shape_cast %303 : vector<1x1x32xf32> to vector<1x32xf32>
    %c1_211 = arith.constant 1 : index
    %c0_212 = arith.constant 0 : index
    %c0_213 = arith.constant 0 : index
    %305 = vector.load %arg4[%c1_211, %c0_212, %c0_213] : memref<2x1x32xf32, #tpu.memory_space<vmem>>, vector<1x1x32xf32>
    %306 = vector.shape_cast %305 : vector<1x1x32xf32> to vector<1x32xf32>
    %cst_214 = arith.constant dense<0.000000e+00> : vector<34xf32>
    %307 = vector.multi_reduction <add>, %302, %cst_214 [1] : vector<34x32xf32> to vector<34xf32>
    %308 = vector.shape_cast %307 : vector<34xf32> to vector<34x1xf32>
    %cst_215 = arith.constant 3.200000e+01 : f32
    %309 = vector.broadcast %cst_215 : f32 to vector<34x1xf32>
    %310 = arith.divf %308, %309 : vector<34x1xf32>
    %311 = arith.mulf %302, %302 : vector<34x32xf32>
    %cst_216 = arith.constant dense<0.000000e+00> : vector<34xf32>
    %312 = vector.multi_reduction <add>, %311, %cst_216 [1] : vector<34x32xf32> to vector<34xf32>
    %313 = vector.shape_cast %312 : vector<34xf32> to vector<34x1xf32>
    %cst_217 = arith.constant 3.200000e+01 : f32
    %314 = vector.broadcast %cst_217 : f32 to vector<34x1xf32>
    %315 = arith.divf %313, %314 : vector<34x1xf32>
    %316 = arith.mulf %310, %310 : vector<34x1xf32>
    %317 = arith.subf %315, %316 : vector<34x1xf32>
    %318 = vector.broadcast %310 : vector<34x1xf32> to vector<34x32xf32>
    %319 = arith.subf %302, %318 : vector<34x32xf32>
    %cst_218 = arith.constant 9.99999974E-6 : f32
    %320 = vector.broadcast %cst_218 : f32 to vector<34x1xf32>
    %321 = arith.addf %317, %320 : vector<34x1xf32>
    %322 = math.rsqrt %321 : vector<34x1xf32>
    %323 = vector.broadcast %322 : vector<34x1xf32> to vector<34x32xf32>
    %324 = arith.mulf %319, %323 : vector<34x32xf32>
    %325 = vector.broadcast %304 : vector<1x32xf32> to vector<34x32xf32>
    %326 = arith.mulf %324, %325 : vector<34x32xf32>
    %327 = vector.broadcast %306 : vector<1x32xf32> to vector<34x32xf32>
    %328 = arith.addf %326, %327 : vector<34x32xf32>
    %c1_219 = arith.constant 1 : index
    %c0_220 = arith.constant 0 : index
    %c0_221 = arith.constant 0 : index
    %c0_222 = arith.constant 0 : index
    %329 = vector.load %arg5[%c1_219, %c0_220, %c0_221, %c0_222] : memref<2x4x32x8xf32, #tpu.memory_space<vmem>>, vector<1x1x32x8xf32>
    %330 = vector.shape_cast %329 : vector<1x1x32x8xf32> to vector<32x8xf32>
    %cst_223 = arith.constant dense<0.000000e+00> : vector<34x8xf32>
    %331 = tpu.matmul %328, %330, %cst_223 {dimension_numbers = #tpu.dot_dimension_numbers<[1], [0], [0], [1], [0, 0, 1, 1], [], []>} : vector<34x32xf32>, vector<32x8xf32>, vector<34x8xf32> -> vector<34x8xf32>
    %c1_224 = arith.constant 1 : index
    %c0_225 = arith.constant 0 : index
    %c0_226 = arith.constant 0 : index
    %c0_227 = arith.constant 0 : index
    %332 = vector.load %arg6[%c1_224, %c0_225, %c0_226, %c0_227] : memref<2x4x1x8xf32, #tpu.memory_space<vmem>>, vector<1x1x1x8xf32>
    %333 = vector.shape_cast %332 : vector<1x1x1x8xf32> to vector<1x8xf32>
    %334 = vector.broadcast %333 : vector<1x8xf32> to vector<34x8xf32>
    %335 = arith.addf %331, %334 : vector<34x8xf32>
    %c1_228 = arith.constant 1 : index
    %c0_229 = arith.constant 0 : index
    %c0_230 = arith.constant 0 : index
    %c0_231 = arith.constant 0 : index
    %336 = vector.load %arg7[%c1_228, %c0_229, %c0_230, %c0_231] : memref<2x4x32x8xf32, #tpu.memory_space<vmem>>, vector<1x1x32x8xf32>
    %337 = vector.shape_cast %336 : vector<1x1x32x8xf32> to vector<32x8xf32>
    %cst_232 = arith.constant dense<0.000000e+00> : vector<34x8xf32>
    %338 = tpu.matmul %328, %337, %cst_232 {dimension_numbers = #tpu.dot_dimension_numbers<[1], [0], [0], [1], [0, 0, 1, 1], [], []>} : vector<34x32xf32>, vector<32x8xf32>, vector<34x8xf32> -> vector<34x8xf32>
    %c1_233 = arith.constant 1 : index
    %c0_234 = arith.constant 0 : index
    %c0_235 = arith.constant 0 : index
    %c0_236 = arith.constant 0 : index
    %339 = vector.load %arg8[%c1_233, %c0_234, %c0_235, %c0_236] : memref<2x4x1x8xf32, #tpu.memory_space<vmem>>, vector<1x1x1x8xf32>
    %340 = vector.shape_cast %339 : vector<1x1x1x8xf32> to vector<1x8xf32>
    %341 = vector.broadcast %340 : vector<1x8xf32> to vector<34x8xf32>
    %342 = arith.addf %338, %341 : vector<34x8xf32>
    %c1_237 = arith.constant 1 : index
    %c0_238 = arith.constant 0 : index
    %c0_239 = arith.constant 0 : index
    %c0_240 = arith.constant 0 : index
    %343 = vector.load %arg9[%c1_237, %c0_238, %c0_239, %c0_240] : memref<2x4x32x8xf32, #tpu.memory_space<vmem>>, vector<1x1x32x8xf32>
    %344 = vector.shape_cast %343 : vector<1x1x32x8xf32> to vector<32x8xf32>
    %cst_241 = arith.constant dense<0.000000e+00> : vector<34x8xf32>
    %345 = tpu.matmul %328, %344, %cst_241 {dimension_numbers = #tpu.dot_dimension_numbers<[1], [0], [0], [1], [0, 0, 1, 1], [], []>} : vector<34x32xf32>, vector<32x8xf32>, vector<34x8xf32> -> vector<34x8xf32>
    %c1_242 = arith.constant 1 : index
    %c0_243 = arith.constant 0 : index
    %c0_244 = arith.constant 0 : index
    %c0_245 = arith.constant 0 : index
    %346 = vector.load %arg10[%c1_242, %c0_243, %c0_244, %c0_245] : memref<2x4x1x8xf32, #tpu.memory_space<vmem>>, vector<1x1x1x8xf32>
    %347 = vector.shape_cast %346 : vector<1x1x1x8xf32> to vector<1x8xf32>
    %348 = vector.broadcast %347 : vector<1x8xf32> to vector<34x8xf32>
    %349 = arith.addf %345, %348 : vector<34x8xf32>
    %cst_246 = arith.constant dense<0.000000e+00> : vector<34x34xf32>
    %350 = tpu.matmul %335, %342, %cst_246 {dimension_numbers = #tpu.dot_dimension_numbers<[1], [1], [0], [0], [0, 0, 1, 0], [], []>} : vector<34x8xf32>, vector<34x8xf32>, vector<34x34xf32> -> vector<34x34xf32>
    %351 = arith.addf %350, %21 : vector<34x34xf32>
    %cst_247 = arith.constant dense<0xFF800000> : vector<34xf32>
    %352 = vector.multi_reduction <maximumf>, %351, %cst_247 [1] : vector<34x34xf32> to vector<34xf32>
    %353 = vector.shape_cast %352 : vector<34xf32> to vector<34x1xf32>
    %354 = vector.broadcast %353 : vector<34x1xf32> to vector<34x34xf32>
    %355 = arith.subf %351, %354 : vector<34x34xf32>
    %356 = math.exp %355 : vector<34x34xf32>
    %cst_248 = arith.constant dense<0.000000e+00> : vector<34xf32>
    %357 = vector.multi_reduction <add>, %356, %cst_248 [1] : vector<34x34xf32> to vector<34xf32>
    %358 = vector.shape_cast %357 : vector<34xf32> to vector<34x1xf32>
    %359 = tpu.reciprocal %358 {approx = true} : vector<34x1xf32> -> vector<34x1xf32>
    %360 = vector.broadcast %359 : vector<34x1xf32> to vector<34x34xf32>
    %361 = arith.mulf %356, %360 : vector<34x34xf32>
    %cst_249 = arith.constant dense<0.000000e+00> : vector<34x8xf32>
    %362 = tpu.matmul %361, %349, %cst_249 {dimension_numbers = #tpu.dot_dimension_numbers<[1], [0], [0], [1], [0, 0, 1, 1], [], []>} : vector<34x34xf32>, vector<34x8xf32>, vector<34x8xf32> -> vector<34x8xf32>
    %c1_250 = arith.constant 1 : index
    %c0_251 = arith.constant 0 : index
    %c0_252 = arith.constant 0 : index
    %c0_253 = arith.constant 0 : index
    %363 = vector.load %arg11[%c1_250, %c0_251, %c0_252, %c0_253] : memref<2x4x8x32xf32, #tpu.memory_space<vmem>>, vector<1x1x8x32xf32>
    %364 = vector.shape_cast %363 : vector<1x1x8x32xf32> to vector<8x32xf32>
    %cst_254 = arith.constant dense<0.000000e+00> : vector<34x32xf32>
    %365 = tpu.matmul %362, %364, %cst_254 {dimension_numbers = #tpu.dot_dimension_numbers<[1], [0], [0], [1], [0, 0, 1, 1], [], []>} : vector<34x8xf32>, vector<8x32xf32>, vector<34x32xf32> -> vector<34x32xf32>
    %c1_255 = arith.constant 1 : index
    %c1_256 = arith.constant 1 : index
    %c0_257 = arith.constant 0 : index
    %c0_258 = arith.constant 0 : index
    %366 = vector.load %arg5[%c1_255, %c1_256, %c0_257, %c0_258] : memref<2x4x32x8xf32, #tpu.memory_space<vmem>>, vector<1x1x32x8xf32>
    %367 = vector.shape_cast %366 : vector<1x1x32x8xf32> to vector<32x8xf32>
    %cst_259 = arith.constant dense<0.000000e+00> : vector<34x8xf32>
    %368 = tpu.matmul %328, %367, %cst_259 {dimension_numbers = #tpu.dot_dimension_numbers<[1], [0], [0], [1], [0, 0, 1, 1], [], []>} : vector<34x32xf32>, vector<32x8xf32>, vector<34x8xf32> -> vector<34x8xf32>
    %c1_260 = arith.constant 1 : index
    %c1_261 = arith.constant 1 : index
    %c0_262 = arith.constant 0 : index
    %c0_263 = arith.constant 0 : index
    %369 = vector.load %arg6[%c1_260, %c1_261, %c0_262, %c0_263] : memref<2x4x1x8xf32, #tpu.memory_space<vmem>>, vector<1x1x1x8xf32>
    %370 = vector.shape_cast %369 : vector<1x1x1x8xf32> to vector<1x8xf32>
    %371 = vector.broadcast %370 : vector<1x8xf32> to vector<34x8xf32>
    %372 = arith.addf %368, %371 : vector<34x8xf32>
    %c1_264 = arith.constant 1 : index
    %c1_265 = arith.constant 1 : index
    %c0_266 = arith.constant 0 : index
    %c0_267 = arith.constant 0 : index
    %373 = vector.load %arg7[%c1_264, %c1_265, %c0_266, %c0_267] : memref<2x4x32x8xf32, #tpu.memory_space<vmem>>, vector<1x1x32x8xf32>
    %374 = vector.shape_cast %373 : vector<1x1x32x8xf32> to vector<32x8xf32>
    %cst_268 = arith.constant dense<0.000000e+00> : vector<34x8xf32>
    %375 = tpu.matmul %328, %374, %cst_268 {dimension_numbers = #tpu.dot_dimension_numbers<[1], [0], [0], [1], [0, 0, 1, 1], [], []>} : vector<34x32xf32>, vector<32x8xf32>, vector<34x8xf32> -> vector<34x8xf32>
    %c1_269 = arith.constant 1 : index
    %c1_270 = arith.constant 1 : index
    %c0_271 = arith.constant 0 : index
    %c0_272 = arith.constant 0 : index
    %376 = vector.load %arg8[%c1_269, %c1_270, %c0_271, %c0_272] : memref<2x4x1x8xf32, #tpu.memory_space<vmem>>, vector<1x1x1x8xf32>
    %377 = vector.shape_cast %376 : vector<1x1x1x8xf32> to vector<1x8xf32>
    %378 = vector.broadcast %377 : vector<1x8xf32> to vector<34x8xf32>
    %379 = arith.addf %375, %378 : vector<34x8xf32>
    %c1_273 = arith.constant 1 : index
    %c1_274 = arith.constant 1 : index
    %c0_275 = arith.constant 0 : index
    %c0_276 = arith.constant 0 : index
    %380 = vector.load %arg9[%c1_273, %c1_274, %c0_275, %c0_276] : memref<2x4x32x8xf32, #tpu.memory_space<vmem>>, vector<1x1x32x8xf32>
    %381 = vector.shape_cast %380 : vector<1x1x32x8xf32> to vector<32x8xf32>
    %cst_277 = arith.constant dense<0.000000e+00> : vector<34x8xf32>
    %382 = tpu.matmul %328, %381, %cst_277 {dimension_numbers = #tpu.dot_dimension_numbers<[1], [0], [0], [1], [0, 0, 1, 1], [], []>} : vector<34x32xf32>, vector<32x8xf32>, vector<34x8xf32> -> vector<34x8xf32>
    %c1_278 = arith.constant 1 : index
    %c1_279 = arith.constant 1 : index
    %c0_280 = arith.constant 0 : index
    %c0_281 = arith.constant 0 : index
    %383 = vector.load %arg10[%c1_278, %c1_279, %c0_280, %c0_281] : memref<2x4x1x8xf32, #tpu.memory_space<vmem>>, vector<1x1x1x8xf32>
    %384 = vector.shape_cast %383 : vector<1x1x1x8xf32> to vector<1x8xf32>
    %385 = vector.broadcast %384 : vector<1x8xf32> to vector<34x8xf32>
    %386 = arith.addf %382, %385 : vector<34x8xf32>
    %cst_282 = arith.constant dense<0.000000e+00> : vector<34x34xf32>
    %387 = tpu.matmul %372, %379, %cst_282 {dimension_numbers = #tpu.dot_dimension_numbers<[1], [1], [0], [0], [0, 0, 1, 0], [], []>} : vector<34x8xf32>, vector<34x8xf32>, vector<34x34xf32> -> vector<34x34xf32>
    %388 = arith.addf %387, %21 : vector<34x34xf32>
    %cst_283 = arith.constant dense<0xFF800000> : vector<34xf32>
    %389 = vector.multi_reduction <maximumf>, %388, %cst_283 [1] : vector<34x34xf32> to vector<34xf32>
    %390 = vector.shape_cast %389 : vector<34xf32> to vector<34x1xf32>
    %391 = vector.broadcast %390 : vector<34x1xf32> to vector<34x34xf32>
    %392 = arith.subf %388, %391 : vector<34x34xf32>
    %393 = math.exp %392 : vector<34x34xf32>
    %cst_284 = arith.constant dense<0.000000e+00> : vector<34xf32>
    %394 = vector.multi_reduction <add>, %393, %cst_284 [1] : vector<34x34xf32> to vector<34xf32>
    %395 = vector.shape_cast %394 : vector<34xf32> to vector<34x1xf32>
    %396 = tpu.reciprocal %395 {approx = true} : vector<34x1xf32> -> vector<34x1xf32>
    %397 = vector.broadcast %396 : vector<34x1xf32> to vector<34x34xf32>
    %398 = arith.mulf %393, %397 : vector<34x34xf32>
    %cst_285 = arith.constant dense<0.000000e+00> : vector<34x8xf32>
    %399 = tpu.matmul %398, %386, %cst_285 {dimension_numbers = #tpu.dot_dimension_numbers<[1], [0], [0], [1], [0, 0, 1, 1], [], []>} : vector<34x34xf32>, vector<34x8xf32>, vector<34x8xf32> -> vector<34x8xf32>
    %c1_286 = arith.constant 1 : index
    %c1_287 = arith.constant 1 : index
    %c0_288 = arith.constant 0 : index
    %c0_289 = arith.constant 0 : index
    %400 = vector.load %arg11[%c1_286, %c1_287, %c0_288, %c0_289] : memref<2x4x8x32xf32, #tpu.memory_space<vmem>>, vector<1x1x8x32xf32>
    %401 = vector.shape_cast %400 : vector<1x1x8x32xf32> to vector<8x32xf32>
    %cst_290 = arith.constant dense<0.000000e+00> : vector<34x32xf32>
    %402 = tpu.matmul %399, %401, %cst_290 {dimension_numbers = #tpu.dot_dimension_numbers<[1], [0], [0], [1], [0, 0, 1, 1], [], []>} : vector<34x8xf32>, vector<8x32xf32>, vector<34x32xf32> -> vector<34x32xf32>
    %403 = arith.addf %365, %402 : vector<34x32xf32>
    %c1_291 = arith.constant 1 : index
    %c2_292 = arith.constant 2 : index
    %c0_293 = arith.constant 0 : index
    %c0_294 = arith.constant 0 : index
    %404 = vector.load %arg5[%c1_291, %c2_292, %c0_293, %c0_294] : memref<2x4x32x8xf32, #tpu.memory_space<vmem>>, vector<1x1x32x8xf32>
    %405 = vector.shape_cast %404 : vector<1x1x32x8xf32> to vector<32x8xf32>
    %cst_295 = arith.constant dense<0.000000e+00> : vector<34x8xf32>
    %406 = tpu.matmul %328, %405, %cst_295 {dimension_numbers = #tpu.dot_dimension_numbers<[1], [0], [0], [1], [0, 0, 1, 1], [], []>} : vector<34x32xf32>, vector<32x8xf32>, vector<34x8xf32> -> vector<34x8xf32>
    %c1_296 = arith.constant 1 : index
    %c2_297 = arith.constant 2 : index
    %c0_298 = arith.constant 0 : index
    %c0_299 = arith.constant 0 : index
    %407 = vector.load %arg6[%c1_296, %c2_297, %c0_298, %c0_299] : memref<2x4x1x8xf32, #tpu.memory_space<vmem>>, vector<1x1x1x8xf32>
    %408 = vector.shape_cast %407 : vector<1x1x1x8xf32> to vector<1x8xf32>
    %409 = vector.broadcast %408 : vector<1x8xf32> to vector<34x8xf32>
    %410 = arith.addf %406, %409 : vector<34x8xf32>
    %c1_300 = arith.constant 1 : index
    %c2_301 = arith.constant 2 : index
    %c0_302 = arith.constant 0 : index
    %c0_303 = arith.constant 0 : index
    %411 = vector.load %arg7[%c1_300, %c2_301, %c0_302, %c0_303] : memref<2x4x32x8xf32, #tpu.memory_space<vmem>>, vector<1x1x32x8xf32>
    %412 = vector.shape_cast %411 : vector<1x1x32x8xf32> to vector<32x8xf32>
    %cst_304 = arith.constant dense<0.000000e+00> : vector<34x8xf32>
    %413 = tpu.matmul %328, %412, %cst_304 {dimension_numbers = #tpu.dot_dimension_numbers<[1], [0], [0], [1], [0, 0, 1, 1], [], []>} : vector<34x32xf32>, vector<32x8xf32>, vector<34x8xf32> -> vector<34x8xf32>
    %c1_305 = arith.constant 1 : index
    %c2_306 = arith.constant 2 : index
    %c0_307 = arith.constant 0 : index
    %c0_308 = arith.constant 0 : index
    %414 = vector.load %arg8[%c1_305, %c2_306, %c0_307, %c0_308] : memref<2x4x1x8xf32, #tpu.memory_space<vmem>>, vector<1x1x1x8xf32>
    %415 = vector.shape_cast %414 : vector<1x1x1x8xf32> to vector<1x8xf32>
    %416 = vector.broadcast %415 : vector<1x8xf32> to vector<34x8xf32>
    %417 = arith.addf %413, %416 : vector<34x8xf32>
    %c1_309 = arith.constant 1 : index
    %c2_310 = arith.constant 2 : index
    %c0_311 = arith.constant 0 : index
    %c0_312 = arith.constant 0 : index
    %418 = vector.load %arg9[%c1_309, %c2_310, %c0_311, %c0_312] : memref<2x4x32x8xf32, #tpu.memory_space<vmem>>, vector<1x1x32x8xf32>
    %419 = vector.shape_cast %418 : vector<1x1x32x8xf32> to vector<32x8xf32>
    %cst_313 = arith.constant dense<0.000000e+00> : vector<34x8xf32>
    %420 = tpu.matmul %328, %419, %cst_313 {dimension_numbers = #tpu.dot_dimension_numbers<[1], [0], [0], [1], [0, 0, 1, 1], [], []>} : vector<34x32xf32>, vector<32x8xf32>, vector<34x8xf32> -> vector<34x8xf32>
    %c1_314 = arith.constant 1 : index
    %c2_315 = arith.constant 2 : index
    %c0_316 = arith.constant 0 : index
    %c0_317 = arith.constant 0 : index
    %421 = vector.load %arg10[%c1_314, %c2_315, %c0_316, %c0_317] : memref<2x4x1x8xf32, #tpu.memory_space<vmem>>, vector<1x1x1x8xf32>
    %422 = vector.shape_cast %421 : vector<1x1x1x8xf32> to vector<1x8xf32>
    %423 = vector.broadcast %422 : vector<1x8xf32> to vector<34x8xf32>
    %424 = arith.addf %420, %423 : vector<34x8xf32>
    %cst_318 = arith.constant dense<0.000000e+00> : vector<34x34xf32>
    %425 = tpu.matmul %410, %417, %cst_318 {dimension_numbers = #tpu.dot_dimension_numbers<[1], [1], [0], [0], [0, 0, 1, 0], [], []>} : vector<34x8xf32>, vector<34x8xf32>, vector<34x34xf32> -> vector<34x34xf32>
    %426 = arith.addf %425, %21 : vector<34x34xf32>
    %cst_319 = arith.constant dense<0xFF800000> : vector<34xf32>
    %427 = vector.multi_reduction <maximumf>, %426, %cst_319 [1] : vector<34x34xf32> to vector<34xf32>
    %428 = vector.shape_cast %427 : vector<34xf32> to vector<34x1xf32>
    %429 = vector.broadcast %428 : vector<34x1xf32> to vector<34x34xf32>
    %430 = arith.subf %426, %429 : vector<34x34xf32>
    %431 = math.exp %430 : vector<34x34xf32>
    %cst_320 = arith.constant dense<0.000000e+00> : vector<34xf32>
    %432 = vector.multi_reduction <add>, %431, %cst_320 [1] : vector<34x34xf32> to vector<34xf32>
    %433 = vector.shape_cast %432 : vector<34xf32> to vector<34x1xf32>
    %434 = tpu.reciprocal %433 {approx = true} : vector<34x1xf32> -> vector<34x1xf32>
    %435 = vector.broadcast %434 : vector<34x1xf32> to vector<34x34xf32>
    %436 = arith.mulf %431, %435 : vector<34x34xf32>
    %cst_321 = arith.constant dense<0.000000e+00> : vector<34x8xf32>
    %437 = tpu.matmul %436, %424, %cst_321 {dimension_numbers = #tpu.dot_dimension_numbers<[1], [0], [0], [1], [0, 0, 1, 1], [], []>} : vector<34x34xf32>, vector<34x8xf32>, vector<34x8xf32> -> vector<34x8xf32>
    %c1_322 = arith.constant 1 : index
    %c2_323 = arith.constant 2 : index
    %c0_324 = arith.constant 0 : index
    %c0_325 = arith.constant 0 : index
    %438 = vector.load %arg11[%c1_322, %c2_323, %c0_324, %c0_325] : memref<2x4x8x32xf32, #tpu.memory_space<vmem>>, vector<1x1x8x32xf32>
    %439 = vector.shape_cast %438 : vector<1x1x8x32xf32> to vector<8x32xf32>
    %cst_326 = arith.constant dense<0.000000e+00> : vector<34x32xf32>
    %440 = tpu.matmul %437, %439, %cst_326 {dimension_numbers = #tpu.dot_dimension_numbers<[1], [0], [0], [1], [0, 0, 1, 1], [], []>} : vector<34x8xf32>, vector<8x32xf32>, vector<34x32xf32> -> vector<34x32xf32>
    %441 = arith.addf %403, %440 : vector<34x32xf32>
    %c1_327 = arith.constant 1 : index
    %c3_328 = arith.constant 3 : index
    %c0_329 = arith.constant 0 : index
    %c0_330 = arith.constant 0 : index
    %442 = vector.load %arg5[%c1_327, %c3_328, %c0_329, %c0_330] : memref<2x4x32x8xf32, #tpu.memory_space<vmem>>, vector<1x1x32x8xf32>
    %443 = vector.shape_cast %442 : vector<1x1x32x8xf32> to vector<32x8xf32>
    %cst_331 = arith.constant dense<0.000000e+00> : vector<34x8xf32>
    %444 = tpu.matmul %328, %443, %cst_331 {dimension_numbers = #tpu.dot_dimension_numbers<[1], [0], [0], [1], [0, 0, 1, 1], [], []>} : vector<34x32xf32>, vector<32x8xf32>, vector<34x8xf32> -> vector<34x8xf32>
    %c1_332 = arith.constant 1 : index
    %c3_333 = arith.constant 3 : index
    %c0_334 = arith.constant 0 : index
    %c0_335 = arith.constant 0 : index
    %445 = vector.load %arg6[%c1_332, %c3_333, %c0_334, %c0_335] : memref<2x4x1x8xf32, #tpu.memory_space<vmem>>, vector<1x1x1x8xf32>
    %446 = vector.shape_cast %445 : vector<1x1x1x8xf32> to vector<1x8xf32>
    %447 = vector.broadcast %446 : vector<1x8xf32> to vector<34x8xf32>
    %448 = arith.addf %444, %447 : vector<34x8xf32>
    %c1_336 = arith.constant 1 : index
    %c3_337 = arith.constant 3 : index
    %c0_338 = arith.constant 0 : index
    %c0_339 = arith.constant 0 : index
    %449 = vector.load %arg7[%c1_336, %c3_337, %c0_338, %c0_339] : memref<2x4x32x8xf32, #tpu.memory_space<vmem>>, vector<1x1x32x8xf32>
    %450 = vector.shape_cast %449 : vector<1x1x32x8xf32> to vector<32x8xf32>
    %cst_340 = arith.constant dense<0.000000e+00> : vector<34x8xf32>
    %451 = tpu.matmul %328, %450, %cst_340 {dimension_numbers = #tpu.dot_dimension_numbers<[1], [0], [0], [1], [0, 0, 1, 1], [], []>} : vector<34x32xf32>, vector<32x8xf32>, vector<34x8xf32> -> vector<34x8xf32>
    %c1_341 = arith.constant 1 : index
    %c3_342 = arith.constant 3 : index
    %c0_343 = arith.constant 0 : index
    %c0_344 = arith.constant 0 : index
    %452 = vector.load %arg8[%c1_341, %c3_342, %c0_343, %c0_344] : memref<2x4x1x8xf32, #tpu.memory_space<vmem>>, vector<1x1x1x8xf32>
    %453 = vector.shape_cast %452 : vector<1x1x1x8xf32> to vector<1x8xf32>
    %454 = vector.broadcast %453 : vector<1x8xf32> to vector<34x8xf32>
    %455 = arith.addf %451, %454 : vector<34x8xf32>
    %c1_345 = arith.constant 1 : index
    %c3_346 = arith.constant 3 : index
    %c0_347 = arith.constant 0 : index
    %c0_348 = arith.constant 0 : index
    %456 = vector.load %arg9[%c1_345, %c3_346, %c0_347, %c0_348] : memref<2x4x32x8xf32, #tpu.memory_space<vmem>>, vector<1x1x32x8xf32>
    %457 = vector.shape_cast %456 : vector<1x1x32x8xf32> to vector<32x8xf32>
    %cst_349 = arith.constant dense<0.000000e+00> : vector<34x8xf32>
    %458 = tpu.matmul %328, %457, %cst_349 {dimension_numbers = #tpu.dot_dimension_numbers<[1], [0], [0], [1], [0, 0, 1, 1], [], []>} : vector<34x32xf32>, vector<32x8xf32>, vector<34x8xf32> -> vector<34x8xf32>
    %c1_350 = arith.constant 1 : index
    %c3_351 = arith.constant 3 : index
    %c0_352 = arith.constant 0 : index
    %c0_353 = arith.constant 0 : index
    %459 = vector.load %arg10[%c1_350, %c3_351, %c0_352, %c0_353] : memref<2x4x1x8xf32, #tpu.memory_space<vmem>>, vector<1x1x1x8xf32>
    %460 = vector.shape_cast %459 : vector<1x1x1x8xf32> to vector<1x8xf32>
    %461 = vector.broadcast %460 : vector<1x8xf32> to vector<34x8xf32>
    %462 = arith.addf %458, %461 : vector<34x8xf32>
    %cst_354 = arith.constant dense<0.000000e+00> : vector<34x34xf32>
    %463 = tpu.matmul %448, %455, %cst_354 {dimension_numbers = #tpu.dot_dimension_numbers<[1], [1], [0], [0], [0, 0, 1, 0], [], []>} : vector<34x8xf32>, vector<34x8xf32>, vector<34x34xf32> -> vector<34x34xf32>
    %464 = arith.addf %463, %21 : vector<34x34xf32>
    %cst_355 = arith.constant dense<0xFF800000> : vector<34xf32>
    %465 = vector.multi_reduction <maximumf>, %464, %cst_355 [1] : vector<34x34xf32> to vector<34xf32>
    %466 = vector.shape_cast %465 : vector<34xf32> to vector<34x1xf32>
    %467 = vector.broadcast %466 : vector<34x1xf32> to vector<34x34xf32>
    %468 = arith.subf %464, %467 : vector<34x34xf32>
    %469 = math.exp %468 : vector<34x34xf32>
    %cst_356 = arith.constant dense<0.000000e+00> : vector<34xf32>
    %470 = vector.multi_reduction <add>, %469, %cst_356 [1] : vector<34x34xf32> to vector<34xf32>
    %471 = vector.shape_cast %470 : vector<34xf32> to vector<34x1xf32>
    %472 = tpu.reciprocal %471 {approx = true} : vector<34x1xf32> -> vector<34x1xf32>
    %473 = vector.broadcast %472 : vector<34x1xf32> to vector<34x34xf32>
    %474 = arith.mulf %469, %473 : vector<34x34xf32>
    %cst_357 = arith.constant dense<0.000000e+00> : vector<34x8xf32>
    %475 = tpu.matmul %474, %462, %cst_357 {dimension_numbers = #tpu.dot_dimension_numbers<[1], [0], [0], [1], [0, 0, 1, 1], [], []>} : vector<34x34xf32>, vector<34x8xf32>, vector<34x8xf32> -> vector<34x8xf32>
    %c1_358 = arith.constant 1 : index
    %c3_359 = arith.constant 3 : index
    %c0_360 = arith.constant 0 : index
    %c0_361 = arith.constant 0 : index
    %476 = vector.load %arg11[%c1_358, %c3_359, %c0_360, %c0_361] : memref<2x4x8x32xf32, #tpu.memory_space<vmem>>, vector<1x1x8x32xf32>
    %477 = vector.shape_cast %476 : vector<1x1x8x32xf32> to vector<8x32xf32>
    %cst_362 = arith.constant dense<0.000000e+00> : vector<34x32xf32>
    %478 = tpu.matmul %475, %477, %cst_362 {dimension_numbers = #tpu.dot_dimension_numbers<[1], [0], [0], [1], [0, 0, 1, 1], [], []>} : vector<34x8xf32>, vector<8x32xf32>, vector<34x32xf32> -> vector<34x32xf32>
    %479 = arith.addf %441, %478 : vector<34x32xf32>
    %480 = arith.addf %302, %479 : vector<34x32xf32>
    %c1_363 = arith.constant 1 : index
    %c0_364 = arith.constant 0 : index
    %c0_365 = arith.constant 0 : index
    %481 = vector.load %arg12[%c1_363, %c0_364, %c0_365] : memref<2x1x32xf32, #tpu.memory_space<vmem>>, vector<1x1x32xf32>
    %482 = vector.shape_cast %481 : vector<1x1x32xf32> to vector<1x32xf32>
    %483 = vector.broadcast %482 : vector<1x32xf32> to vector<34x32xf32>
    %484 = arith.addf %480, %483 : vector<34x32xf32>
    %c1_366 = arith.constant 1 : index
    %c0_367 = arith.constant 0 : index
    %c0_368 = arith.constant 0 : index
    %485 = vector.load %arg13[%c1_366, %c0_367, %c0_368] : memref<2x1x32xf32, #tpu.memory_space<vmem>>, vector<1x1x32xf32>
    %486 = vector.shape_cast %485 : vector<1x1x32xf32> to vector<1x32xf32>
    %c1_369 = arith.constant 1 : index
    %c0_370 = arith.constant 0 : index
    %c0_371 = arith.constant 0 : index
    %487 = vector.load %arg14[%c1_369, %c0_370, %c0_371] : memref<2x1x32xf32, #tpu.memory_space<vmem>>, vector<1x1x32xf32>
    %488 = vector.shape_cast %487 : vector<1x1x32xf32> to vector<1x32xf32>
    %cst_372 = arith.constant dense<0.000000e+00> : vector<34xf32>
    %489 = vector.multi_reduction <add>, %484, %cst_372 [1] : vector<34x32xf32> to vector<34xf32>
    %490 = vector.shape_cast %489 : vector<34xf32> to vector<34x1xf32>
    %cst_373 = arith.constant 3.200000e+01 : f32
    %491 = vector.broadcast %cst_373 : f32 to vector<34x1xf32>
    %492 = arith.divf %490, %491 : vector<34x1xf32>
    %493 = arith.mulf %484, %484 : vector<34x32xf32>
    %cst_374 = arith.constant dense<0.000000e+00> : vector<34xf32>
    %494 = vector.multi_reduction <add>, %493, %cst_374 [1] : vector<34x32xf32> to vector<34xf32>
    %495 = vector.shape_cast %494 : vector<34xf32> to vector<34x1xf32>
    %cst_375 = arith.constant 3.200000e+01 : f32
    %496 = vector.broadcast %cst_375 : f32 to vector<34x1xf32>
    %497 = arith.divf %495, %496 : vector<34x1xf32>
    %498 = arith.mulf %492, %492 : vector<34x1xf32>
    %499 = arith.subf %497, %498 : vector<34x1xf32>
    %500 = vector.broadcast %492 : vector<34x1xf32> to vector<34x32xf32>
    %501 = arith.subf %484, %500 : vector<34x32xf32>
    %cst_376 = arith.constant 9.99999974E-6 : f32
    %502 = vector.broadcast %cst_376 : f32 to vector<34x1xf32>
    %503 = arith.addf %499, %502 : vector<34x1xf32>
    %504 = math.rsqrt %503 : vector<34x1xf32>
    %505 = vector.broadcast %504 : vector<34x1xf32> to vector<34x32xf32>
    %506 = arith.mulf %501, %505 : vector<34x32xf32>
    %507 = vector.broadcast %486 : vector<1x32xf32> to vector<34x32xf32>
    %508 = arith.mulf %506, %507 : vector<34x32xf32>
    %509 = vector.broadcast %488 : vector<1x32xf32> to vector<34x32xf32>
    %510 = arith.addf %508, %509 : vector<34x32xf32>
    %c1_377 = arith.constant 1 : index
    %c0_378 = arith.constant 0 : index
    %c0_379 = arith.constant 0 : index
    %511 = vector.load %arg15[%c1_377, %c0_378, %c0_379] : memref<2x32x128xf32, #tpu.memory_space<vmem>>, vector<1x32x128xf32>
    %512 = vector.shape_cast %511 : vector<1x32x128xf32> to vector<32x128xf32>
    %cst_380 = arith.constant dense<0.000000e+00> : vector<34x128xf32>
    %513 = tpu.matmul %510, %512, %cst_380 {dimension_numbers = #tpu.dot_dimension_numbers<[1], [0], [0], [1], [0, 0, 1, 1], [], []>} : vector<34x32xf32>, vector<32x128xf32>, vector<34x128xf32> -> vector<34x128xf32>
    %c1_381 = arith.constant 1 : index
    %c0_382 = arith.constant 0 : index
    %c0_383 = arith.constant 0 : index
    %514 = vector.load %arg16[%c1_381, %c0_382, %c0_383] : memref<2x1x128xf32, #tpu.memory_space<vmem>>, vector<1x1x128xf32>
    %515 = vector.shape_cast %514 : vector<1x1x128xf32> to vector<1x128xf32>
    %516 = vector.broadcast %515 : vector<1x128xf32> to vector<34x128xf32>
    %517 = arith.addf %513, %516 : vector<34x128xf32>
    %cst_384 = arith.constant 5.000000e-01 : f32
    %518 = vector.broadcast %cst_384 : f32 to vector<34x128xf32>
    %519 = arith.mulf %518, %517 : vector<34x128xf32>
    %cst_385 = arith.constant 0.707106769 : f32
    %520 = vector.broadcast %cst_385 : f32 to vector<34x128xf32>
    %521 = arith.mulf %517, %520 : vector<34x128xf32>
    %cst_386 = arith.constant -4.000000e+00 : f32
    %cst_387 = arith.constant 4.000000e+00 : f32
    %522 = vector.broadcast %cst_386 : f32 to vector<34x128xf32>
    %523 = arith.maximumf %522, %521 : vector<34x128xf32>
    %524 = vector.broadcast %cst_387 : f32 to vector<34x128xf32>
    %525 = arith.minimumf %524, %523 : vector<34x128xf32>
    %526 = arith.mulf %525, %525 : vector<34x128xf32>
    %527 = arith.mulf %526, %526 : vector<34x128xf32>
    %528 = arith.mulf %527, %527 : vector<34x128xf32>
    %cst_388 = arith.constant -2.954600e-03 : f32
    %529 = vector.broadcast %cst_388 : f32 to vector<34x128xf32>
    %530 = arith.mulf %529, %526 : vector<34x128xf32>
    %cst_389 = arith.constant -0.0160960332 : f32
    %531 = vector.broadcast %cst_389 : f32 to vector<34x128xf32>
    %532 = arith.addf %530, %531 : vector<34x128xf32>
    %cst_390 = arith.constant -5.69250624E-5 : f32
    %533 = vector.broadcast %cst_390 : f32 to vector<34x128xf32>
    %534 = arith.mulf %533, %526 : vector<34x128xf32>
    %cst_391 = arith.constant -7.34990637E-4 : f32
    %535 = vector.broadcast %cst_391 : f32 to vector<34x128xf32>
    %536 = arith.addf %534, %535 : vector<34x128xf32>
    %cst_392 = arith.constant 2.77068146E-8 : f32
    %537 = vector.broadcast %cst_392 : f32 to vector<34x128xf32>
    %538 = arith.mulf %537, %526 : vector<34x128xf32>
    %cst_393 = arith.constant -2.10102394E-6 : f32
    %539 = vector.broadcast %cst_393 : f32 to vector<34x128xf32>
    %540 = arith.addf %538, %539 : vector<34x128xf32>
    %cst_394 = arith.constant -2.72614237E-10 : f32
    %541 = vector.broadcast %cst_394 : f32 to vector<34x128xf32>
    %542 = arith.mulf %541, %527 : vector<34x128xf32>
    %543 = arith.addf %542, %540 : vector<34x128xf32>
    %544 = arith.mulf %543, %528 : vector<34x128xf32>
    %545 = arith.mulf %536, %527 : vector<34x128xf32>
    %546 = arith.addf %545, %532 : vector<34x128xf32>
    %547 = arith.addf %544, %546 : vector<34x128xf32>
    %548 = arith.mulf %547, %525 : vector<34x128xf32>
    %cst_395 = arith.constant -0.00737332925 : f32
    %549 = vector.broadcast %cst_395 : f32 to vector<34x128xf32>
    %550 = arith.mulf %549, %526 : vector<34x128xf32>
    %cst_396 = arith.constant -0.0142647391 : f32
    %551 = vector.broadcast %cst_396 : f32 to vector<34x128xf32>
    %552 = arith.addf %550, %551 : vector<34x128xf32>
    %cst_397 = arith.constant -2.13374049E-4 : f32
    %553 = vector.broadcast %cst_397 : f32 to vector<34x128xf32>
    %554 = arith.mulf %553, %526 : vector<34x128xf32>
    %cst_398 = arith.constant -0.00168282702 : f32
    %555 = vector.broadcast %cst_398 : f32 to vector<34x128xf32>
    %556 = arith.addf %554, %555 : vector<34x128xf32>
    %cst_399 = arith.constant -1.45660715E-5 : f32
    %557 = vector.broadcast %cst_399 : f32 to vector<34x128xf32>
    %558 = arith.mulf %557, %527 : vector<34x128xf32>
    %559 = arith.addf %558, %556 : vector<34x128xf32>
    %560 = arith.mulf %559, %527 : vector<34x128xf32>
    %561 = arith.addf %560, %552 : vector<34x128xf32>
    %562 = tpu.reciprocal %561 {approx = true} : vector<34x128xf32> -> vector<34x128xf32>
    %563 = arith.mulf %561, %562 : vector<34x128xf32>
    %cst_400 = arith.constant 2.000000e+00 : f32
    %564 = vector.broadcast %cst_400 : f32 to vector<34x128xf32>
    %565 = arith.subf %564, %563 : vector<34x128xf32>
    %566 = arith.mulf %562, %565 : vector<34x128xf32>
    %567 = arith.mulf %548, %566 : vector<34x128xf32>
    %cst_401 = arith.constant 1.000000e+00 : f32
    %568 = vector.broadcast %cst_401 : f32 to vector<34x128xf32>
    %569 = arith.addf %568, %567 : vector<34x128xf32>
    %570 = arith.mulf %519, %569 : vector<34x128xf32>
    %c1_402 = arith.constant 1 : index
    %c0_403 = arith.constant 0 : index
    %c0_404 = arith.constant 0 : index
    %571 = vector.load %arg17[%c1_402, %c0_403, %c0_404] : memref<2x128x32xf32, #tpu.memory_space<vmem>>, vector<1x128x32xf32>
    %572 = vector.shape_cast %571 : vector<1x128x32xf32> to vector<128x32xf32>
    %cst_405 = arith.constant dense<0.000000e+00> : vector<34x32xf32>
    %573 = tpu.matmul %570, %572, %cst_405 {dimension_numbers = #tpu.dot_dimension_numbers<[1], [0], [0], [1], [0, 0, 1, 1], [], []>} : vector<34x128xf32>, vector<128x32xf32>, vector<34x32xf32> -> vector<34x32xf32>
    %c1_406 = arith.constant 1 : index
    %c0_407 = arith.constant 0 : index
    %c0_408 = arith.constant 0 : index
    %574 = vector.load %arg18[%c1_406, %c0_407, %c0_408] : memref<2x1x32xf32, #tpu.memory_space<vmem>>, vector<1x1x32xf32>
    %575 = vector.shape_cast %574 : vector<1x1x32xf32> to vector<1x32xf32>
    %576 = vector.broadcast %575 : vector<1x32xf32> to vector<34x32xf32>
    %577 = arith.addf %573, %576 : vector<34x32xf32>
    %578 = arith.addf %484, %577 : vector<34x32xf32>
    %579 = vector.extract_strided_slice %578 {offsets = [0, 0], sizes = [8, 32], strides = [1, 1]} : vector<34x32xf32> to vector<8x32xf32>
    %c0_409 = arith.constant 0 : index
    %c0_410 = arith.constant 0 : index
    %580 = vector.load %arg19[%c0_409, %c0_410] : memref<32x128xf32, #tpu.memory_space<vmem>>, vector<32x128xf32>
    %cst_411 = arith.constant dense<0.000000e+00> : vector<8x128xf32>
    %581 = tpu.matmul %579, %580, %cst_411 {dimension_numbers = #tpu.dot_dimension_numbers<[1], [0], [0], [1], [0, 0, 1, 1], [], []>} : vector<8x32xf32>, vector<32x128xf32>, vector<8x128xf32> -> vector<8x128xf32>
    %c0_412 = arith.constant 0 : index
    %c0_413 = arith.constant 0 : index
    %582 = vector.load %arg20[%c0_412, %c0_413] : memref<1x128xf32, #tpu.memory_space<vmem>>, vector<1x128xf32>
    %583 = vector.broadcast %582 : vector<1x128xf32> to vector<8x128xf32>
    %584 = arith.addf %581, %583 : vector<8x128xf32>
    %cst_414 = arith.constant dense<0xFF800000> : vector<8xf32>
    %585 = vector.multi_reduction <maximumf>, %584, %cst_414 [1] : vector<8x128xf32> to vector<8xf32>
    %586 = vector.shape_cast %585 : vector<8xf32> to vector<8x1xf32>
    %587 = vector.broadcast %586 : vector<8x1xf32> to vector<8x128xf32>
    %588 = arith.subf %584, %587 : vector<8x128xf32>
    %589 = math.exp %588 : vector<8x128xf32>
    %cst_415 = arith.constant dense<0.000000e+00> : vector<8xf32>
    %590 = vector.multi_reduction <add>, %589, %cst_415 [1] : vector<8x128xf32> to vector<8xf32>
    %591 = vector.shape_cast %590 : vector<8xf32> to vector<8x1xf32>
    %592 = tpu.reciprocal %591 {approx = true} : vector<8x1xf32> -> vector<8x1xf32>
    %593 = vector.broadcast %592 : vector<8x1xf32> to vector<8x128xf32>
    %594 = arith.mulf %589, %593 : vector<8x128xf32>
    %c0_416 = arith.constant 0 : index
    %c0_417 = arith.constant 0 : index
    %595 = vector.load %arg21[%c0_416, %c0_417] : memref<8x128xf32, #tpu.memory_space<vmem>>, vector<8x128xf32>
    tpu.vector_store %arg21[%c0_416, %c0_417], %594 {strides = array<i32>} : memref<8x128xf32, #tpu.memory_space<vmem>>, vector<8x128xf32>,
    return
  }
}

</mosaic_0001>

<bundles_post_ra>
// kernel: vit_forward.1
= control target key start
LH: loop header
LB: loop body
LE: loop exit
PB: predicated region body
PF: predicated region fallthrough
CT: control target
= control target key end

     0   :  { %vm128_vm0 = vcmask 523264   ;;  %vm178_vm1 = vcmask 261120   ;;  %vm191_vm2 = vcmask 254976   ;;  %v4901_v43 = vmov 32.0   ;;  %s6734_s1 = inlined_call_operand.vmem [shape: f32[64,32], index: 1, kind: input, shape index: {}]   ;;  %s6735_s0 = inlined_call_operand.vmem [shape: f32[34,64], index: 0, kind: input, shape index: {}]   ;;  %s6736_s2 = inlined_call_operand.vmem [shape: f32[34,32], index: 2, kind: input, shape index: {}]   ;;  %s6737_s3 = inlined_call_operand.vmem [shape: f32[2,1,32], index: 3, kind: input, shape index: {}]   ;;  %s6738_s4 = inlined_call_operand.vmem [shape: f32[2,1,32], index: 4, kind: input, shape index: {}]   ;;  %s6739_s5 = inlined_call_operand.vmem [shape: f32[2,4,32,8], index: 5, kind: input, shape index: {}]   ;;  %s6740_s7 = inlined_call_operand.vmem [shape: f32[2,4,32,8], index: 7, kind: input, shape index: {}]   ;;  %s6741_s6 = inlined_call_operand.vmem [shape: f32[2,4,1,8], index: 6, kind: input, shape index: {}]   ;;  %s6742_s9 = inlined_call_operand.vmem [shape: f32[2,4,32,8], index: 9, kind: input, shape index: {}]   ;;  %s6743_s8 = inlined_call_operand.vmem [shape: f32[2,4,1,8], index: 8, kind: input, shape index: {}]   ;;  %s6744_s10 = inlined_call_operand.vmem [shape: f32[2,4,1,8], index: 10, kind: input, shape index: {}]   ;;  %s6745_s11 = inlined_call_operand.vmem [shape: f32[2,4,8,32], index: 11, kind: input, shape index: {}]   ;;  %s6746_s12 = inlined_call_operand.vmem [shape: f32[2,1,32], index: 12, kind: input, shape index: {}]   ;;  %s6747_s13 = inlined_call_operand.vmem [shape: f32[2,1,32], index: 13, kind: input, shape index: {}]   ;;  %s6748_s14 = inlined_call_operand.vmem [shape: f32[2,1,32], index: 14, kind: input, shape index: {}]   ;;  %s6749_s16 = inlined_call_operand.vmem [shape: f32[2,1,128], index: 16, kind: input, shape index: {}]   ;;  %s6750_s15 = inlined_call_operand.vmem [shape: f32[2,32,128], index: 15, kind: input, shape index: {}]   ;;  %s6751_s18 = inlined_call_operand.vmem [shape: f32[2,1,32], index: 18, kind: input, shape index: {}]   ;;  %s6752_s17 = inlined_call_operand.vmem [shape: f32[2,128,32], index: 17, kind: input, shape index: {}]   ;;  %s6753_s19 = inlined_call_operand.vmem [shape: f32[32,128], index: 19, kind: input, shape index: {}]   ;;  %s6754_s20 = inlined_call_operand.vmem [shape: f32[1,128], index: 20, kind: input, shape index: {}]   ;;  %s6755_s21 = inlined_call_operand.vmem [shape: f32[8,128], index: 21, kind: output, shape index: {}]  }
   0x1   :  { %6762 = sst [smem:[#allocation2_spill]] %s6734_s1  ;;  %4675 = vrcp.f32 %v4901_v43  ;;  %v381_v50 = vld [vmem:[%s6740_s7 + $0x18] sm:$0xff]  ;;  %v380_v53 = vld [vmem:[%s6740_s7 + $0x10] sm:$0xff]  ;;  %v379_v56 = vld [vmem:[%s6740_s7 + $0x8] sm:$0xff] }
   0x2   :  { %6763 = sst [smem:[#allocation3_spill]] %s6735_s0  ;;  %398 = vmatpush.msra.mxu2 %v381_v50  ;;  %v378_v59 = vld [vmem:[%s6740_s7] sm:$0xff]  ;;  %v421_v43 = vld [vmem:[%s6742_s9 + $0x18] sm:$0xff]  ;;  %v419_v50 = vld [vmem:[%s6742_s9 + $0x8] sm:$0xff] }
   0x3   :  { %6764 = sst [smem:[#allocation4_spill]] %s6736_s2 }
   0x4   :  { %6765 = sst [smem:[#allocation5_spill]] %s6737_s3  ;;  %399 = vmatpush.msra.mxu2 %v380_v53 }
   0x5   :  { %6766 = sst [smem:[#allocation6_spill]] %s6738_s4 }
   0x6   :  { %6767 = sst [smem:[#allocation7_spill]] %s6739_s5  ;;  %400 = vmatpush.msra.mxu2 %v379_v56 }
   0x7   :  { %s6768_s26 = sld [smem:[#allocation2_spill]]  ;;  %v4676_v44 = vpop.eup %4675 }
   0x8   :  { %s6769_s28 = sld [smem:[#allocation3_spill]]  ;;  %v196_v45 = vmul.f32 32.0, %v4676_v44  ;;  %vm200_vm3 = vweird.f32 %v4676_v44  ;;  %401 = vmatpush.msra.mxu2 %v378_v59 }
   0x9   :  { %s6770_s2 = sld [smem:[#allocation4_spill]] }
   0xa   :  { %v197_v46 = vsub.f32 1.0, %v196_v45  ;;  %s6771_s22 = sld [smem:[#allocation7_spill]] }
   0xb   :  { %s6772_s24 = sld [smem:[#allocation5_spill]] }
   0xc   :  { %v198_v47 = vmul.f32 %v4676_v44, %v197_v46  ;;  %s6773_s27 = sld [smem:[#allocation6_spill]] }
   0xd   :  { %v122_v0 = vld [vmem:[%s6768_s26 + $0x38] sm:$0xff]  ;;  %v121_v1 = vld [vmem:[%s6768_s26 + $0x30] sm:$0xff]  ;;  %v120_v2 = vld [vmem:[%s6768_s26 + $0x28] sm:$0xff] }
   0xe   :  { %152 = vmatpush.msra.mxu0 %v122_v0  ;;  %v119_v3 = vld [vmem:[%s6768_s26 + $0x20] sm:$0xff]  ;;  %v118_v4 = vld [vmem:[%s6768_s26 + $0x18] sm:$0xff]  ;;  %v117_v5 = vld [vmem:[%s6768_s26 + $0x10] sm:$0xff]  ;;  %v199_v48 = vadd.f32 %v4676_v44, %v198_v47 }
   0xf   :  { %v116_v6 = vld [vmem:[%s6768_s26 + $0x8] sm:$0xff]  ;;  %v115_v7 = vld [vmem:[%s6768_s26] sm:$0xff]  ;;  %v112_v10 = vld [vmem:[%s6769_s28 + $0x10] sm:$0xff] }
  0x10   :  { %153 = vmatpush.msra.mxu0 %v121_v1  ;;  %v110_v8 = vld [vmem:[%s6769_s28] sm:$0xff]  ;;  %v111_v9 = vld [vmem:[%s6769_s28 + $0x8] sm:$0xff]  ;;  %v113_v11 = vld [vmem:[%s6769_s28 + $0x18] sm:$0xff]  ;;  %v5115_v54 = vsel %vm200_vm3, %v4676_v44, %v199_v48 }
  0x11   :  { %v114_v12 = vld [vmem:[%s6769_s28 + $0x20] sm:$0x3]  ;;  %v124_v17 = vld [vmem:[%s6770_s2 + $0x8] sm:$0xff]  ;;  %v125_v23 = vld [vmem:[%s6770_s2 + $0x10] sm:$0xff] }
  0x12   :  { %154 = vmatpush.msra.mxu0 %v120_v2  ;;  %v123_v13 = vld [vmem:[%s6770_s2] sm:$0xff]  ;;  %v126_v29 = vld [vmem:[%s6770_s2 + $0x18] sm:$0xff]  ;;  %v325_v52 = vld [vmem:[%s6771_s22 + $0x10] sm:$0xff] }
  0x13   :  { %v127_v37 = vld [vmem:[%s6770_s2 + $0x20] sm:$0x3]  ;;  %v326_v49 = vld [vmem:[%s6771_s22 + $0x18] sm:$0xff]  ;;  %v324_v55 = vld [vmem:[%s6771_s22 + $0x8] sm:$0xff] }
  0x14   :  { %155 = vmatpush.msra.mxu0 %v119_v3  ;;  %358 = vmatpush.msra.mxu1 %v326_v49  ;;  %v323_v58 = vld [vmem:[%s6771_s22] sm:$0xff]  ;;  %v420_v44 = vld [vmem:[%s6742_s9 + $0x10] sm:$0xff] }
  0x15   :  { %4624 = vmatpush.msra.mxu3 %v326_v49 }
  0x16   :  { %156 = vmatpush.msra.mxu0 %v118_v4  ;;  %359 = vmatpush.msra.mxu1 %v325_v52 }
  0x17   :  { %4625 = vmatpush.msra.mxu3 %v325_v52 }
  0x18   :  { %157 = vmatpush.msra.mxu0 %v117_v5  ;;  %360 = vmatpush.msra.mxu1 %v324_v55 }
  0x19   :  { %4626 = vmatpush.msra.mxu3 %v324_v55 }
  0x1a   :  { %158 = vmatpush.msra.mxu0 %v116_v6  ;;  %361 = vmatpush.msra.mxu1 %v323_v58 }
  0x1b   :  { %4627 = vmatpush.msra.mxu3 %v323_v58 }
  0x1c   :  { %159 = vmatpush.msra.mxu0 %v115_v7 }
  0x1d   :  { %4171 = vmatmul.msk.f32.vlgmr.msra.gmra.mxu0 %vm128_vm0, %v110_v8  ;;  %438 = vmatpush.msrb.mxu3 %v421_v43 }
  0x1f   :  { %439 = vmatpush.msrb.mxu3 %v420_v44 }
  0x21   :  { %440 = vmatpush.msrb.mxu3 %v419_v50 }
  0x25   :  { %4172 = vmatmul.msk.f32.gmra.mxu0 %vm128_vm0, %v111_v9 }
  0x2d   :  { %4173 = vmatmul.msk.f32.gmra.mxu0 %vm128_vm0, %v112_v10 }
  0x35   :  { %4174 = vmatmul.msk.f32.gmra.mxu0 %vm128_vm0, %v113_v11 }
  0x3d   :  { %4175 = vmatmul.msk.f32.gmra.mxu0 %vm128_vm0, %v114_v12 }
  0x9a   :  { %v161_v14 = vpop.f32.mrf.mxu0 }
  0x9b   :  { %v5056_v15 = vadd.f32 %v161_v14, %v123_v13 }
  0x9d   :  { %v179_v16 = vsel %vm178_vm1, %v5056_v15, 0.0  ;;  %v207_v18 = vmul.f32 %v5056_v15, %v5056_v15 }
  0x9e   :  { %180 = vadd.xlane.f32.xlu0 %v179_v16 }
  0x9f   :  { %v212_v22 = vsel %vm178_vm1, %v207_v18, 0.0 }
  0xa2   :  { %v164_v19 = vpop.f32.mrf.mxu0 }
  0xa3   :  { %v5065_v20 = vadd.f32 %v164_v19, %v124_v17 }
  0xa5   :  { %v182_v21 = vsel %vm178_vm1, %v5065_v20, 0.0  ;;  %v208_v24 = vmul.f32 %v5065_v20, %v5065_v20 }
  0xa6   :  { %183 = vadd.xlane.f32.xlu1 %v182_v21  ;;  %213 = vadd.xlane.f32.xlu0 %v212_v22 }
  0xa7   :  { %v215_v28 = vsel %vm178_vm1, %v208_v24, 0.0 }
  0xaa   :  { %v167_v25 = vpop.f32.mrf.mxu0 }
  0xab   :  { %v5075_v26 = vadd.f32 %v167_v25, %v125_v23 }
  0xad   :  { %v185_v27 = vsel %vm178_vm1, %v5075_v26, 0.0  ;;  %v209_v30 = vmul.f32 %v5075_v26, %v5075_v26 }
  0xae   :  { %186 = vadd.xlane.f32.xlu2 %v185_v27  ;;  %216 = vadd.xlane.f32.xlu1 %v215_v28 }
  0xaf   :  { %v218_v33 = vsel %vm178_vm1, %v209_v30, 0.0 }
  0xb2   :  { %v170_v31 = vpop.f32.mrf.mxu0 }
  0xb3   :  { %v5085_v32 = vadd.f32 %v170_v31, %v126_v29 }
  0xb5   :  { %v188_v34 = vsel %vm178_vm1, %v5085_v32, 0.0  ;;  %v210_v35 = vmul.f32 %v5085_v32, %v5085_v32 }
  0xb6   :  { %219 = vadd.xlane.f32.xlu2 %v218_v33  ;;  %189 = vadd.xlane.f32.xlu0 %v188_v34  ;;  %v5155_v34 = vld [vmem:[%s6772_s24] ss:$0 sm:$0xff] }
  0xb7   :  { %v221_v36 = vsel %vm178_vm1, %v210_v35, 0.0 }
  0xb8   :  { %222 = vadd.xlane.f32.xlu1 %v221_v36 }
  0xba   :  { %v173_v38 = vpop.f32.mrf.mxu0 }
  0xbb   :  { %v5096_v39 = vadd.f32 %v173_v38, %v127_v37 }
  0xbd   :  { %v192_v40 = vsel %vm191_vm2, %v5096_v39, 0.0  ;;  %v211_v41 = vmul.f32 %v5096_v39, %v5096_v39 }
  0xbe   :  { %193 = vadd.xlane.f32.xlu2 %v192_v40  ;;  %v5163_v40 = vld [vmem:[%s6773_s27] ss:$0 sm:$0xff] }
  0xbf   :  { %v224_v42 = vsel %vm191_vm2, %v211_v41, 0.0 }
  0xc0   :  { %225 = vadd.xlane.f32.xlu0 %v224_v42 }
 0x111   :  { %v181_v51 = vpop.xlane.xlu0 %180 }
 0x112   :  { %v202_v57 = vmul.f32 %v5115_v54, %v181_v51 }
 0x114   :  { %v232_v62 = vmul.f32 %v202_v57, %v202_v57  ;;  %v242_v33 = vsub.f32 %v5056_v15, %v202_v57 }
 0x119   :  { %v184_v60 = vpop.xlane.xlu1 %183  ;;  %v214_v61 = vpop.xlane.xlu0 %213 }
 0x11a   :  { %v227_v63 = vmul.f32 %v214_v61, %v5115_v54  ;;  %v5132_v1 = vmul.f32 %v5115_v54, %v184_v60  ;;  %v418_v61 = vld [vmem:[%s6742_s9] sm:$0xff] }
 0x11b   :  { %441 = vmatpush.msrb.mxu3 %v418_v61  ;;  %v4220_v61 = vld [vmem:[%s6740_s7 + $0x38] sm:$0xff] }
 0x11c   :  { %v237_v0 = vsub.f32 %v227_v63, %v232_v62  ;;  %v233_v5 = vmul.f32 %v5132_v1, %v5132_v1  ;;  %v243_v59 = vsub.f32 %v5065_v20, %v5132_v1 }
 0x11e   :  { %v247_v2 = vadd.f32 1e-05, %v237_v0 }
 0x120   :  { %4677 = vrsqrt.f32 %v247_v2  ;;  %vm258_vm5 = vweird.f32 %v247_v2 }
 0x121   :  { %v187_v3 = vpop.xlane.xlu2 %186  ;;  %v217_v4 = vpop.xlane.xlu1 %216 }
 0x122   :  { %v228_v6 = vmul.f32 %v217_v4, %v5115_v54  ;;  %v5138_v9 = vmul.f32 %v5115_v54, %v187_v3 }
 0x124   :  { %v238_v7 = vsub.f32 %v228_v6, %v233_v5  ;;  %v234_v16 = vmul.f32 %v5138_v9, %v5138_v9 }
 0x126   :  { %v4678_v8 = vpop.eup %4677  ;;  %v248_v10 = vadd.f32 1e-05, %v238_v7 }
 0x127   :  { %v253_v11 = vmul.f32 %v4678_v8, %v247_v2  ;;  %vm259_vm4 = vweird.f32 %v4678_v8 }
 0x128   :  { %4679 = vrsqrt.f32 %v248_v10  ;;  %vm260_vm6 = vmor %vm258_vm5, %vm259_vm4  ;;  %vm268_vm8 = vweird.f32 %v248_v10  ;;  %vm458_vm5 = vcmask 64512  }
 0x129   :  { %v254_v12 = vmul.f32 %v4678_v8, %v253_v11  ;;  %v220_v13 = vpop.xlane.xlu2 %219  ;;  %v190_v14 = vpop.xlane.xlu0 %189 }
 0x12a   :  { %v229_v17 = vmul.f32 %v220_v13, %v5115_v54  ;;  %v5144_v18 = vmul.f32 %v5115_v54, %v190_v14 }
 0x12b   :  { %v255_v19 = vmul.f32 0.5, %v254_v12  ;;  %v223_v21 = vpop.xlane.xlu1 %222  ;;  %v244_v12 = vsub.f32 %v5075_v26, %v5138_v9 }
 0x12c   :  { %v239_v22 = vsub.f32 %v229_v17, %v234_v16  ;;  %v235_v23 = vmul.f32 %v5144_v18, %v5144_v18  ;;  %v230_v24 = vmul.f32 %v223_v21, %v5115_v54 }
 0x12d   :  { %v256_v25 = vsub.f32 1.5, %v255_v19  ;;  %v245_v19 = vsub.f32 %v5085_v32, %v5144_v18 }
 0x12e   :  { %v4680_v27 = vpop.eup %4679  ;;  %v5149_v28 = vadd.f32 1e-05, %v239_v22  ;;  %v240_v29 = vsub.f32 %v230_v24, %v235_v23 }
 0x12f   :  { %v257_v30 = vmul.f32 %v4678_v8, %v256_v25  ;;  %v263_v31 = vmul.f32 %v4680_v27, %v248_v10  ;;  %vm269_vm7 = vweird.f32 %v4680_v27 }
 0x130   :  { %4681 = vrsqrt.f32 %v5149_v28  ;;  %v5158_v35 = vadd.f32 1e-05, %v240_v29  ;;  %vm270_vm9 = vmor %vm268_vm8, %vm269_vm7  ;;  %vm278_vm11 = vweird.f32 %v5149_v28 }
 0x131   :  { %v261_v36 = vsel %vm260_vm6, %v4678_v8, %v257_v30  ;;  %v264_v37 = vmul.f32 %v4680_v27, %v263_v31  ;;  %v194_v38 = vpop.xlane.xlu2 %193  ;;  %vm593_vm6 = vcmask 1041408  }
 0x132   :  { %v302_v41 = vmul.f32 %v261_v36, %v242_v33  ;;  %4683 = vrsqrt.f32 %v5158_v35  ;;  %v5167_v42 = vmul.f32 %v5115_v54, %v194_v38  ;;  %vm288_vm12 = vweird.f32 %v5158_v35  ;;  %v4208_v38 = vld [vmem:[%s6771_s22 + $0x28] sm:$0xff] }
 0x133   :  { %v265_v45 = vmul.f32 0.5, %v264_v37  ;;  %v226_v46 = vpop.xlane.xlu0 %225  ;;  %v4210_v37 = vld [vmem:[%s6771_s22 + $0x38] sm:$0xff] }
 0x134   :  { %v310_v47 = vmul.f32 %v5155_v34, %v302_v41  ;;  %v236_v48 = vmul.f32 %v5167_v42, %v5167_v42  ;;  %v231_v49 = vmul.f32 %v226_v46, %v5115_v54  ;;  %v246_v30 = vsub.f32 %v5096_v39, %v5167_v42 }
 0x135   :  { %v266_v51 = vsub.f32 1.5, %v265_v45 }
 0x136   :  { %v4682_v52 = vpop.eup %4681  ;;  %v5183_v53 = vadd.f32 %v5163_v40, %v310_v47  ;;  %v241_v55 = vsub.f32 %v231_v49, %v236_v48  ;;  %v4639_v47 = vld [vmem:[%s6743_s8] ss:$0 sm:$0xff] }
 0x137   :  { %v267_v56 = vmul.f32 %v4680_v27, %v266_v51  ;;  %v273_v57 = vmul.f32 %v4682_v52, %v5149_v28  ;;  %vm279_vm10 = vweird.f32 %v4682_v52 }
 0x138   :  { %v4684_v58 = vpop.eup %4683  ;;  %v251_v60 = vadd.f32 1e-05, %v241_v55  ;;  %4176 = vmatmul.msk.f32.vlgmr.msra.gmra.mxu1 %vm178_vm1, %v5183_v53  ;;  %4181 = vmatmul.msk.f32.vlgmr.msra.gmra.mxu2 %vm178_vm1, %v5183_v53  ;;  %vm280_vm14 = vmor %vm278_vm11, %vm279_vm10 }
 0x139   :  { %v271_v62 = vsel %vm270_vm9, %v4680_v27, %v267_v56  ;;  %v274_v63 = vmul.f32 %v4682_v52, %v273_v57  ;;  %v283_v0 = vmul.f32 %v4684_v58, %v5158_v35  ;;  %vm289_vm13 = vweird.f32 %v4684_v58 }
 0x13a   :  { %v303_v2 = vmul.f32 %v271_v62, %v243_v59  ;;  %4685 = vrsqrt.f32 %v251_v60  ;;  %vm290_vm15 = vmor %vm288_vm12, %vm289_vm13  ;;  %vm298_vm0 = vweird.f32 %v251_v60  ;;  %v4638_v59 = vld [vmem:[%s6741_s6] ss:$0 sm:$0xff]  ;;  %v4230_v62 = vld [vmem:[%s6742_s9 + $0x38] sm:$0xff]  ;;  %vm521_vm13 = vcmask 277504  }
 0x13b   :  { %v275_v1 = vmul.f32 0.5, %v274_v63  ;;  %v284_v3 = vmul.f32 %v4684_v58, %v283_v0 }
 0x13c   :  { %v311_v4 = vmul.f32 %v5155_v34, %v303_v2 }
 0x13d   :  { %v276_v5 = vsub.f32 1.5, %v275_v1  ;;  %v285_v6 = vmul.f32 0.5, %v284_v3  ;;  %v4219_v1 = vld [vmem:[%s6740_s7 + $0x30] sm:$0xff] }
 0x13e   :  { %v5198_v7 = vadd.f32 %v5163_v40, %v311_v4  ;;  %v4229_v3 = vld [vmem:[%s6742_s9 + $0x30] sm:$0xff]  ;;  %v4218_v4 = vld [vmem:[%s6740_s7 + $0x28] sm:$0xff] }
 0x13f   :  { %v277_v8 = vmul.f32 %v4682_v52, %v276_v5  ;;  %v286_v10 = vsub.f32 1.5, %v285_v6  ;;  %v4228_v5 = vld [vmem:[%s6742_s9 + $0x28] sm:$0xff]  ;;  %v4217_v6 = vld [vmem:[%s6740_s7 + $0x20] sm:$0xff] }
 0x140   :  { %v4686_v11 = vpop.eup %4685  ;;  %4177 = vmatmul.msk.f32.gmra.mxu1 %vm178_vm1, %v5198_v7  ;;  %4182 = vmatmul.msk.f32.gmra.mxu2 %vm178_vm1, %v5198_v7 }
 0x141   :  { %v281_v13 = vsel %vm280_vm14, %v4682_v52, %v277_v8  ;;  %v287_v14 = vmul.f32 %v4684_v58, %v286_v10  ;;  %v293_v16 = vmul.f32 %v4686_v11, %v251_v60  ;;  %vm299_vm3 = vweird.f32 %v4686_v11  ;;  %v4227_v8 = vld [vmem:[%s6742_s9 + $0x20] sm:$0xff] }
 0x142   :  { %v304_v17 = vmul.f32 %v281_v13, %v244_v12  ;;  %vm300_vm4 = vmor %vm298_vm0, %vm299_vm3  ;;  %v4640_v13 = vld [vmem:[%s6744_s10] ss:$0 sm:$0xff]  ;;  %vm534_vm0 = vcmask 271360  }
 0x143   :  { %v291_v21 = vsel %vm290_vm15, %v4684_v58, %v287_v14  ;;  %v294_v22 = vmul.f32 %v4686_v11, %v293_v16 }
 0x144   :  { %v312_v23 = vmul.f32 %v5155_v34, %v304_v17  ;;  %v305_v9 = vmul.f32 %v291_v21, %v245_v19 }
 0x145   :  { %v295_v24 = vmul.f32 0.5, %v294_v22 }
 0x146   :  { %v5212_v25 = vadd.f32 %v5163_v40, %v312_v23  ;;  %v313_v27 = vmul.f32 %v5155_v34, %v305_v9 }
 0x147   :  { %v296_v28 = vsub.f32 1.5, %v295_v24  ;;  %v68_v24 = vlaneseq }
 0x148   :  { %v5216_v29 = vadd.f32 %v5163_v40, %v313_v27  ;;  %4178 = vmatmul.msk.f32.gmra.mxu1 %vm178_vm1, %v5212_v25  ;;  %4183 = vmatmul.msk.f32.gmra.mxu2 %vm178_vm1, %v5212_v25 }
 0x149   :  { %v297_v18 = vmul.f32 %v4686_v11, %v296_v28  ;;  %v75_v27 = vand.u32 127, %v68_v24  ;;  %v69_v28 = vshrl.u32 %v68_v24, 7 }
 0x14a   :  { %4179 = vmatmul.msk.f32.vlgmr.msra.gmra.mxu3 %vm178_vm1, %v5216_v29 }
 0x14b   :  { %v301_v31 = vsel %vm300_vm4, %v4686_v11, %v297_v18  ;;  %652 = vmatpush.msra.mxu3 %v4210_v37  ;;  %vm96_vm7 = vcmp.ge.s32.totalorder %v75_v27, 18  ;;  %vm86_vm8 = vcmp.lt.s32.totalorder %v69_v28, 2  ;;  %v4902_v18 = vmov 0  }
 0x14c   :  { %v306_v33 = vmul.f32 %v301_v31, %v246_v30  ;;  %v97_v30 = vsel %vm96_vm7, 1, %v4902_v18  ;;  %vm98_vm9 = vcmp.lt.s32.totalorder %v75_v27, 2  ;;  %v91_v31 = vsel %vm86_vm8, %v69_v28, 0 }
 0x14d   :  { %v4903_v37 = vmov -1e+09  }
 0x14e   :  { %v314_v35 = vmul.f32 %v5155_v34, %v306_v33  ;;  %v4209_v34 = vld [vmem:[%s6771_s22 + $0x30] sm:$0xff]  ;;  %v99_v33 = vsel %vm98_vm9, %v75_v27, %v97_v30 }
 0x14f   :  { %653 = vmatpush.msra.mxu3 %v4209_v34  ;;  %vm100_vm10 = vcmp.eq.s32.totalorder %v91_v31, %v99_v33  ;;  %vm4168_vm11 = vcmp.eq.s32.totalorder %v99_v33, 0  ;;  %vm4169_vm15 = vcmp.eq.s32.totalorder %v99_v33, 1 }
 0x150   :  { %v5228_v36 = vadd.f32 %v5163_v40, %v314_v35  ;;  %4184 = vmatmul.msk.f32.gmra.mxu2 %vm178_vm1, %v5216_v29  ;;  %v4207_v40 = vld [vmem:[%s6771_s22 + $0x20] sm:$0xff]  ;;  %v71_v35 = vadd.s32 16, %v69_v28  ;;  %v5340_v34 = vsel %vm100_vm10, 0.0, %v4903_v37 }
 0x151   :  { %654 = vmatpush.msra.mxu3 %v4208_v38  ;;  %v5342_v38 = vsel %vm4168_vm11, 0.0, %v4903_v37 }
 0x152   :  { %4180 = vmatmul.msk.f32.gmra.mxu3 %vm178_vm1, %v5228_v36  ;;  %vm78_vm12 = vcmp.ge.s32.totalorder %v71_v35, 18 }
 0x153   :  { %655 = vmatpush.msra.mxu3 %v4207_v40 }
 0x158   :  { %4185 = vmatmul.msk.f32.gmra.mxu2 %vm178_vm1, %v5228_v36 }
 0x15a   :  { %4186 = vmatmul.msk.f32.vlgmr.msrb.gmra.mxu3 %vm178_vm1, %v5183_v53 }
 0x162   :  { %4187 = vmatmul.msk.f32.gmra.mxu3 %vm178_vm1, %v5198_v7 }
 0x16a   :  { %4188 = vmatmul.msk.f32.gmra.mxu3 %vm178_vm1, %v5212_v25 }
 0x172   :  { %4189 = vmatmul.msk.f32.gmra.mxu3 %vm178_vm1, %v5216_v29 }
 0x17a   :  { %4190 = vmatmul.msk.f32.gmra.mxu3 %vm178_vm1, %v5228_v36 }
 0x182   :  { %4212 = vmatmul.msk.f32.vlgmr.msra.gmra.mxu3 %vm178_vm1, %v5183_v53 }
 0x18a   :  { %4213 = vmatmul.msk.f32.gmra.mxu3 %vm178_vm1, %v5198_v7 }
 0x192   :  { %4214 = vmatmul.msk.f32.gmra.mxu3 %vm178_vm1, %v5212_v25 }
 0x19a   :  { %4215 = vmatmul.msk.f32.gmra.mxu3 %vm178_vm1, %v5216_v29 }
 0x1a2   :  { %4216 = vmatmul.msk.f32.gmra.mxu3 %vm178_vm1, %v5228_v36 }
 0x1b5   :  { %v363_v51 = vpop.f32.mrf.mxu1 }
 0x1b6   :  { %v364_v0 = vadd.f32 %v4638_v59, %v363_v51 }
 0x1bb   :  { %v403_v41 = vpop.f32.mrf.mxu2 }
 0x1bc   :  { %v404_v60 = vadd.f32 %v4639_v47, %v403_v41 }
 0x1bd   :  { %v366_v58 = vpop.f32.mrf.mxu1 }
 0x1be   :  { %v367_v2 = vadd.f32 %v4638_v59, %v366_v58 }
 0x1c3   :  { %v406_v42 = vpop.f32.mrf.mxu2 }
 0x1c4   :  { %v407_v57 = vadd.f32 %v4639_v47, %v406_v42  ;;  %v83_v42 = vsel %vm78_vm12, 1, %v4902_v18 }
 0x1c5   :  { %v369_v10 = vpop.f32.mrf.mxu1  ;;  %vm102_vm14 = vcmp.eq.s32.totalorder %v83_v42, %v99_v33 }
 0x1c6   :  { %v370_v12 = vadd.f32 %v4638_v59, %v369_v10 }
 0x1cb   :  { %v409_v43 = vpop.f32.mrf.mxu2 }
 0x1cc   :  { %v410_v55 = vadd.f32 %v4639_v47, %v409_v43 }
 0x1cd   :  { %v372_v44 = vpop.f32.mrf.mxu3 }
 0x1ce   :  { %v373_v17 = vadd.f32 %v4638_v59, %v372_v44 }
 0x1d3   :  { %v412_v45 = vpop.f32.mrf.mxu2 }
 0x1d4   :  { %v413_v52 = vadd.f32 %v4639_v47, %v412_v45 }
 0x1d5   :  { %v5268_v46 = vpop.f32.mrf.mxu3 }
 0x1d6   :  { %v376_v9 = vadd.f32 %v4638_v59, %v5268_v46 }
 0x1db   :  { %v415_v48 = vpop.f32.mrf.mxu2 }
 0x1dc   :  { %v416_v49 = vadd.f32 %v4639_v47, %v415_v48  ;;  %v5348_v47 = vsel %vm102_vm14, 0.0, %v4903_v37 }
 0x1dd   :  { %v443_v50 = vpop.f32.mrf.mxu3 }
 0x1de   :  { %4191 = vmatpush.xpose.msk.msrb.mxu0 %vm458_vm5, %v416_v49  ;;  %4628 = vmatpush.xpose.msk.msrb.mxu1 %vm458_vm5, %v416_v49  ;;  %v444_v23 = vadd.f32 %v4640_v13, %v443_v50 }
 0x1e2   :  { %4192 = vmatpush.xpose.msk.msrb.mxu0 %vm458_vm5, %v413_v52  ;;  %4629 = vmatpush.xpose.msk.msrb.mxu1 %vm458_vm5, %v413_v52  ;;  %v5352_v52 = vsel %vm4169_vm15, 0.0, %v4903_v37 }
 0x1e5   :  { %v446_v56 = vpop.f32.mrf.mxu3 }
 0x1e6   :  { %4193 = vmatpush.xpose.msk.msrb.mxu0 %vm458_vm5, %v410_v55  ;;  %4630 = vmatpush.xpose.msk.msrb.mxu1 %vm458_vm5, %v410_v55  ;;  %v447_v22 = vadd.f32 %v4640_v13, %v446_v56 }
 0x1ea   :  { %4194 = vmatpush.xpose.msk.msrb.mxu0 %vm458_vm5, %v407_v57  ;;  %4631 = vmatpush.xpose.msk.msrb.mxu1 %vm458_vm5, %v407_v57 }
 0x1ed   :  { %v449_v63 = vpop.f32.mrf.mxu3 }
 0x1ee   :  { %4195 = vmatpush.xpose.msk.msrb.mxu0 %vm458_vm5, %v404_v60  ;;  %4632 = vmatpush.xpose.msk.msrb.mxu1 %vm458_vm5, %v404_v60  ;;  %v450_v21 = vadd.f32 %v4640_v13, %v449_v63 }
 0x1f1   :  { %4196 = vmatmul.msk.f32.vlgmr.msrb.gmra.mxu0 %vm458_vm5, %v364_v0  ;;  %4197 = vmatmul.msk.f32.vlgmr.msrb.gmra.mxu1 %vm458_vm5, %v367_v2  ;;  %v4642_v2 = vld [vmem:[%s6743_s8 + $0x1] ss:$0 sm:$0xff] }
 0x1f2   :  { %694 = vmatpush.msra.mxu0 %v4220_v61  ;;  %736 = vmatpush.msra.mxu1 %v4230_v62 }
 0x1f4   :  { %695 = vmatpush.msra.mxu0 %v4219_v1  ;;  %737 = vmatpush.msra.mxu1 %v4229_v3 }
 0x1f5   :  { %v452_v11 = vpop.f32.mrf.mxu3 }
 0x1f6   :  { %696 = vmatpush.msra.mxu0 %v4218_v4  ;;  %738 = vmatpush.msra.mxu1 %v4228_v5  ;;  %v453_v19 = vadd.f32 %v4640_v13, %v452_v11 }
 0x1f8   :  { %697 = vmatpush.msra.mxu0 %v4217_v6  ;;  %739 = vmatpush.msra.mxu1 %v4227_v8 }
 0x1f9   :  { %4198 = vmatmul.msk.f32.gmra.mxu1 %vm458_vm5, %v370_v12  ;;  %4222 = vmatmul.msk.f32.vlgmr.msra.gmra.mxu0 %vm178_vm1, %v5183_v53 }
 0x1fd   :  { %v455_v14 = vpop.f32.mrf.mxu3 }
 0x1fe   :  { %v456_v16 = vadd.f32 %v4640_v13, %v455_v14  ;;  %v4643_v13 = vld [vmem:[%s6744_s10 + $0x1] ss:$0 sm:$0xff] }
 0x200   :  { %4201 = vmatpush.msk.msrb.mxu2 %vm593_vm6, %v456_v16 }
 0x201   :  { %4199 = vmatmul.msk.f32.gmra.mxu1 %vm458_vm5, %v373_v17  ;;  %4223 = vmatmul.msk.f32.gmra.mxu0 %vm178_vm1, %v5198_v7 }
 0x202   :  { %609 = vmatpush.msrb.mxu2 %v453_v19 }
 0x204   :  { %610 = vmatpush.msrb.mxu2 %v450_v21 }
 0x206   :  { %611 = vmatpush.msrb.mxu2 %v447_v22 }
 0x208   :  { %612 = vmatpush.msrb.mxu2 %v444_v23 }
 0x209   :  { %4200 = vmatmul.msk.f32.gmra.mxu1 %vm458_vm5, %v376_v9  ;;  %4224 = vmatmul.msk.f32.gmra.mxu0 %vm178_vm1, %v5212_v25 }
 0x211   :  { %4225 = vmatmul.msk.f32.gmra.mxu0 %vm178_vm1, %v5216_v29  ;;  %4232 = vmatmul.msk.f32.vlgmr.msra.gmra.mxu1 %vm178_vm1, %v5183_v53 }
 0x219   :  { %4226 = vmatmul.msk.f32.gmra.mxu0 %vm178_vm1, %v5228_v36  ;;  %4233 = vmatmul.msk.f32.gmra.mxu1 %vm178_vm1, %v5198_v7 }
 0x221   :  { %4234 = vmatmul.msk.f32.gmra.mxu1 %vm178_vm1, %v5212_v25 }
 0x229   :  { %4235 = vmatmul.msk.f32.gmra.mxu1 %vm178_vm1, %v5216_v29 }
 0x231   :  { %4236 = vmatmul.msk.f32.gmra.mxu1 %vm178_vm1, %v5228_v36 }
 0x26e   :  { %v506_v40 = vpop.f32.mrf.mxu0  ;;  %v509_v41 = vpop.f32.mrf.mxu1 }
 0x26f   :  { %v507_v43 = vadd.f32 %v506_v40, %v5340_v34  ;;  %v510_v44 = vadd.f32 %v509_v41, %v5342_v38 }
 0x271   :  { %v525_v45 = vsel %vm521_vm13, %v510_v44, -inf  ;;  %v522_v46 = vsel %vm521_vm13, %v507_v43, -inf }
 0x272   :  { %526 = vmax.xlane.f32.xlu2 %v525_v45  ;;  %523 = vmax.xlane.f32.xlu1 %v522_v46 }
 0x276   :  { %v512_v48 = vpop.f32.mrf.mxu1  ;;  %v699_v49 = vpop.f32.mrf.mxu0 }
 0x277   :  { %v513_v50 = vadd.f32 %v512_v48, %v5348_v47  ;;  %v700_v12 = vadd.f32 %v4642_v2, %v699_v49 }
 0x279   :  { %v528_v51 = vsel %vm521_vm13, %v513_v50, -inf }
 0x27a   :  { %529 = vmax.xlane.f32.xlu0 %v528_v51 }
 0x27e   :  { %v515_v55 = vpop.f32.mrf.mxu1  ;;  %v702_v56 = vpop.f32.mrf.mxu0 }
 0x27f   :  { %v516_v57 = vadd.f32 %v515_v55, %v5352_v52  ;;  %v703_v10 = vadd.f32 %v4642_v2, %v702_v56 }
 0x281   :  { %v531_v58 = vsel %vm521_vm13, %v516_v57, -inf }
 0x282   :  { %532 = vmax.xlane.f32.xlu1 %v531_v58 }
 0x286   :  { %v518_v59 = vpop.f32.mrf.mxu1  ;;  %v705_v60 = vpop.f32.mrf.mxu0 }
 0x287   :  { %v519_v61 = vadd.f32 %v518_v59, %v5352_v52  ;;  %v706_v8 = vadd.f32 %v4642_v2, %v705_v60 }
 0x289   :  { %v535_v62 = vsel %vm534_vm0, %v519_v61, -inf }
 0x28a   :  { %536 = vmax.xlane.f32.xlu2 %v535_v62 }
 0x28e   :  { %v708_v63 = vpop.f32.mrf.mxu0  ;;  %v741_v0 = vpop.f32.mrf.mxu1 }
 0x28f   :  { %v709_v5 = vadd.f32 %v4642_v2, %v708_v63  ;;  %v742_v22 = vadd.f32 %v4643_v13, %v741_v0 }
 0x296   :  { %v711_v1 = vpop.f32.mrf.mxu0  ;;  %v744_v3 = vpop.f32.mrf.mxu1 }
 0x297   :  { %v712_v4 = vadd.f32 %v4642_v2, %v711_v1  ;;  %v745_v21 = vadd.f32 %v4643_v13, %v744_v3 }
 0x299   :  { %4237 = vmatpush.xpose.msk.msra.mxu2 %vm458_vm5, %v712_v4 }
 0x29d   :  { %4238 = vmatpush.xpose.msk.msra.mxu2 %vm458_vm5, %v709_v5 }
 0x29e   :  { %v747_v6 = vpop.f32.mrf.mxu1 }
 0x29f   :  { %v748_v19 = vadd.f32 %v4643_v13, %v747_v6 }
 0x2a1   :  { %4239 = vmatpush.xpose.msk.msra.mxu2 %vm458_vm5, %v706_v8 }
 0x2a5   :  { %4240 = vmatpush.xpose.msk.msra.mxu2 %vm458_vm5, %v703_v10  ;;  %v657_v10 = vpop.f32.mrf.mxu3 }
 0x2a6   :  { %v750_v11 = vpop.f32.mrf.mxu1 }
 0x2a7   :  { %v751_v17 = vadd.f32 %v4643_v13, %v750_v11 }
 0x2a9   :  { %4241 = vmatpush.xpose.msk.msra.mxu2 %vm458_vm5, %v700_v12  ;;  %v4641_v12 = vld [vmem:[%s6741_s6 + $0x1] ss:$0 sm:$0xff] }
 0x2ae   :  { %v753_v14 = vpop.f32.mrf.mxu1 }
 0x2af   :  { %v754_v16 = vadd.f32 %v4643_v13, %v753_v14  ;;  %v660_v13 = vpop.f32.mrf.mxu3  ;;  %v658_v14 = vadd.f32 %v4641_v12, %v657_v10 }
 0x2b1   :  { %4247 = vmatpush.msk.msrb.mxu3 %vm593_vm6, %v754_v16  ;;  %v4267_v16 = vld [vmem:[%s6771_s22 + $0x58] sm:$0xff] }
 0x2b3   :  { %903 = vmatpush.msrb.mxu3 %v751_v17  ;;  %v4266_v17 = vld [vmem:[%s6771_s22 + $0x50] sm:$0xff] }
 0x2b5   :  { %904 = vmatpush.msrb.mxu3 %v748_v19  ;;  %v4265_v19 = vld [vmem:[%s6771_s22 + $0x48] sm:$0xff] }
 0x2b7   :  { %905 = vmatpush.msrb.mxu3 %v745_v21  ;;  %v4264_v21 = vld [vmem:[%s6771_s22 + $0x40] sm:$0xff] }
 0x2b9   :  { %906 = vmatpush.msrb.mxu3 %v742_v22  ;;  %v661_v22 = vadd.f32 %v4641_v12, %v660_v13 }
 0x2e5   :  { %v527_v23 = vpop.xlane.xlu2 %526  ;;  %v524_v9 = vpop.xlane.xlu1 %523 }
 0x2e6   :  { %v539_v24 = vsub.f32 %v510_v44, %v527_v23  ;;  %v538_v27 = vsub.f32 %v507_v43, %v524_v9  ;;  %v663_v23 = vpop.f32.mrf.mxu3 }
 0x2e7   :  { %v664_v9 = vadd.f32 %v4641_v12, %v663_v23 }
 0x2e8   :  { %v545_v28 = vmul.f32 1.442695, %v539_v24  ;;  %v543_v18 = vmul.f32 1.442695, %v538_v27 }
 0x2ea   :  { %4687 = vpow2.f32 %v545_v28 }
 0x2eb   :  { %4689 = vpow2.f32 %v543_v18 }
 0x2ed   :  { %v530_v30 = vpop.xlane.xlu0 %529 }
 0x2ee   :  { %v540_v31 = vsub.f32 %v513_v50, %v530_v30  ;;  %v666_v24 = vpop.f32.mrf.mxu3  ;;  %v629_v30 = vld [vmem:[%s6745_s11] sm:$0xff] }
 0x2ef   :  { %v667_v27 = vadd.f32 %v4641_v12, %v666_v24  ;;  %1002 = vmatpush.msrb.mxu1 %v629_v30 }
 0x2f0   :  { %v4688_v33 = vpop.eup %4687  ;;  %v547_v35 = vmul.f32 1.442695, %v540_v31 }
 0x2f1   :  { %v4690_v37 = vpop.eup %4689  ;;  %v556_v40 = vsel %vm521_vm13, %v4688_v33, 0.0 }
 0x2f2   :  { %4691 = vpow2.f32 %v547_v35  ;;  %557 = vadd.xlane.f32.xlu1 %v556_v40  ;;  %v553_v41 = vsel %vm521_vm13, %v4690_v37, 0.0 }
 0x2f3   :  { %554 = vadd.xlane.f32.xlu0 %v553_v41 }
 0x2f5   :  { %v533_v42 = vpop.xlane.xlu1 %532 }
 0x2f6   :  { %v541_v45 = vsub.f32 %v516_v57, %v533_v42  ;;  %v669_v28 = vpop.f32.mrf.mxu3 }
 0x2f7   :  { %v670_v18 = vadd.f32 %v4641_v12, %v669_v28 }
 0x2f8   :  { %v4692_v44 = vpop.eup %4691  ;;  %v549_v43 = vmul.f32 1.442695, %v541_v45 }
 0x2f9   :  { %v559_v46 = vsel %vm521_vm13, %v4692_v44, 0.0 }
 0x2fa   :  { %4693 = vpow2.f32 %v549_v43  ;;  %560 = vadd.xlane.f32.xlu2 %v559_v46 }
 0x2fd   :  { %v537_v48 = vpop.xlane.xlu2 %536 }
 0x2fe   :  { %v542_v49 = vsub.f32 %v519_v61, %v537_v48 }
 0x300   :  { %v4694_v50 = vpop.eup %4693  ;;  %v551_v51 = vmul.f32 1.442695, %v542_v49 }
 0x301   :  { %v562_v55 = vsel %vm521_vm13, %v4694_v50, 0.0 }
 0x302   :  { %4695 = vpow2.f32 %v551_v51  ;;  %563 = vadd.xlane.f32.xlu0 %v562_v55 }
 0x308   :  { %v4696_v56 = vpop.eup %4695 }
 0x309   :  { %v565_v58 = vsel %vm534_vm0, %v4696_v56, 0.0 }
 0x30a   :  { %566 = vadd.xlane.f32.xlu1 %v565_v58 }
 0x365   :  { %v558_v57 = vpop.xlane.xlu1 %557 }
 0x366   :  { %v555_v59 = vpop.xlane.xlu0 %554 }
 0x367   :  { %4697 = vrcp.f32 %v555_v59 }
 0x368   :  { %4699 = vrcp.f32 %v558_v57 }
 0x36d   :  { %v4698_v60 = vpop.eup %4697  ;;  %v561_v63 = vpop.xlane.xlu2 %560 }
 0x36e   :  { %v573_v62 = vmul.f32 %v4698_v60, %v4690_v37  ;;  %v4700_v61 = vpop.eup %4699  ;;  %4701 = vrcp.f32 %v561_v63 }
 0x36f   :  { %v574_v0 = vmul.f32 %v4700_v61, %v4688_v33 }
 0x370   :  { %4202 = vmatmul.msk.f32.vlgmr.msrb.gmra.mxu2 %vm521_vm13, %v573_v62 }
 0x371   :  { %1041 = vmatpush.msrb.mxu2 %v4267_v16 }
 0x373   :  { %1042 = vmatpush.msrb.mxu2 %v4266_v17 }
 0x374   :  { %v4702_v1 = vpop.eup %4701 }
 0x375   :  { %v564_v2 = vpop.xlane.xlu0 %563  ;;  %v575_v3 = vmul.f32 %v4702_v1, %v4692_v44  ;;  %1043 = vmatpush.msrb.mxu2 %v4265_v19 }
 0x376   :  { %4703 = vrcp.f32 %v564_v2 }
 0x377   :  { %1044 = vmatpush.msrb.mxu2 %v4264_v21 }
 0x378   :  { %4203 = vmatmul.msk.f32.gmra.mxu2 %vm521_vm13, %v574_v0 }
 0x37c   :  { %v4704_v5 = vpop.eup %4703 }
 0x37d   :  { %v567_v4 = vpop.xlane.xlu1 %566  ;;  %v576_v6 = vmul.f32 %v4704_v5, %v4694_v50 }
 0x37e   :  { %4705 = vrcp.f32 %v567_v4 }
 0x380   :  { %4204 = vmatmul.msk.f32.gmra.mxu2 %vm521_vm13, %v575_v3 }
 0x384   :  { %v4706_v8 = vpop.eup %4705 }
 0x385   :  { %v577_v11 = vmul.f32 %v4706_v8, %v4696_v56 }
 0x388   :  { %4205 = vmatmul.msk.f32.gmra.mxu2 %vm521_vm13, %v576_v6 }
 0x390   :  { %4206 = vmatmul.msk.f32.gmra.mxu2 %vm521_vm13, %v577_v11 }
 0x398   :  { %4242 = vmatmul.msk.f32.vlgmr.msra.gmra.mxu2 %vm458_vm5, %v658_v14 }
 0x3a0   :  { %4243 = vmatmul.msk.f32.gmra.mxu2 %vm458_vm5, %v661_v22 }
 0x3a8   :  { %4244 = vmatmul.msk.f32.gmra.mxu2 %vm458_vm5, %v664_v9 }
 0x3b0   :  { %4245 = vmatmul.msk.f32.gmra.mxu2 %vm458_vm5, %v667_v27  ;;  %v4277_v27 = vld [vmem:[%s6740_s7 + $0x58] sm:$0xff] }
 0x3b1   :  { %1083 = vmatpush.msra.mxu3 %v4277_v27  ;;  %v4328_v27 = vld [vmem:[%s6740_s7 + $0x70] sm:$0xff] }
 0x3b8   :  { %4246 = vmatmul.msk.f32.gmra.mxu2 %vm458_vm5, %v670_v18  ;;  %v4276_v18 = vld [vmem:[%s6740_s7 + $0x50] sm:$0xff] }
 0x3b9   :  { %1084 = vmatpush.msra.mxu3 %v4276_v18  ;;  %v4326_v18 = vld [vmem:[%s6740_s7 + $0x60] sm:$0xff] }
 0x3c0   :  { %4269 = vmatmul.msk.f32.vlgmr.msrb.gmra.mxu2 %vm178_vm1, %v5183_v53 }
 0x3c8   :  { %4270 = vmatmul.msk.f32.gmra.mxu2 %vm178_vm1, %v5198_v7 }
 0x3d0   :  { %4271 = vmatmul.msk.f32.gmra.mxu2 %vm178_vm1, %v5212_v25 }
 0x3d8   :  { %4272 = vmatmul.msk.f32.gmra.mxu2 %vm178_vm1, %v5216_v29 }
 0x3e0   :  { %4273 = vmatmul.msk.f32.gmra.mxu2 %vm178_vm1, %v5228_v36 }
 0x3f3   :  { %v614_v31 = vpop.f32.mrf.mxu2 }
 0x3f4   :  { %4259 = vmatmul.msk.f32.vlgmr.msrb.gmra.mxu1 %vm458_vm5, %v614_v31 }
 0x3fb   :  { %v617_v33 = vpop.f32.mrf.mxu2 }
 0x3fc   :  { %4260 = vmatmul.msk.f32.gmra.mxu1 %vm458_vm5, %v617_v33 }
 0x403   :  { %v620_v35 = vpop.f32.mrf.mxu2 }
 0x404   :  { %4261 = vmatmul.msk.f32.gmra.mxu1 %vm458_vm5, %v620_v35  ;;  %v4275_v35 = vld [vmem:[%s6740_s7 + $0x48] sm:$0xff] }
 0x405   :  { %1085 = vmatpush.msra.mxu3 %v4275_v35 }
 0x40b   :  { %v623_v37 = vpop.f32.mrf.mxu2 }
 0x40c   :  { %4262 = vmatmul.msk.f32.gmra.mxu1 %vm458_vm5, %v623_v37  ;;  %v4274_v37 = vld [vmem:[%s6740_s7 + $0x40] sm:$0xff] }
 0x40d   :  { %1086 = vmatpush.msra.mxu3 %v4274_v37 }
 0x413   :  { %v626_v40 = vpop.f32.mrf.mxu2 }
 0x414   :  { %4263 = vmatmul.msk.f32.gmra.mxu1 %vm458_vm5, %v626_v40 }
 0x41b   :  { %v803_v41 = vpop.f32.mrf.mxu2 }
 0x41c   :  { %v804_v42 = vadd.f32 %v803_v41, %v5340_v34 }
 0x41e   :  { %v818_v45 = vsel %vm521_vm13, %v804_v42, -inf }
 0x41f   :  { %819 = vmax.xlane.f32.xlu2 %v818_v45 }
 0x423   :  { %v806_v44 = vpop.f32.mrf.mxu2 }
 0x424   :  { %v807_v43 = vadd.f32 %v806_v44, %v5342_v38 }
 0x426   :  { %v821_v46 = vsel %vm521_vm13, %v807_v43, -inf }
 0x427   :  { %822 = vmax.xlane.f32.xlu0 %v821_v46 }
 0x42b   :  { %v809_v48 = vpop.f32.mrf.mxu2 }
 0x42c   :  { %v810_v49 = vadd.f32 %v809_v48, %v5348_v47 }
 0x42e   :  { %v824_v50 = vsel %vm521_vm13, %v810_v49, -inf }
 0x42f   :  { %825 = vmax.xlane.f32.xlu1 %v824_v50 }
 0x433   :  { %v812_v51 = vpop.f32.mrf.mxu2 }
 0x434   :  { %v813_v55 = vadd.f32 %v812_v51, %v5352_v52 }
 0x436   :  { %v827_v56 = vsel %vm521_vm13, %v813_v55, -inf }
 0x437   :  { %828 = vmax.xlane.f32.xlu2 %v827_v56 }
 0x43b   :  { %v815_v58 = vpop.f32.mrf.mxu2 }
 0x43c   :  { %v816_v59 = vadd.f32 %v815_v58, %v5352_v52  ;;  %v4287_v58 = vld [vmem:[%s6742_s9 + $0x58] sm:$0xff] }
 0x43e   :  { %v830_v57 = vsel %vm534_vm0, %v816_v59, -inf }
 0x43f   :  { %831 = vmax.xlane.f32.xlu0 %v830_v57  ;;  %v4285_v57 = vld [vmem:[%s6742_s9 + $0x48] sm:$0xff] }
 0x492   :  { %v820_v60 = vpop.xlane.xlu2 %819 }
 0x493   :  { %v833_v62 = vsub.f32 %v804_v42, %v820_v60  ;;  %v4284_v60 = vld [vmem:[%s6742_s9 + $0x40] sm:$0xff] }
 0x495   :  { %v838_v63 = vmul.f32 1.442695, %v833_v62 }
 0x497   :  { %4707 = vpow2.f32 %v838_v63 }
 0x49a   :  { %v823_v61 = vpop.xlane.xlu0 %822 }
 0x49b   :  { %v834_v0 = vsub.f32 %v807_v43, %v823_v61 }
 0x49d   :  { %v4708_v2 = vpop.eup %4707  ;;  %v840_v1 = vmul.f32 1.442695, %v834_v0 }
 0x49e   :  { %v848_v3 = vsel %vm521_vm13, %v4708_v2, 0.0 }
 0x49f   :  { %4709 = vpow2.f32 %v840_v1  ;;  %849 = vadd.xlane.f32.xlu1 %v848_v3  ;;  %v4319_v1 = vld [vmem:[%s6771_s22 + $0x78] sm:$0xff]  ;;  %v4318_v3 = vld [vmem:[%s6771_s22 + $0x70] sm:$0xff] }
 0x4a2   :  { %v826_v4 = vpop.xlane.xlu1 %825 }
 0x4a3   :  { %v835_v5 = vsub.f32 %v810_v49, %v826_v4  ;;  %v4317_v4 = vld [vmem:[%s6771_s22 + $0x68] sm:$0xff] }
 0x4a5   :  { %v4710_v6 = vpop.eup %4709  ;;  %v842_v8 = vmul.f32 1.442695, %v835_v5  ;;  %v4316_v5 = vld [vmem:[%s6771_s22 + $0x60] sm:$0xff] }
 0x4a6   :  { %v851_v10 = vsel %vm521_vm13, %v4710_v6, 0.0 }
 0x4a7   :  { %4711 = vpow2.f32 %v842_v8  ;;  %852 = vadd.xlane.f32.xlu2 %v851_v10 }
 0x4aa   :  { %v829_v11 = vpop.xlane.xlu2 %828 }
 0x4ab   :  { %v836_v12 = vsub.f32 %v813_v55, %v829_v11  ;;  %v4253_v55 = vld [vmem:[%s6745_s11 + $0x8] sm:$0xff]  ;;  %v4645_v11 = vld [vmem:[%s6743_s8 + $0x2] ss:$0 sm:$0xff] }
 0x4ac   :  { %955 = vmatpush.msrb.mxu0 %v4253_v55 }
 0x4ad   :  { %v4712_v13 = vpop.eup %4711  ;;  %v844_v14 = vmul.f32 1.442695, %v836_v12 }
 0x4ae   :  { %v854_v16 = vsel %vm521_vm13, %v4712_v13, 0.0  ;;  %1125 = vmatpush.msra.mxu0 %v4287_v58 }
 0x4af   :  { %4713 = vpow2.f32 %v844_v14  ;;  %855 = vadd.xlane.f32.xlu0 %v854_v16  ;;  %v1046_v16 = vpop.f32.mrf.mxu2 }
 0x4b2   :  { %v832_v17 = vpop.xlane.xlu0 %831 }
 0x4b3   :  { %v837_v19 = vsub.f32 %v816_v59, %v832_v17  ;;  %v4286_v59 = vld [vmem:[%s6742_s9 + $0x50] sm:$0xff] }
 0x4b4   :  { %1126 = vmatpush.msra.mxu0 %v4286_v59  ;;  %v4646_v59 = vld [vmem:[%s6744_s10 + $0x2] ss:$0 sm:$0xff] }
 0x4b5   :  { %v4714_v21 = vpop.eup %4713  ;;  %v846_v22 = vmul.f32 1.442695, %v837_v19 }
 0x4b6   :  { %v857_v23 = vsel %vm521_vm13, %v4714_v21, 0.0  ;;  %1127 = vmatpush.msra.mxu0 %v4285_v57 }
 0x4b7   :  { %4715 = vpow2.f32 %v846_v22  ;;  %858 = vadd.xlane.f32.xlu1 %v857_v23  ;;  %v1049_v23 = vpop.f32.mrf.mxu2 }
 0x4b8   :  { %1128 = vmatpush.msra.mxu0 %v4284_v60 }
 0x4bd   :  { %v4716_v9 = vpop.eup %4715 }
 0x4be   :  { %v860_v24 = vsel %vm534_vm0, %v4716_v9, 0.0 }
 0x4bf   :  { %861 = vadd.xlane.f32.xlu2 %v860_v24  ;;  %v4329_v24 = vld [vmem:[%s6740_s7 + $0x78] sm:$0xff] }
 0x512   :  { %v850_v28 = vpop.xlane.xlu1 %849 }
 0x513   :  { %4717 = vrcp.f32 %v850_v28  ;;  %v4327_v28 = vld [vmem:[%s6740_s7 + $0x68] sm:$0xff] }
 0x519   :  { %v4718_v30 = vpop.eup %4717 }
 0x51a   :  { %v868_v31 = vmul.f32 %v4718_v30, %v4708_v2  ;;  %v853_v33 = vpop.xlane.xlu2 %852 }
 0x51b   :  { %4719 = vrcp.f32 %v853_v33 }
 0x51c   :  { %4248 = vmatmul.msk.f32.vlgmr.msrb.gmra.mxu3 %vm521_vm13, %v868_v31  ;;  %v1052_v31 = vpop.f32.mrf.mxu2 }
 0x521   :  { %v4720_v40 = vpop.eup %4719 }
 0x522   :  { %v856_v41 = vpop.xlane.xlu0 %855  ;;  %v869_v42 = vmul.f32 %v4720_v40, %v4710_v6 }
 0x523   :  { %4721 = vrcp.f32 %v856_v41 }
 0x524   :  { %4249 = vmatmul.msk.f32.gmra.mxu3 %vm521_vm13, %v869_v42  ;;  %v1055_v35 = vpop.f32.mrf.mxu2 }
 0x529   :  { %v4722_v45 = vpop.eup %4721 }
 0x52a   :  { %v859_v44 = vpop.xlane.xlu1 %858  ;;  %v870_v43 = vmul.f32 %v4722_v45, %v4712_v13 }
 0x52b   :  { %4723 = vrcp.f32 %v859_v44 }
 0x52c   :  { %4250 = vmatmul.msk.f32.gmra.mxu3 %vm521_vm13, %v870_v43  ;;  %v1058_v40 = vpop.f32.mrf.mxu2 }
 0x531   :  { %v4724_v46 = vpop.eup %4723 }
 0x532   :  { %v862_v48 = vpop.xlane.xlu2 %861  ;;  %v871_v49 = vmul.f32 %v4724_v46, %v4714_v21  ;;  %v4644_v21 = vld [vmem:[%s6741_s6 + $0x2] ss:$0 sm:$0xff] }
 0x533   :  { %4725 = vrcp.f32 %v862_v48  ;;  %v1050_v30 = vadd.f32 %v4644_v21, %v1049_v23  ;;  %v1053_v33 = vadd.f32 %v4644_v21, %v1052_v31  ;;  %v1056_v37 = vadd.f32 %v4644_v21, %v1055_v35 }
 0x534   :  { %4251 = vmatmul.msk.f32.gmra.mxu3 %vm521_vm13, %v871_v49  ;;  %v1059_v41 = vadd.f32 %v4644_v21, %v1058_v40  ;;  %v5560_v49 = vpop.f32.mrf.mxu1 }
 0x539   :  { %v4726_v50 = vpop.eup %4725 }
 0x53a   :  { %v872_v51 = vmul.f32 %v4726_v50, %v4716_v9  ;;  %v1047_v9 = vadd.f32 %v4644_v21, %v1046_v16 }
 0x53c   :  { %4252 = vmatmul.msk.f32.gmra.mxu3 %vm521_vm13, %v872_v51  ;;  %v5562_v51 = vpop.f32.mrf.mxu1 }
 0x544   :  { %4279 = vmatmul.msk.f32.vlgmr.msra.gmra.mxu3 %vm178_vm1, %v5183_v53  ;;  %v5564_v58 = vpop.f32.mrf.mxu1 }
 0x54c   :  { %4280 = vmatmul.msk.f32.gmra.mxu3 %vm178_vm1, %v5198_v7 }
 0x554   :  { %4281 = vmatmul.msk.f32.gmra.mxu3 %vm178_vm1, %v5212_v25 }
 0x55c   :  { %4282 = vmatmul.msk.f32.gmra.mxu3 %vm178_vm1, %v5216_v29 }
 0x564   :  { %4283 = vmatmul.msk.f32.gmra.mxu3 %vm178_vm1, %v5228_v36 }
 0x59f   :  { %v908_v56 = vpop.f32.mrf.mxu3 }
 0x5a0   :  { %4254 = vmatmul.msk.f32.vlgmr.msrb.gmra.mxu0 %vm458_vm5, %v908_v56 }
 0x5a1   :  { %1388 = vmatpush.msrb.mxu0 %v4319_v1 }
 0x5a3   :  { %1389 = vmatpush.msrb.mxu0 %v4318_v3 }
 0x5a5   :  { %1390 = vmatpush.msrb.mxu0 %v4317_v4 }
 0x5a7   :  { %v911_v62 = vpop.f32.mrf.mxu3  ;;  %1391 = vmatpush.msrb.mxu0 %v4316_v5 }
 0x5a8   :  { %4255 = vmatmul.msk.f32.gmra.mxu0 %vm458_vm5, %v911_v62  ;;  %v5569_v62 = vpop.f32.mrf.mxu1 }
 0x5af   :  { %v914_v63 = vpop.f32.mrf.mxu3 }
 0x5b0   :  { %4256 = vmatmul.msk.f32.gmra.mxu0 %vm458_vm5, %v914_v63  ;;  %v5572_v1 = vpop.f32.mrf.mxu1 }
 0x5b7   :  { %v917_v61 = vpop.f32.mrf.mxu3 }
 0x5b8   :  { %4257 = vmatmul.msk.f32.gmra.mxu0 %vm458_vm5, %v917_v61 }
 0x5bf   :  { %v920_v0 = vpop.f32.mrf.mxu3 }
 0x5c0   :  { %4258 = vmatmul.msk.f32.gmra.mxu0 %vm458_vm5, %v920_v0 }
 0x5c7   :  { %v1088_v2 = vpop.f32.mrf.mxu3 }
 0x5c8   :  { %4289 = vmatmul.msk.f32.vlgmr.msra.gmra.mxu0 %vm178_vm1, %v5183_v53  ;;  %v1089_v22 = vadd.f32 %v4645_v11, %v1088_v2 }
 0x5cf   :  { %v1091_v6 = vpop.f32.mrf.mxu3 }
 0x5d0   :  { %4290 = vmatmul.msk.f32.gmra.mxu0 %vm178_vm1, %v5198_v7  ;;  %v1092_v19 = vadd.f32 %v4645_v11, %v1091_v6 }
 0x5d7   :  { %v1094_v8 = vpop.f32.mrf.mxu3 }
 0x5d8   :  { %4291 = vmatmul.msk.f32.gmra.mxu0 %vm178_vm1, %v5212_v25  ;;  %v1095_v17 = vadd.f32 %v4645_v11, %v1094_v8 }
 0x5df   :  { %v1097_v10 = vpop.f32.mrf.mxu3 }
 0x5e0   :  { %4292 = vmatmul.msk.f32.gmra.mxu0 %vm178_vm1, %v5216_v29  ;;  %v1098_v14 = vadd.f32 %v4645_v11, %v1097_v10 }
 0x5e7   :  { %v1100_v12 = vpop.f32.mrf.mxu3 }
 0x5e8   :  { %v1101_v13 = vadd.f32 %v4645_v11, %v1100_v12  ;;  %4293 = vmatmul.msk.f32.gmra.mxu0 %vm178_vm1, %v5228_v36 }
 0x5ea   :  { %4294 = vmatpush.xpose.msk.msra.mxu1 %vm458_vm5, %v1101_v13 }
 0x5ee   :  { %4295 = vmatpush.xpose.msk.msra.mxu1 %vm458_vm5, %v1098_v14 }
 0x5f0   :  { %4321 = vmatmul.msk.f32.vlgmr.msrb.gmra.mxu0 %vm178_vm1, %v5183_v53 }
 0x5f2   :  { %4296 = vmatpush.xpose.msk.msra.mxu1 %vm458_vm5, %v1095_v17 }
 0x5f6   :  { %4297 = vmatpush.xpose.msk.msra.mxu1 %vm458_vm5, %v1092_v19 }
 0x5f8   :  { %4322 = vmatmul.msk.f32.gmra.mxu0 %vm178_vm1, %v5198_v7 }
 0x5fa   :  { %4298 = vmatpush.xpose.msk.msra.mxu1 %vm458_vm5, %v1089_v22 }
 0x5fd   :  { %4299 = vmatmul.msk.f32.vlgmr.msra.gmra.mxu1 %vm458_vm5, %v1047_v9  ;;  %v4310_v9 = vld [vmem:[%s6745_s11 + $0x10] sm:$0xff] }
 0x5fe   :  { %1430 = vmatpush.msrb.mxu1 %v4329_v24  ;;  %1344 = vmatpush.msrb.mxu3 %v4310_v9 }
 0x600   :  { %4323 = vmatmul.msk.f32.gmra.mxu0 %vm178_vm1, %v5212_v25  ;;  %1431 = vmatpush.msrb.mxu1 %v4328_v27 }
 0x602   :  { %1432 = vmatpush.msrb.mxu1 %v4327_v28 }
 0x604   :  { %1433 = vmatpush.msrb.mxu1 %v4326_v18  ;;  %v4648_v18 = vld [vmem:[%s6743_s8 + $0x3] ss:$0 sm:$0xff] }
 0x605   :  { %4300 = vmatmul.msk.f32.gmra.mxu1 %vm458_vm5, %v1050_v30 }
 0x608   :  { %4324 = vmatmul.msk.f32.gmra.mxu0 %vm178_vm1, %v5216_v29 }
 0x60d   :  { %4301 = vmatmul.msk.f32.gmra.mxu1 %vm458_vm5, %v1053_v33 }
 0x610   :  { %4325 = vmatmul.msk.f32.gmra.mxu0 %vm178_vm1, %v5228_v36 }
 0x615   :  { %4302 = vmatmul.msk.f32.gmra.mxu1 %vm458_vm5, %v1056_v37 }
 0x61d   :  { %v5539_v42 = vpop.f32.mrf.mxu0  ;;  %4303 = vmatmul.msk.f32.gmra.mxu1 %vm458_vm5, %v1059_v41 }
 0x625   :  { %v5542_v45 = vpop.f32.mrf.mxu0  ;;  %4331 = vmatmul.msk.f32.vlgmr.msrb.gmra.mxu1 %vm178_vm1, %v5183_v53 }
 0x62d   :  { %v5546_v44 = vpop.f32.mrf.mxu0  ;;  %4332 = vmatmul.msk.f32.gmra.mxu1 %vm178_vm1, %v5198_v7 }
 0x635   :  { %v5550_v43 = vpop.f32.mrf.mxu0  ;;  %4333 = vmatmul.msk.f32.gmra.mxu1 %vm178_vm1, %v5212_v25 }
 0x63d   :  { %v5554_v46 = vpop.f32.mrf.mxu0  ;;  %4334 = vmatmul.msk.f32.gmra.mxu1 %vm178_vm1, %v5216_v29 }
 0x645   :  { %v1130_v48 = vpop.f32.mrf.mxu0  ;;  %4335 = vmatmul.msk.f32.gmra.mxu1 %vm178_vm1, %v5228_v36 }
 0x646   :  { %v1131_v2 = vadd.f32 %v4646_v59, %v1130_v48 }
 0x64d   :  { %v1133_v50 = vpop.f32.mrf.mxu0 }
 0x64e   :  { %v1134_v0 = vadd.f32 %v4646_v59, %v1133_v50 }
 0x655   :  { %v1136_v55 = vpop.f32.mrf.mxu0 }
 0x656   :  { %v1137_v61 = vadd.f32 %v4646_v59, %v1136_v55 }
 0x65d   :  { %v1139_v56 = vpop.f32.mrf.mxu0 }
 0x65e   :  { %v1140_v63 = vadd.f32 %v4646_v59, %v1139_v56 }
 0x665   :  { %v1142_v57 = vpop.f32.mrf.mxu0 }
 0x666   :  { %v1143_v60 = vadd.f32 %v4646_v59, %v1142_v57 }
 0x668   :  { %4304 = vmatpush.msk.msra.mxu2 %vm593_vm6, %v1143_v60 }
 0x66a   :  { %1292 = vmatpush.msra.mxu2 %v1140_v63 }
 0x66c   :  { %1293 = vmatpush.msra.mxu2 %v1137_v61 }
 0x66e   :  { %1294 = vmatpush.msra.mxu2 %v1134_v0 }
 0x670   :  { %1295 = vmatpush.msra.mxu2 %v1131_v2 }
 0x67a   :  { %v1192_v3 = vpop.f32.mrf.mxu1 }
 0x67b   :  { %v1193_v4 = vadd.f32 %v1192_v3, %v5340_v34 }
 0x67d   :  { %v1207_v5 = vsel %vm521_vm13, %v1193_v4, -inf }
 0x67e   :  { %1208 = vmax.xlane.f32.xlu0 %v1207_v5 }
 0x682   :  { %v1195_v6 = vpop.f32.mrf.mxu1 }
 0x683   :  { %v1196_v8 = vadd.f32 %v1195_v6, %v5342_v38 }
 0x685   :  { %v1210_v10 = vsel %vm521_vm13, %v1196_v8, -inf }
 0x686   :  { %1211 = vmax.xlane.f32.xlu1 %v1210_v10 }
 0x68a   :  { %v1198_v11 = vpop.f32.mrf.mxu1 }
 0x68b   :  { %v1199_v12 = vadd.f32 %v1198_v11, %v5348_v47 }
 0x68d   :  { %v1213_v13 = vsel %vm521_vm13, %v1199_v12, -inf }
 0x68e   :  { %1214 = vmax.xlane.f32.xlu2 %v1213_v13 }
 0x692   :  { %v1201_v14 = vpop.f32.mrf.mxu1 }
 0x693   :  { %v1202_v16 = vadd.f32 %v1201_v14, %v5352_v52 }
 0x695   :  { %v1216_v17 = vsel %vm521_vm13, %v1202_v16, -inf }
 0x696   :  { %1217 = vmax.xlane.f32.xlu0 %v1216_v17 }
 0x69a   :  { %v1204_v19 = vpop.f32.mrf.mxu1 }
 0x69b   :  { %v1205_v21 = vadd.f32 %v1204_v19, %v5352_v52 }
 0x69d   :  { %v1219_v22 = vsel %vm534_vm0, %v1205_v21, -inf }
 0x69e   :  { %1220 = vmax.xlane.f32.xlu1 %v1219_v22 }
 0x6a2   :  { %v1435_v23 = vpop.f32.mrf.mxu1 }
 0x6a3   :  { %v1436_v40 = vadd.f32 %v4648_v18, %v1435_v23 }
 0x6aa   :  { %v1438_v24 = vpop.f32.mrf.mxu1 }
 0x6ab   :  { %v1439_v37 = vadd.f32 %v4648_v18, %v1438_v24 }
 0x6b2   :  { %v1441_v27 = vpop.f32.mrf.mxu1 }
 0x6b3   :  { %v1442_v35 = vadd.f32 %v4648_v18, %v1441_v27  ;;  %v4338_v27 = vld [vmem:[%s6742_s9 + $0x70] sm:$0xff] }
 0x6ba   :  { %v1444_v28 = vpop.f32.mrf.mxu1 }
 0x6bb   :  { %v1445_v33 = vadd.f32 %v4648_v18, %v1444_v28  ;;  %v4337_v28 = vld [vmem:[%s6742_s9 + $0x68] sm:$0xff] }
 0x6c2   :  { %v1447_v30 = vpop.f32.mrf.mxu1 }
 0x6c3   :  { %v1448_v31 = vadd.f32 %v4648_v18, %v1447_v30  ;;  %v4336_v18 = vld [vmem:[%s6742_s9 + $0x60] sm:$0xff] }
 0x6c5   :  { %4346 = vmatpush.xpose.msk.msra.mxu3 %vm458_vm5, %v1448_v31 }
 0x6c9   :  { %4347 = vmatpush.xpose.msk.msra.mxu3 %vm458_vm5, %v1445_v33 }
 0x6cd   :  { %4348 = vmatpush.xpose.msk.msra.mxu3 %vm458_vm5, %v1442_v35 }
 0x6d1   :  { %4349 = vmatpush.xpose.msk.msra.mxu3 %vm458_vm5, %v1439_v37 }
 0x6d5   :  { %4350 = vmatpush.xpose.msk.msra.mxu3 %vm458_vm5, %v1436_v40 }
 0x6f1   :  { %v1209_v41 = vpop.xlane.xlu0 %1208 }
 0x6f2   :  { %v1222_v48 = vsub.f32 %v1193_v4, %v1209_v41 }
 0x6f4   :  { %v1227_v50 = vmul.f32 1.442695, %v1222_v48 }
 0x6f6   :  { %4727 = vpow2.f32 %v1227_v50 }
 0x6f9   :  { %v1212_v55 = vpop.xlane.xlu1 %1211 }
 0x6fa   :  { %v1223_v56 = vsub.f32 %v1196_v8, %v1212_v55 }
 0x6fc   :  { %v4728_v59 = vpop.eup %4727  ;;  %v1229_v57 = vmul.f32 1.442695, %v1223_v56 }
 0x6fd   :  { %v1237_v60 = vsel %vm521_vm13, %v4728_v59, 0.0 }
 0x6fe   :  { %4729 = vpow2.f32 %v1229_v57  ;;  %1238 = vadd.xlane.f32.xlu2 %v1237_v60 }
 0x701   :  { %v1215_v63 = vpop.xlane.xlu2 %1214 }
 0x702   :  { %v1224_v61 = vsub.f32 %v1199_v12, %v1215_v63 }
 0x704   :  { %v4730_v0 = vpop.eup %4729  ;;  %v1231_v2 = vmul.f32 1.442695, %v1224_v61 }
 0x705   :  { %v1240_v3 = vsel %vm521_vm13, %v4730_v0, 0.0 }
 0x706   :  { %4731 = vpow2.f32 %v1231_v2  ;;  %1241 = vadd.xlane.f32.xlu0 %v1240_v3 }
 0x709   :  { %v1218_v5 = vpop.xlane.xlu0 %1217 }
 0x70a   :  { %v1225_v4 = vsub.f32 %v1202_v16, %v1218_v5 }
 0x70c   :  { %v4732_v6 = vpop.eup %4731  ;;  %v1233_v10 = vmul.f32 1.442695, %v1225_v4 }
 0x70d   :  { %v1243_v8 = vsel %vm521_vm13, %v4732_v6, 0.0 }
 0x70e   :  { %4733 = vpow2.f32 %v1233_v10  ;;  %1244 = vadd.xlane.f32.xlu1 %v1243_v8 }
 0x711   :  { %v1221_v11 = vpop.xlane.xlu1 %1220 }
 0x712   :  { %v1226_v13 = vsub.f32 %v1205_v21, %v1221_v11  ;;  %v4339_v21 = vld [vmem:[%s6742_s9 + $0x78] sm:$0xff] }
 0x713   :  { %1472 = vmatpush.msrb.mxu2 %v4339_v21 }
 0x714   :  { %v4734_v14 = vpop.eup %4733  ;;  %v1235_v17 = vmul.f32 1.442695, %v1226_v13 }
 0x715   :  { %v1246_v12 = vsel %vm521_vm13, %v4734_v14, 0.0  ;;  %1473 = vmatpush.msrb.mxu2 %v4338_v27 }
 0x716   :  { %4735 = vpow2.f32 %v1235_v17  ;;  %1247 = vadd.xlane.f32.xlu2 %v1246_v12 }
 0x717   :  { %1474 = vmatpush.msrb.mxu2 %v4337_v28 }
 0x719   :  { %1475 = vmatpush.msrb.mxu2 %v4336_v18 }
 0x71c   :  { %v4736_v19 = vpop.eup %4735 }
 0x71d   :  { %v1249_v22 = vsel %vm534_vm0, %v4736_v19, 0.0 }
 0x71e   :  { %1250 = vadd.xlane.f32.xlu0 %v1249_v22 }
 0x771   :  { %v1239_v23 = vpop.xlane.xlu2 %1238 }
 0x772   :  { %4737 = vrcp.f32 %v1239_v23 }
 0x778   :  { %v4738_v16 = vpop.eup %4737 }
 0x779   :  { %v1257_v9 = vmul.f32 %v4738_v16, %v4728_v59  ;;  %v1242_v24 = vpop.xlane.xlu0 %1241 }
 0x77a   :  { %4739 = vrcp.f32 %v1242_v24 }
 0x77b   :  { %4305 = vmatmul.msk.f32.vlgmr.msra.gmra.mxu2 %vm521_vm13, %v1257_v9 }
 0x780   :  { %v4740_v30 = vpop.eup %4739 }
 0x781   :  { %v1245_v31 = vpop.xlane.xlu1 %1244  ;;  %v1258_v33 = vmul.f32 %v4740_v30, %v4730_v0 }
 0x782   :  { %4741 = vrcp.f32 %v1245_v31 }
 0x783   :  { %4306 = vmatmul.msk.f32.gmra.mxu2 %vm521_vm13, %v1258_v33 }
 0x788   :  { %v4742_v35 = vpop.eup %4741 }
 0x789   :  { %v1248_v37 = vpop.xlane.xlu2 %1247  ;;  %v1259_v40 = vmul.f32 %v4742_v35, %v4732_v6 }
 0x78a   :  { %4743 = vrcp.f32 %v1248_v37 }
 0x78b   :  { %4307 = vmatmul.msk.f32.gmra.mxu2 %vm521_vm13, %v1259_v40 }
 0x790   :  { %v4744_v41 = vpop.eup %4743 }
 0x791   :  { %v1251_v48 = vpop.xlane.xlu0 %1250  ;;  %v1260_v50 = vmul.f32 %v4744_v41, %v4734_v14  ;;  %v4649_v14 = vld [vmem:[%s6744_s10 + $0x3] ss:$0 sm:$0xff] }
 0x792   :  { %4745 = vrcp.f32 %v1251_v48 }
 0x793   :  { %4308 = vmatmul.msk.f32.gmra.mxu2 %vm521_vm13, %v1260_v50 }
 0x798   :  { %v4746_v55 = vpop.eup %4745 }
 0x799   :  { %v1261_v56 = vmul.f32 %v4746_v55, %v4736_v19 }
 0x79b   :  { %4309 = vmatmul.msk.f32.gmra.mxu2 %vm521_vm13, %v1261_v56 }
 0x7a3   :  { %4341 = vmatmul.msk.f32.vlgmr.msrb.gmra.mxu2 %vm178_vm1, %v5183_v53 }
 0x7ab   :  { %4342 = vmatmul.msk.f32.gmra.mxu2 %vm178_vm1, %v5198_v7  ;;  %v1393_v7 = vpop.f32.mrf.mxu0 }
 0x7b3   :  { %4343 = vmatmul.msk.f32.gmra.mxu2 %vm178_vm1, %v5212_v25 }
 0x7bb   :  { %4344 = vmatmul.msk.f32.gmra.mxu2 %vm178_vm1, %v5216_v29  ;;  %v4647_v29 = vld [vmem:[%s6741_s6 + $0x3] ss:$0 sm:$0xff] }
 0x7bc   :  { %v1394_v63 = vadd.f32 %v4647_v29, %v1393_v7 }
 0x7c3   :  { %4345 = vmatmul.msk.f32.gmra.mxu2 %vm178_vm1, %v5228_v36  ;;  %v1396_v36 = vpop.f32.mrf.mxu0 }
 0x7c4   :  { %v1397_v0 = vadd.f32 %v4647_v29, %v1396_v36 }
 0x7cb   :  { %v1399_v2 = vpop.f32.mrf.mxu0 }
 0x7cc   :  { %v1400_v5 = vadd.f32 %v4647_v29, %v1399_v2 }
 0x7d3   :  { %v1402_v6 = vpop.f32.mrf.mxu0 }
 0x7d4   :  { %v1403_v10 = vadd.f32 %v4647_v29, %v1402_v6 }
 0x7db   :  { %v1405_v11 = vpop.f32.mrf.mxu0 }
 0x7dc   :  { %v1406_v13 = vadd.f32 %v4647_v29, %v1405_v11 }
 0x7fe   :  { %v1297_v59 = vpop.f32.mrf.mxu2 }
 0x7ff   :  { %4311 = vmatmul.msk.f32.vlgmr.msrb.gmra.mxu3 %vm458_vm5, %v1297_v59 }
 0x806   :  { %v1300_v57 = vpop.f32.mrf.mxu2 }
 0x807   :  { %4312 = vmatmul.msk.f32.gmra.mxu3 %vm458_vm5, %v1300_v57 }
 0x80e   :  { %v1303_v60 = vpop.f32.mrf.mxu2 }
 0x80f   :  { %4313 = vmatmul.msk.f32.gmra.mxu3 %vm458_vm5, %v1303_v60 }
 0x816   :  { %v1306_v53 = vpop.f32.mrf.mxu2 }
 0x817   :  { %4314 = vmatmul.msk.f32.gmra.mxu3 %vm458_vm5, %v1306_v53 }
 0x81e   :  { %v1309_v25 = vpop.f32.mrf.mxu2 }
 0x81f   :  { %4315 = vmatmul.msk.f32.gmra.mxu3 %vm458_vm5, %v1309_v25 }
 0x826   :  { %v1477_v61 = vpop.f32.mrf.mxu2 }
 0x827   :  { %4351 = vmatmul.msk.f32.vlgmr.msra.gmra.mxu3 %vm458_vm5, %v1394_v63  ;;  %v1478_v16 = vadd.f32 %v4649_v14, %v1477_v61 }
 0x82e   :  { %v1480_v3 = vpop.f32.mrf.mxu2 }
 0x82f   :  { %4352 = vmatmul.msk.f32.gmra.mxu3 %vm458_vm5, %v1397_v0  ;;  %v1481_v23 = vadd.f32 %v4649_v14, %v1480_v3 }
 0x836   :  { %v1483_v4 = vpop.f32.mrf.mxu2 }
 0x837   :  { %4353 = vmatmul.msk.f32.gmra.mxu3 %vm458_vm5, %v1400_v5  ;;  %v1484_v22 = vadd.f32 %v4649_v14, %v1483_v4 }
 0x83e   :  { %v1486_v8 = vpop.f32.mrf.mxu2 }
 0x83f   :  { %4354 = vmatmul.msk.f32.gmra.mxu3 %vm458_vm5, %v1403_v10  ;;  %v1487_v19 = vadd.f32 %v4649_v14, %v1486_v8 }
 0x846   :  { %v1489_v17 = vpop.f32.mrf.mxu2 }
 0x847   :  { %v1490_v12 = vadd.f32 %v4649_v14, %v1489_v17  ;;  %4355 = vmatmul.msk.f32.gmra.mxu3 %vm458_vm5, %v1406_v13 }
 0x849   :  { %4356 = vmatpush.msk.msra.mxu0 %vm593_vm6, %v1490_v12 }
 0x84b   :  { %1639 = vmatpush.msra.mxu0 %v1487_v19 }
 0x84d   :  { %1640 = vmatpush.msra.mxu0 %v1484_v22 }
 0x84f   :  { %1641 = vmatpush.msra.mxu0 %v1481_v23 }
 0x851   :  { %1642 = vmatpush.msra.mxu0 %v1478_v16 }
 0x882   :  { %v5644_v9 = vpop.f32.mrf.mxu3 }
 0x88a   :  { %v5646_v24 = vpop.f32.mrf.mxu3 }
 0x892   :  { %v5648_v21 = vpop.f32.mrf.mxu3 }
 0x89a   :  { %v5650_v27 = vpop.f32.mrf.mxu3 }
 0x8a2   :  { %v5652_v28 = vpop.f32.mrf.mxu3 }
 0x8aa   :  { %v1539_v18 = vpop.f32.mrf.mxu3 }
 0x8ab   :  { %v1540_v30 = vadd.f32 %v1539_v18, %v5340_v34 }
 0x8ad   :  { %v1554_v31 = vsel %vm521_vm13, %v1540_v30, -inf }
 0x8ae   :  { %1555 = vmax.xlane.f32.xlu1 %v1554_v31 }
 0x8b2   :  { %v1542_v33 = vpop.f32.mrf.mxu3 }
 0x8b3   :  { %v1543_v35 = vadd.f32 %v1542_v33, %v5342_v38 }
 0x8b5   :  { %v1557_v37 = vsel %vm521_vm13, %v1543_v35, -inf }
 0x8b6   :  { %1558 = vmax.xlane.f32.xlu2 %v1557_v37  ;;  %v4362_v37 = vld [vmem:[%s6745_s11 + $0x18] sm:$0xff] }
 0x8b7   :  { %1691 = vmatpush.msra.mxu1 %v4362_v37 }
 0x8ba   :  { %v1545_v40 = vpop.f32.mrf.mxu3 }
 0x8bb   :  { %v1546_v41 = vadd.f32 %v1545_v40, %v5348_v47 }
 0x8bd   :  { %v1560_v48 = vsel %vm521_vm13, %v1546_v41, -inf }
 0x8be   :  { %1561 = vmax.xlane.f32.xlu0 %v1560_v48 }
 0x8c2   :  { %v1548_v50 = vpop.f32.mrf.mxu3 }
 0x8c3   :  { %v1549_v55 = vadd.f32 %v1548_v50, %v5352_v52 }
 0x8c5   :  { %v1563_v56 = vsel %vm521_vm13, %v1549_v55, -inf }
 0x8c6   :  { %1564 = vmax.xlane.f32.xlu1 %v1563_v56 }
 0x8ca   :  { %v1551_v59 = vpop.f32.mrf.mxu3 }
 0x8cb   :  { %v1552_v57 = vadd.f32 %v1551_v59, %v5352_v52 }
 0x8cd   :  { %v1566_v60 = vsel %vm534_vm0, %v1552_v57, -inf }
 0x8ce   :  { %1567 = vmax.xlane.f32.xlu2 %v1566_v60 }
 0x921   :  { %v1556_v53 = vpop.xlane.xlu1 %1555 }
 0x922   :  { %v1569_v7 = vsub.f32 %v1540_v30, %v1556_v53 }
 0x924   :  { %v1574_v25 = vmul.f32 1.442695, %v1569_v7 }
 0x926   :  { %4747 = vpow2.f32 %v1574_v25 }
 0x929   :  { %v1559_v29 = vpop.xlane.xlu2 %1558 }
 0x92a   :  { %v1570_v36 = vsub.f32 %v1543_v35, %v1559_v29 }
 0x92c   :  { %v4748_v63 = vpop.eup %4747  ;;  %v1576_v61 = vmul.f32 1.442695, %v1570_v36 }
 0x92d   :  { %v1584_v0 = vsel %vm521_vm13, %v4748_v63, 0.0 }
 0x92e   :  { %4749 = vpow2.f32 %v1576_v61  ;;  %1585 = vadd.xlane.f32.xlu0 %v1584_v0  ;;  %v1005_v0 = vadd.f32 %v5560_v49, %v5539_v42 }
 0x931   :  { %v1562_v2 = vpop.xlane.xlu0 %1561 }
 0x932   :  { %v1571_v3 = vsub.f32 %v1546_v41, %v1562_v2  ;;  %v1361_v2 = vadd.f32 %v5644_v9, %v1005_v0 }
 0x934   :  { %v4750_v5 = vpop.eup %4749  ;;  %v1578_v4 = vmul.f32 1.442695, %v1571_v3 }
 0x935   :  { %v1587_v6 = vsel %vm521_vm13, %v4750_v5, 0.0 }
 0x936   :  { %4751 = vpow2.f32 %v1578_v4  ;;  %1588 = vadd.xlane.f32.xlu1 %v1587_v6  ;;  %v4650_v4 = vld [vmem:[%s6746_s12] ss:$0 sm:$0xff] }
 0x939   :  { %v1565_v10 = vpop.xlane.xlu1 %1564 }
 0x93a   :  { %v1572_v8 = vsub.f32 %v1549_v55, %v1565_v10  ;;  %v1008_v10 = vadd.f32 %v5562_v51, %v5542_v45  ;;  %v1011_v45 = vadd.f32 %v5564_v58, %v5546_v44  ;;  %v1014_v44 = vadd.f32 %v5569_v62, %v5550_v43 }
 0x93b   :  { %v1017_v43 = vadd.f32 %v5572_v1, %v5554_v46 }
 0x93c   :  { %v4752_v11 = vpop.eup %4751  ;;  %v1580_v13 = vmul.f32 1.442695, %v1572_v8 }
 0x93d   :  { %v1590_v14 = vsel %vm521_vm13, %v4752_v11, 0.0 }
 0x93e   :  { %4753 = vpow2.f32 %v1580_v13  ;;  %1591 = vadd.xlane.f32.xlu2 %v1590_v14 }
 0x941   :  { %v1568_v17 = vpop.xlane.xlu2 %1567 }
 0x942   :  { %v1573_v12 = vsub.f32 %v1552_v57, %v1568_v17 }
 0x944   :  { %v4754_v19 = vpop.eup %4753  ;;  %v1582_v22 = vmul.f32 1.442695, %v1573_v12 }
 0x945   :  { %v1593_v23 = vsel %vm521_vm13, %v4754_v19, 0.0 }
 0x946   :  { %4755 = vpow2.f32 %v1582_v22  ;;  %1594 = vadd.xlane.f32.xlu0 %v1593_v23 }
 0x94c   :  { %v4756_v16 = vpop.eup %4755 }
 0x94d   :  { %v1596_v18 = vsel %vm534_vm0, %v4756_v16, 0.0 }
 0x94e   :  { %1597 = vadd.xlane.f32.xlu1 %v1596_v18 }
 0x9a1   :  { %v1586_v30 = vpop.xlane.xlu0 %1585 }
 0x9a2   :  { %4757 = vrcp.f32 %v1586_v30 }
 0x9a8   :  { %v4758_v31 = vpop.eup %4757 }
 0x9a9   :  { %v1604_v33 = vmul.f32 %v4758_v31, %v4748_v63  ;;  %v1589_v35 = vpop.xlane.xlu1 %1588 }
 0x9aa   :  { %4759 = vrcp.f32 %v1589_v35 }
 0x9ab   :  { %4357 = vmatmul.msk.f32.vlgmr.msra.gmra.mxu0 %vm521_vm13, %v1604_v33 }
 0x9b0   :  { %v4760_v40 = vpop.eup %4759 }
 0x9b1   :  { %v1592_v41 = vpop.xlane.xlu2 %1591  ;;  %v1605_v48 = vmul.f32 %v4760_v40, %v4750_v5 }
 0x9b2   :  { %4761 = vrcp.f32 %v1592_v41 }
 0x9b3   :  { %4358 = vmatmul.msk.f32.gmra.mxu0 %vm521_vm13, %v1605_v48 }
 0x9b8   :  { %v4762_v50 = vpop.eup %4761 }
 0x9b9   :  { %v1595_v55 = vpop.xlane.xlu0 %1594  ;;  %v1606_v56 = vmul.f32 %v4762_v50, %v4752_v11  ;;  %v1362_v11 = vadd.f32 %v5646_v24, %v1008_v10  ;;  %v1363_v24 = vadd.f32 %v5648_v21, %v1011_v45  ;;  %v1364_v21 = vadd.f32 %v5650_v27, %v1014_v44  ;;  %v5766_v44 = vld [vmem:[%s6747_s13] ss:$0 sm:$0xff] }
 0x9ba   :  { %4763 = vrcp.f32 %v1595_v55  ;;  %v1365_v27 = vadd.f32 %v5652_v28, %v1017_v43  ;;  %v1868_v55 = vld [vmem:[%s6750_s15 + $0x18] sm:$0xff] }
 0x9bb   :  { %4359 = vmatmul.msk.f32.gmra.mxu0 %vm521_vm13, %v1606_v56  ;;  %1900 = vmatpush.msra.mxu2 %v1868_v55  ;;  %v1866_v56 = vld [vmem:[%s6750_s15 + $0x8] sm:$0xff] }
 0x9c0   :  { %v4764_v59 = vpop.eup %4763 }
 0x9c1   :  { %v1598_v57 = vpop.xlane.xlu1 %1597  ;;  %v1607_v60 = vmul.f32 %v4764_v59, %v4754_v19  ;;  %v1865_v59 = vld [vmem:[%s6750_s15] sm:$0xff] }
 0x9c2   :  { %4765 = vrcp.f32 %v1598_v57 }
 0x9c3   :  { %4360 = vmatmul.msk.f32.gmra.mxu0 %vm521_vm13, %v1607_v60 }
 0x9c8   :  { %v4766_v53 = vpop.eup %4765 }
 0x9c9   :  { %v1608_v7 = vmul.f32 %v4766_v53, %v4756_v16 }
 0x9cb   :  { %4361 = vmatmul.msk.f32.gmra.mxu0 %vm521_vm13, %v1608_v7 }
 0xa28   :  { %v1644_v25 = vpop.f32.mrf.mxu0 }
 0xa29   :  { %4363 = vmatmul.msk.f32.vlgmr.msra.gmra.mxu1 %vm458_vm5, %v1644_v25 }
 0xa30   :  { %v1647_v29 = vpop.f32.mrf.mxu0 }
 0xa31   :  { %4364 = vmatmul.msk.f32.gmra.mxu1 %vm458_vm5, %v1647_v29 }
 0xa38   :  { %v1650_v36 = vpop.f32.mrf.mxu0 }
 0xa39   :  { %4365 = vmatmul.msk.f32.gmra.mxu1 %vm458_vm5, %v1650_v36 }
 0xa40   :  { %v1653_v63 = vpop.f32.mrf.mxu0 }
 0xa41   :  { %4366 = vmatmul.msk.f32.gmra.mxu1 %vm458_vm5, %v1653_v63 }
 0xa48   :  { %v1656_v61 = vpop.f32.mrf.mxu0 }
 0xa49   :  { %4367 = vmatmul.msk.f32.gmra.mxu1 %vm458_vm5, %v1656_v61 }
 0xaa6   :  { %v1693_v3 = vpop.f32.mrf.mxu1 }
 0xaa7   :  { %v1708_v5 = vadd.f32 %v1693_v3, %v1361_v2 }
 0xaa9   :  { %v1713_v6 = vadd.f32 %v1708_v5, %v5056_v15 }
 0xaab   :  { %v5691_v8 = vadd.f32 %v4650_v4, %v1713_v6 }
 0xaad   :  { %v1729_v42 = vsel %vm178_vm1, %v5691_v8, 0.0  ;;  %v1749_v49 = vmul.f32 %v5691_v8, %v5691_v8 }
 0xaae   :  { %1730 = vadd.xlane.f32.xlu2 %v1729_v42  ;;  %v1696_v9 = vpop.f32.mrf.mxu1 }
 0xaaf   :  { %v1709_v13 = vadd.f32 %v1696_v9, %v1362_v11  ;;  %v1754_v14 = vsel %vm178_vm1, %v1749_v49, 0.0 }
 0xab0   :  { %1755 = vadd.xlane.f32.xlu0 %v1754_v14 }
 0xab1   :  { %v1714_v15 = vadd.f32 %v1709_v13, %v5065_v20 }
 0xab3   :  { %v5702_v51 = vadd.f32 %v4650_v4, %v1714_v15 }
 0xab5   :  { %v1732_v17 = vsel %vm178_vm1, %v5702_v51, 0.0  ;;  %v1750_v12 = vmul.f32 %v5702_v51, %v5702_v51 }
 0xab6   :  { %1733 = vadd.xlane.f32.xlu1 %v1732_v17  ;;  %v1699_v19 = vpop.f32.mrf.mxu1 }
 0xab7   :  { %v1710_v22 = vadd.f32 %v1699_v19, %v1363_v24  ;;  %v1757_v23 = vsel %vm178_vm1, %v1750_v12, 0.0 }
 0xab8   :  { %1758 = vadd.xlane.f32.xlu2 %v1757_v23 }
 0xab9   :  { %v1715_v20 = vadd.f32 %v1710_v22, %v5075_v26 }
 0xabb   :  { %v5713_v58 = vadd.f32 %v4650_v4, %v1715_v20 }
 0xabd   :  { %v1735_v16 = vsel %vm178_vm1, %v5713_v58, 0.0  ;;  %v1751_v18 = vmul.f32 %v5713_v58, %v5713_v58 }
 0xabe   :  { %1736 = vadd.xlane.f32.xlu0 %v1735_v16  ;;  %v1702_v30 = vpop.f32.mrf.mxu1 }
 0xabf   :  { %v1711_v31 = vadd.f32 %v1702_v30, %v1364_v21  ;;  %v1760_v33 = vsel %vm178_vm1, %v1751_v18, 0.0 }
 0xac0   :  { %1761 = vadd.xlane.f32.xlu1 %v1760_v33 }
 0xac1   :  { %v1716_v26 = vadd.f32 %v1711_v31, %v5085_v32  ;;  %v5774_v31 = vld [vmem:[%s6748_s14] ss:$0 sm:$0xff] }
 0xac3   :  { %v5724_v62 = vadd.f32 %v4650_v4, %v1716_v26 }
 0xac5   :  { %v1738_v35 = vsel %vm178_vm1, %v5724_v62, 0.0  ;;  %v1752_v37 = vmul.f32 %v5724_v62, %v5724_v62 }
 0xac6   :  { %1739 = vadd.xlane.f32.xlu2 %v1738_v35  ;;  %v1705_v40 = vpop.f32.mrf.mxu1 }
 0xac7   :  { %v1712_v41 = vadd.f32 %v1705_v40, %v1365_v27  ;;  %v1763_v48 = vsel %vm178_vm1, %v1752_v37, 0.0 }
 0xac8   :  { %1764 = vadd.xlane.f32.xlu0 %v1763_v48 }
 0xac9   :  { %v1717_v32 = vadd.f32 %v1712_v41, %v5096_v39  ;;  %v1867_v39 = vld [vmem:[%s6750_s15 + $0x10] sm:$0xff] }
 0xaca   :  { %1901 = vmatpush.msra.mxu2 %v1867_v39 }
 0xacb   :  { %v5733_v50 = vadd.f32 %v4650_v4, %v1717_v32 }
 0xacc   :  { %1902 = vmatpush.msra.mxu2 %v1866_v56 }
 0xacd   :  { %v1741_v46 = vsel %vm191_vm2, %v5733_v50, 0.0  ;;  %v1753_v1 = vmul.f32 %v5733_v50, %v5733_v50 }
 0xace   :  { %1742 = vadd.xlane.f32.xlu1 %v1741_v46  ;;  %1903 = vmatpush.msra.mxu2 %v1865_v59 }
 0xacf   :  { %v1766_v28 = vsel %vm191_vm2, %v1753_v1, 0.0 }
 0xad0   :  { %1767 = vadd.xlane.f32.xlu2 %v1766_v28 }
 0xb21   :  { %v1731_v57 = vpop.xlane.xlu2 %1730 }
 0xb22   :  { %v1744_v60 = vmul.f32 %v1731_v57, %v5115_v54 }
 0xb23   :  { %v1756_v53 = vpop.xlane.xlu0 %1755 }
 0xb24   :  { %v1774_v7 = vmul.f32 %v1744_v60, %v1744_v60  ;;  %v1769_v25 = vmul.f32 %v1756_v53, %v5115_v54  ;;  %v1784_v20 = vsub.f32 %v5691_v8, %v1744_v60 }
 0xb26   :  { %v1779_v29 = vsub.f32 %v1769_v25, %v1774_v7 }
 0xb28   :  { %v1789_v36 = vadd.f32 1e-05, %v1779_v29 }
 0xb29   :  { %v1734_v63 = vpop.xlane.xlu1 %1733 }
 0xb2a   :  { %4767 = vrsqrt.f32 %v1789_v36  ;;  %v1745_v61 = vmul.f32 %v1734_v63, %v5115_v54  ;;  %vm1800_vm4 = vweird.f32 %v1789_v36 }
 0xb2b   :  { %v1759_v0 = vpop.xlane.xlu2 %1758 }
 0xb2c   :  { %v1775_v2 = vmul.f32 %v1745_v61, %v1745_v61  ;;  %v1770_v3 = vmul.f32 %v1759_v0, %v5115_v54  ;;  %v1785_v55 = vsub.f32 %v5702_v51, %v1745_v61 }
 0xb2e   :  { %v1780_v5 = vsub.f32 %v1770_v3, %v1775_v2 }
 0xb30   :  { %v4768_v4 = vpop.eup %4767  ;;  %v1790_v6 = vadd.f32 1e-05, %v1780_v5 }
 0xb31   :  { %v1795_v10 = vmul.f32 %v4768_v4, %v1789_v36  ;;  %v1737_v11 = vpop.xlane.xlu0 %1736  ;;  %vm1801_vm3 = vweird.f32 %v4768_v4 }
 0xb32   :  { %4769 = vrsqrt.f32 %v1790_v6  ;;  %v5757_v42 = vmul.f32 %v1737_v11, %v5115_v54  ;;  %vm1802_vm7 = vmor %vm1800_vm4, %vm1801_vm3  ;;  %vm1810_vm9 = vweird.f32 %v1790_v6 }
 0xb33   :  { %v1796_v49 = vmul.f32 %v4768_v4, %v1795_v10  ;;  %v1762_v9 = vpop.xlane.xlu1 %1761 }
 0xb34   :  { %v1776_v13 = vmul.f32 %v5757_v42, %v5757_v42  ;;  %v1771_v14 = vmul.f32 %v1762_v9, %v5115_v54 }
 0xb35   :  { %v1797_v15 = vmul.f32 0.5, %v1796_v49 }
 0xb36   :  { %v1781_v45 = vsub.f32 %v1771_v14, %v1776_v13 }
 0xb37   :  { %v1798_v24 = vsub.f32 1.5, %v1797_v15 }
 0xb38   :  { %v4770_v17 = vpop.eup %4769  ;;  %v1791_v12 = vadd.f32 1e-05, %v1781_v45 }
 0xb39   :  { %v1799_v19 = vmul.f32 %v4768_v4, %v1798_v24  ;;  %v1805_v22 = vmul.f32 %v4770_v17, %v1790_v6  ;;  %v1740_v23 = vpop.xlane.xlu2 %1739  ;;  %vm1811_vm8 = vweird.f32 %v4770_v17 }
 0xb3a   :  { %4771 = vrsqrt.f32 %v1791_v12  ;;  %v5769_v21 = vmul.f32 %v1740_v23, %v5115_v54  ;;  %vm1812_vm10 = vmor %vm1810_vm9, %vm1811_vm8  ;;  %vm1820_vm12 = vweird.f32 %v1791_v12 }
 0xb3b   :  { %v1803_v16 = vsel %vm1802_vm7, %v4768_v4, %v1799_v19  ;;  %v1806_v18 = vmul.f32 %v4770_v17, %v1805_v22  ;;  %v1765_v30 = vpop.xlane.xlu0 %1764  ;;  %v1786_v4 = vsub.f32 %v5713_v58, %v5757_v42 }
 0xb3c   :  { %v1844_v33 = vmul.f32 %v1803_v16, %v1784_v20  ;;  %v1777_v26 = vmul.f32 %v5769_v21, %v5769_v21  ;;  %v1772_v43 = vmul.f32 %v1765_v30, %v5115_v54  ;;  %v1787_v42 = vsub.f32 %v5724_v62, %v5769_v21 }
 0xb3d   :  { %v1807_v27 = vmul.f32 0.5, %v1806_v18 }
 0xb3e   :  { %v1852_v35 = vmul.f32 %v5766_v44, %v1844_v33  ;;  %v1782_v37 = vsub.f32 %v1772_v43, %v1777_v26 }
 0xb3f   :  { %v1808_v40 = vsub.f32 1.5, %v1807_v27  ;;  %v2110_v27 = vld [vmem:[%s6752_s17 + $0x78] sm:$0xff] }
 0xb40   :  { %v4772_v41 = vpop.eup %4771  ;;  %v1860_v48 = vadd.f32 %v5774_v31, %v1852_v35  ;;  %v1792_v32 = vadd.f32 1e-05, %v1782_v37  ;;  %2115 = vmatpush.msrb.mxu3 %v2110_v27  ;;  %v2109_v35 = vld [vmem:[%s6752_s17 + $0x70] sm:$0xff]  ;;  %v2108_v37 = vld [vmem:[%s6752_s17 + $0x68] sm:$0xff] }
 0xb41   :  { %v1809_v46 = vmul.f32 %v4770_v17, %v1808_v40  ;;  %v1815_v1 = vmul.f32 %v4772_v41, %v1791_v12  ;;  %v1743_v28 = vpop.xlane.xlu1 %1742  ;;  %vm1821_vm11 = vweird.f32 %v4772_v41  ;;  %v2105_v40 = vld [vmem:[%s6752_s17 + $0x50] sm:$0xff] }
 0xb42   :  { %4773 = vrsqrt.f32 %v1792_v32  ;;  %v1748_v39 = vmul.f32 %v1743_v28, %v5115_v54  ;;  %4368 = vmatmul.msk.f32.vlgmr.msra.gmra.mxu2 %vm178_vm1, %v1860_v48  ;;  %vm1822_vm14 = vmor %vm1820_vm12, %vm1821_vm11  ;;  %vm1830_vm3 = vweird.f32 %v1792_v32  ;;  %2116 = vmatpush.msrb.mxu3 %v2109_v35  ;;  %v2103_v48 = vld [vmem:[%s6752_s17 + $0x40] sm:$0xff]  ;;  %v2100_v28 = vld [vmem:[%s6752_s17 + $0x28] sm:$0xff] }
 0xb43   :  { %v1813_v56 = vsel %vm1812_vm10, %v4770_v17, %v1809_v46  ;;  %v1816_v59 = vmul.f32 %v4772_v41, %v1815_v1  ;;  %v1768_v57 = vpop.xlane.xlu2 %1767  ;;  %v2101_v46 = vld [vmem:[%s6752_s17 + $0x30] sm:$0xff]  ;;  %v5835_v1 = vld [vmem:[%s6749_s16] ss:$0 sm:$0xff] }
 0xb44   :  { %v1778_v60 = vmul.f32 %v1748_v39, %v1748_v39  ;;  %v1773_v53 = vmul.f32 %v1768_v57, %v5115_v54  ;;  %v1845_v7 = vmul.f32 %v1813_v56, %v1785_v55  ;;  %v1788_v30 = vsub.f32 %v5733_v50, %v1748_v39  ;;  %2117 = vmatpush.msrb.mxu3 %v2108_v37  ;;  %v2099_v55 = vld [vmem:[%s6752_s17 + $0x20] sm:$0xff] }
 0xb45   :  { %v1817_v25 = vmul.f32 0.5, %v1816_v59  ;;  %v2098_v59 = vld [vmem:[%s6752_s17 + $0x18] sm:$0xff] }
 0xb46   :  { %v1783_v29 = vsub.f32 %v1773_v53, %v1778_v60  ;;  %v1853_v36 = vmul.f32 %v5766_v44, %v1845_v7  ;;  %v2097_v60 = vld [vmem:[%s6752_s17 + $0x10] sm:$0xff]  ;;  %v2096_v7 = vld [vmem:[%s6752_s17 + $0x8] sm:$0xff] }
 0xb47   :  { %v1818_v63 = vsub.f32 1.5, %v1817_v25 }
 0xb48   :  { %v4774_v61 = vpop.eup %4773  ;;  %v1793_v0 = vadd.f32 1e-05, %v1783_v29  ;;  %v1861_v2 = vadd.f32 %v5774_v31, %v1853_v36  ;;  %v2095_v29 = vld [vmem:[%s6752_s17] sm:$0xff] }
 0xb49   :  { %v1819_v3 = vmul.f32 %v4772_v41, %v1818_v63  ;;  %v1825_v5 = vmul.f32 %v4774_v61, %v1792_v32  ;;  %vm1831_vm15 = vweird.f32 %v4774_v61  ;;  %v2102_v32 = vld [vmem:[%s6752_s17 + $0x38] sm:$0xff] }
 0xb4a   :  { %4775 = vrsqrt.f32 %v1793_v0  ;;  %4369 = vmatmul.msk.f32.gmra.mxu2 %vm178_vm1, %v1861_v2  ;;  %vm1832_vm4 = vmor %vm1830_vm3, %vm1831_vm15  ;;  %vm1840_vm8 = vweird.f32 %v1793_v0 }
 0xb4b   :  { %v1823_v6 = vsel %vm1822_vm14, %v4772_v41, %v1819_v3  ;;  %v1826_v10 = vmul.f32 %v4774_v61, %v1825_v5  ;;  %v2104_v41 = vld [vmem:[%s6752_s17 + $0x48] sm:$0xff] }
 0xb4c   :  { %v1846_v11 = vmul.f32 %v1823_v6, %v1786_v4 }
 0xb4d   :  { %v1827_v49 = vmul.f32 0.5, %v1826_v10 }
 0xb4e   :  { %v1854_v9 = vmul.f32 %v5766_v44, %v1846_v11 }
 0xb4f   :  { %v1828_v13 = vsub.f32 1.5, %v1827_v49 }
 0xb50   :  { %v4776_v14 = vpop.eup %4775  ;;  %v1862_v15 = vadd.f32 %v5774_v31, %v1854_v9 }
 0xb51   :  { %v1829_v45 = vmul.f32 %v4774_v61, %v1828_v13  ;;  %v1835_v24 = vmul.f32 %v4776_v14, %v1793_v0  ;;  %vm1841_vm7 = vweird.f32 %v4776_v14 }
 0xb52   :  { %4370 = vmatmul.msk.f32.gmra.mxu2 %vm178_vm1, %v1862_v15  ;;  %vm1842_vm9 = vmor %vm1840_vm8, %vm1841_vm7 }
 0xb53   :  { %v1833_v17 = vsel %vm1832_vm4, %v4774_v61, %v1829_v45  ;;  %v1836_v12 = vmul.f32 %v4776_v14, %v1835_v24 }
 0xb54   :  { %v1847_v19 = vmul.f32 %v1833_v17, %v1787_v42 }
 0xb55   :  { %v1837_v22 = vmul.f32 0.5, %v1836_v12 }
 0xb56   :  { %v1855_v23 = vmul.f32 %v5766_v44, %v1847_v19 }
 0xb57   :  { %v1838_v20 = vsub.f32 1.5, %v1837_v22 }
 0xb58   :  { %v1863_v16 = vadd.f32 %v5774_v31, %v1855_v23 }
 0xb59   :  { %v1839_v18 = vmul.f32 %v4776_v14, %v1838_v20 }
 0xb5a   :  { %4371 = vmatmul.msk.f32.gmra.mxu2 %vm178_vm1, %v1863_v16 }
 0xb5b   :  { %v1843_v21 = vsel %vm1842_vm9, %v4776_v14, %v1839_v18 }
 0xb5c   :  { %v1848_v33 = vmul.f32 %v1843_v21, %v1788_v30 }
 0xb5e   :  { %v1856_v26 = vmul.f32 %v5766_v44, %v1848_v33  ;;  %v2107_v44 = vld [vmem:[%s6752_s17 + $0x60] sm:$0xff] }
 0xb5f   :  { %2118 = vmatpush.msrb.mxu3 %v2107_v44 }
 0xb60   :  { %v1864_v43 = vadd.f32 %v5774_v31, %v1856_v26  ;;  %v2106_v31 = vld [vmem:[%s6752_s17 + $0x58] sm:$0xff] }
 0xb61   :  { %2119 = vmatpush.msrb.mxu3 %v2106_v31 }
 0xb62   :  { %4372 = vmatmul.msk.f32.gmra.mxu2 %vm178_vm1, %v1864_v43 }
 0xb63   :  { %2120 = vmatpush.msrb.mxu3 %v2105_v40 }
 0xb65   :  { %2121 = vmatpush.msrb.mxu3 %v2104_v41 }
 0xb67   :  { %2122 = vmatpush.msrb.mxu3 %v2103_v48 }
 0xb69   :  { %2123 = vmatpush.msrb.mxu3 %v2102_v32 }
 0xb6b   :  { %2124 = vmatpush.msrb.mxu3 %v2101_v46 }
 0xb6d   :  { %2125 = vmatpush.msrb.mxu3 %v2100_v28 }
 0xb6f   :  { %2126 = vmatpush.msrb.mxu3 %v2099_v55 }
 0xb71   :  { %2127 = vmatpush.msrb.mxu3 %v2098_v59 }
 0xb73   :  { %2128 = vmatpush.msrb.mxu3 %v2097_v60 }
 0xb75   :  { %2129 = vmatpush.msrb.mxu3 %v2096_v7 }
 0xb77   :  { %2130 = vmatpush.msrb.mxu3 %v2095_v29 }
 0xbc5   :  { %v1905_v39 = vpop.f32.mrf.mxu2 }
 0xbc6   :  { %v5844_v56 = vadd.f32 %v5835_v1, %v1905_v39 }
 0xbc8   :  { %v1925_v57 = vmul.f32 0.70710677, %v5844_v56 }
 0xbca   :  { %v4373_v53 = vclamps-f32 %v1925_v57, 4.0 }
 0xbcc   :  { %v1940_v25 = vmul.f32 %v4373_v53, %v4373_v53 }
 0xbcd   :  { %v1908_v36 = vpop.f32.mrf.mxu2 }
 0xbce   :  { %v1945_v63 = vmul.f32 %v1940_v25, %v1940_v25  ;;  %v1965_v61 = vmul.f32 -5.6925062e-05, %v1940_v25  ;;  %v2030_v0 = vmul.f32 -0.00021337405, %v1940_v25  ;;  %v5860_v2 = vadd.f32 %v5835_v1, %v1908_v36 }
 0xbcf   :  { %v1975_v3 = vmul.f32 2.7706815e-08, %v1940_v25  ;;  %v2020_v4 = vmul.f32 -0.0073733293, %v1940_v25  ;;  %v1955_v15 = vmul.f32 -0.0029546, %v1940_v25 }
 0xbd0   :  { %v2035_v5 = vadd.f32 -0.001682827, %v2030_v0  ;;  %v2040_v6 = vmul.f32 -1.45660715e-05, %v1945_v63  ;;  %v1926_v10 = vmul.f32 0.70710677, %v5860_v2  ;;  %v1950_v18 = vmul.f32 %v1945_v63, %v1945_v63 }
 0xbd1   :  { %v1970_v11 = vadd.f32 -0.00073499064, %v1965_v61  ;;  %v1980_v49 = vadd.f32 -2.101024e-06, %v1975_v3  ;;  %v1985_v9 = vmul.f32 -2.7261424e-10, %v1945_v63 }
 0xbd2   :  { %v2045_v13 = vadd.f32 %v2040_v6, %v2035_v5  ;;  %v5863_v14 = vclamps-f32 %v1926_v10, 4.0  ;;  %v2025_v24 = vadd.f32 -0.014264739, %v2020_v4  ;;  %v1960_v30 = vadd.f32 -0.016096033, %v1955_v15 }
 0xbd3   :  { %v1990_v19 = vadd.f32 %v1985_v9, %v1980_v49  ;;  %v2000_v22 = vmul.f32 %v1970_v11, %v1945_v63 }
 0xbd4   :  { %v2050_v42 = vmul.f32 %v2045_v13, %v1945_v63  ;;  %v1941_v17 = vmul.f32 %v5863_v14, %v5863_v14 }
 0xbd5   :  { %v1911_v45 = vpop.f32.mrf.mxu2  ;;  %v1995_v26 = vmul.f32 %v1990_v19, %v1950_v18  ;;  %v2005_v43 = vadd.f32 %v2000_v22, %v1960_v30  ;;  %v1920_v22 = vmul.f32 0.5, %v5844_v56 }
 0xbd6   :  { %v5868_v12 = vadd.f32 %v5835_v1, %v1911_v45  ;;  %v2055_v23 = vadd.f32 %v2050_v42, %v2025_v24  ;;  %v1946_v20 = vmul.f32 %v1941_v17, %v1941_v17  ;;  %v1966_v21 = vmul.f32 -5.6925062e-05, %v1941_v17 }
 0xbd7   :  { %v1976_v33 = vmul.f32 2.7706815e-08, %v1941_v17  ;;  %v2031_v27 = vmul.f32 -0.00021337405, %v1941_v17  ;;  %v2021_v40 = vmul.f32 -0.0073733293, %v1941_v17  ;;  %v2010_v55 = vadd.f32 %v2005_v43, %v1995_v26 }
 0xbd8   :  { %v1927_v16 = vmul.f32 0.70710677, %v5868_v12  ;;  %4777 = vrcp.f32 %v2055_v23  ;;  %v2041_v35 = vmul.f32 -1.45660715e-05, %v1946_v20  ;;  %v1971_v48 = vadd.f32 -0.00073499064, %v1966_v21 }
 0xbd9   :  { %v2036_v41 = vadd.f32 -0.001682827, %v2031_v27  ;;  %v1981_v32 = vadd.f32 -2.101024e-06, %v1976_v33  ;;  %v1986_v46 = vmul.f32 -2.7261424e-10, %v1946_v20  ;;  %v2015_v3 = vmul.f32 %v4373_v53, %v2010_v55 }
 0xbda   :  { %v5871_v37 = vclamps-f32 %v1927_v16, 4.0  ;;  %v1956_v60 = vmul.f32 -0.0029546, %v1941_v17  ;;  %v2026_v25 = vadd.f32 -0.014264739, %v2021_v40  ;;  %v2001_v61 = vmul.f32 %v1971_v48, %v1946_v20 }
 0xbdb   :  { %v2046_v59 = vadd.f32 %v2041_v35, %v2036_v41  ;;  %v1991_v63 = vadd.f32 %v1986_v46, %v1981_v32  ;;  %v1951_v6 = vmul.f32 %v1946_v20, %v1946_v20 }
 0xbdc   :  { %v1942_v7 = vmul.f32 %v5871_v37, %v5871_v37  ;;  %v1961_v10 = vadd.f32 -0.016096033, %v1956_v60 }
 0xbdd   :  { %v1914_v44 = vpop.f32.mrf.mxu2  ;;  %v2051_v29 = vmul.f32 %v2046_v59, %v1946_v20  ;;  %v1996_v45 = vmul.f32 %v1991_v63, %v1951_v6 }
 0xbde   :  { %v5874_v31 = vadd.f32 %v5835_v1, %v1914_v44  ;;  %v4778_v28 = vpop.eup %4777  ;;  %v1947_v11 = vmul.f32 %v1942_v7, %v1942_v7  ;;  %v2006_v24 = vadd.f32 %v2001_v61, %v1961_v10  ;;  %v2032_v42 = vmul.f32 -0.00021337405, %v1942_v7 }
 0xbdf   :  { %v2065_v57 = vmul.f32 %v4778_v28, %v2055_v23  ;;  %v2056_v5 = vadd.f32 %v2051_v29, %v2026_v25  ;;  %v1967_v17 = vmul.f32 -5.6925062e-05, %v1942_v7  ;;  %v1977_v19 = vmul.f32 2.7706815e-08, %v1942_v7 }
 0xbe0   :  { %v1928_v39 = vmul.f32 0.70710677, %v5874_v31  ;;  %v2022_v20 = vmul.f32 -0.0073733293, %v1942_v7  ;;  %v2042_v16 = vmul.f32 -1.45660715e-05, %v1947_v11  ;;  %v1952_v46 = vmul.f32 %v1947_v11, %v1947_v11 }
 0xbe1   :  { %v2070_v36 = vsub.f32 2.0, %v2065_v57  ;;  %4779 = vrcp.f32 %v2056_v5  ;;  %v1957_v33 = vmul.f32 -0.0029546, %v1942_v7  ;;  %v2037_v26 = vadd.f32 -0.001682827, %v2032_v42 }
 0xbe2   :  { %v5879_v0 = vclamps-f32 %v1928_v39, 4.0  ;;  %v1982_v27 = vadd.f32 -2.101024e-06, %v1977_v19  ;;  %v1987_v35 = vmul.f32 -2.7261424e-10, %v1947_v11 }
 0xbe3   :  { %v2075_v4 = vmul.f32 %v4778_v28, %v2070_v36  ;;  %v1972_v41 = vadd.f32 -0.00073499064, %v1967_v17  ;;  %v2027_v48 = vadd.f32 -0.014264739, %v2022_v20  ;;  %v2047_v32 = vadd.f32 %v2042_v16, %v2037_v26 }
 0xbe4   :  { %v1943_v9 = vmul.f32 %v5879_v0, %v5879_v0  ;;  %v1962_v29 = vadd.f32 -0.016096033, %v1957_v33  ;;  %v1992_v36 = vadd.f32 %v1987_v35, %v1982_v27 }
 0xbe5   :  { %v1917_v49 = vpop.f32.mrf.mxu2  ;;  %v2080_v15 = vmul.f32 %v2075_v4, %v2015_v3  ;;  %v2052_v57 = vmul.f32 %v2047_v32, %v1947_v11  ;;  %v2002_v61 = vmul.f32 %v1972_v41, %v1947_v11 }
 0xbe6   :  { %v5884_v13 = vadd.f32 %v5835_v1, %v1917_v49  ;;  %v1948_v18 = vmul.f32 %v1943_v9, %v1943_v9  ;;  %v2011_v1 = vadd.f32 %v2006_v24, %v1996_v45  ;;  %v2033_v40 = vmul.f32 -0.00021337405, %v1943_v9 }
 0xbe7   :  { %v2085_v23 = vadd.f32 1.0, %v2080_v15  ;;  %v4780_v43 = vpop.eup %4779  ;;  %v1968_v28 = vmul.f32 -5.6925062e-05, %v1943_v9  ;;  %v1978_v55 = vmul.f32 2.7706815e-08, %v1943_v9  ;;  %v2057_v6 = vadd.f32 %v2052_v57, %v2027_v48 }
 0xbe8   :  { %v1929_v53 = vmul.f32 0.70710677, %v5884_v13  ;;  %v2066_v56 = vmul.f32 %v4780_v43, %v2056_v5  ;;  %v2043_v39 = vmul.f32 -1.45660715e-05, %v1948_v18  ;;  %v2023_v60 = vmul.f32 -0.0073733293, %v1943_v9 }
 0xbe9   :  { %v2090_v21 = vmul.f32 %v2085_v23, %v1920_v22  ;;  %v2038_v7 = vadd.f32 -0.001682827, %v2033_v40  ;;  %v2016_v25 = vmul.f32 %v5863_v14, %v2011_v1  ;;  %v1958_v3 = vmul.f32 -0.0029546, %v1943_v9 }
 0xbea   :  { %v5888_v30 = vclamps-f32 %v1929_v53, 4.0  ;;  %v2071_v59 = vsub.f32 2.0, %v2066_v56  ;;  %v1973_v5 = vadd.f32 -0.00073499064, %v1968_v28  ;;  %v1983_v10 = vadd.f32 -2.101024e-06, %v1978_v55 }
 0xbeb   :  { %2131 = vmatmul.f32.vlgmr.msrb.gmra.mxu3 %v2090_v21  ;;  %v1988_v49 = vmul.f32 -2.7261424e-10, %v1948_v18  ;;  %v2048_v15 = vadd.f32 %v2043_v39, %v2038_v7  ;;  %4781 = vrcp.f32 %v2057_v6  ;;  %v2028_v24 = vadd.f32 -0.014264739, %v2023_v60 }
 0xbec   :  { %v1944_v44 = vmul.f32 %v5888_v30, %v5888_v30  ;;  %v2076_v4 = vmul.f32 %v4780_v43, %v2071_v59  ;;  %v1921_v14 = vmul.f32 0.5, %v5860_v2  ;;  %v1997_v9 = vmul.f32 %v1992_v36, %v1952_v46 }
 0xbed   :  { %v2053_v53 = vmul.f32 %v2048_v15, %v1948_v18  ;;  %v2007_v16 = vadd.f32 %v2002_v61, %v1962_v29  ;;  %v1993_v1 = vadd.f32 %v1988_v49, %v1983_v10  ;;  %v2003_v33 = vmul.f32 %v1973_v5, %v1948_v18 }
 0xbee   :  { %v1949_v63 = vmul.f32 %v1944_v44, %v1944_v44  ;;  %v2081_v45 = vmul.f32 %v2076_v4, %v2016_v25  ;;  %v2034_v42 = vmul.f32 -0.00021337405, %v1944_v44  ;;  %v1969_v17 = vmul.f32 -5.6925062e-05, %v1944_v44 }
 0xbef   :  { %v1979_v19 = vmul.f32 2.7706815e-08, %v1944_v44  ;;  %v2024_v20 = vmul.f32 -0.0073733293, %v1944_v44  ;;  %v2058_v21 = vadd.f32 %v2053_v53, %v2028_v24  ;;  %v1953_v56 = vmul.f32 %v1948_v18, %v1948_v18 }
 0xbf0   :  { %v2044_v22 = vmul.f32 -1.45660715e-05, %v1949_v63  ;;  %v2086_v23 = vadd.f32 1.0, %v2081_v45  ;;  %v2039_v11 = vadd.f32 -0.001682827, %v2034_v42  ;;  %v2012_v28 = vadd.f32 %v2007_v16, %v1997_v9 }
 0xbf1   :  { %v1974_v27 = vadd.f32 -0.00073499064, %v1969_v17  ;;  %v1984_v35 = vadd.f32 -2.101024e-06, %v1979_v19  ;;  %v1989_v40 = vmul.f32 -2.7261424e-10, %v1949_v63  ;;  %4783 = vrcp.f32 %v2058_v21  ;;  %v4782_v41 = vpop.eup %4781 }
 0xbf2   :  { %v2091_v26 = vmul.f32 %v2086_v23, %v1921_v14  ;;  %v2049_v43 = vadd.f32 %v2044_v22, %v2039_v11  ;;  %v1963_v48 = vadd.f32 -0.016096033, %v1958_v3  ;;  %v2029_v32 = vadd.f32 -0.014264739, %v2024_v20 }
 0xbf3   :  { %v1959_v55 = vmul.f32 -0.0029546, %v1944_v44  ;;  %v2067_v39 = vmul.f32 %v4782_v41, %v2057_v6  ;;  %v1998_v46 = vmul.f32 %v1993_v1, %v1953_v56  ;;  %v1994_v60 = vadd.f32 %v1989_v40, %v1984_v35  ;;  %v4654_v1 = vld [vmem:[%s6751_s18] ss:$0 sm:$0xff] }
 0xbf4   :  { %2134 = vmatmul.f32.gmra.mxu3 %v2091_v26  ;;  %v2054_v2 = vmul.f32 %v2049_v43, %v1949_v63  ;;  %v2008_v59 = vadd.f32 %v2003_v33, %v1963_v48  ;;  %v2004_v7 = vmul.f32 %v1974_v27, %v1949_v63  ;;  %v2017_v36 = vmul.f32 %v5871_v37, %v2012_v28 }
 0xbf5   :  { %v2072_v25 = vsub.f32 2.0, %v2067_v39  ;;  %v1954_v61 = vmul.f32 %v1949_v63, %v1949_v63  ;;  %v1964_v4 = vadd.f32 -0.016096033, %v1959_v55  ;;  %v1922_v6 = vmul.f32 0.5, %v5868_v12 }
 0xbf6   :  { %v2059_v57 = vadd.f32 %v2054_v2, %v2029_v32  ;;  %v2013_v3 = vadd.f32 %v2008_v59, %v1998_v46  ;;  %v1923_v23 = vmul.f32 0.5, %v5874_v31 }
 0xbf7   :  { %v4784_v29 = vpop.eup %4783  ;;  %v2077_v18 = vmul.f32 %v4782_v41, %v2072_v25  ;;  %v1999_v10 = vmul.f32 %v1994_v60, %v1954_v61  ;;  %v2009_v49 = vadd.f32 %v2004_v7, %v1964_v4 }
 0xbf8   :  { %4785 = vrcp.f32 %v2059_v57  ;;  %v2068_v5 = vmul.f32 %v4784_v29, %v2058_v21  ;;  %v2018_v42 = vmul.f32 %v5879_v0, %v2013_v3  ;;  %v1924_v21 = vmul.f32 0.5, %v5884_v13 }
 0xbf9   :  { %v2082_v15 = vmul.f32 %v2077_v18, %v2017_v36  ;;  %v2014_v19 = vadd.f32 %v2009_v49, %v1999_v10  ;;  %v4383_v49 = vld [vmem:[%s6771_s22 + $0x98] sm:$0xff] }
 0xbfa   :  { %v2073_v44 = vsub.f32 2.0, %v2068_v5  ;;  %v4393_v5 = vld [vmem:[%s6740_s7 + $0x98] sm:$0xff]  ;;  %2329 = vmatpush.msrb.mxu0 %v4383_v49 }
 0xbfb   :  { %v2087_v45 = vadd.f32 1.0, %v2082_v15  ;;  %v2019_v20 = vmul.f32 %v5888_v30, %v2014_v19  ;;  %2371 = vmatpush.msrb.mxu1 %v4393_v5  ;;  %v4403_v15 = vld [vmem:[%s6742_s9 + $0x98] sm:$0xff]  ;;  %v4391_v19 = vld [vmem:[%s6740_s7 + $0x88] sm:$0xff] }
 0xbfc   :  { %v2078_v17 = vmul.f32 %v4784_v29, %v2073_v44  ;;  %2413 = vmatpush.msrb.mxu2 %v4403_v15 }
 0xbfd   :  { %v2092_v53 = vmul.f32 %v2087_v45, %v1922_v6  ;;  %v4392_v6 = vld [vmem:[%s6740_s7 + $0x90] sm:$0xff] }
 0xbfe   :  { %v4786_v24 = vpop.eup %4785  ;;  %v2083_v37 = vmul.f32 %v2078_v17, %v2018_v42  ;;  %v4382_v45 = vld [vmem:[%s6771_s22 + $0x90] sm:$0xff]  ;;  %2372 = vmatpush.msrb.mxu1 %v4392_v6  ;;  %v4381_v17 = vld [vmem:[%s6771_s22 + $0x88] sm:$0xff] }
 0xbff   :  { %v2069_v22 = vmul.f32 %v4786_v24, %v2059_v57  ;;  %2137 = vmatmul.f32.gmra.mxu3 %v2092_v53  ;;  %2330 = vmatpush.msrb.mxu0 %v4382_v45  ;;  %v4401_v53 = vld [vmem:[%s6742_s9 + $0x88] sm:$0xff] }
 0xc00   :  { %v2088_v14 = vadd.f32 1.0, %v2083_v37  ;;  %2373 = vmatpush.msrb.mxu1 %v4391_v19  ;;  %v4390_v37 = vld [vmem:[%s6740_s7 + $0x80] sm:$0xff] }
 0xc01   :  { %v2074_v63 = vsub.f32 2.0, %v2069_v22  ;;  %2331 = vmatpush.msrb.mxu0 %v4381_v17  ;;  %v4380_v22 = vld [vmem:[%s6771_s22 + $0x80] sm:$0xff] }
 0xc02   :  { %v2093_v9 = vmul.f32 %v2088_v14, %v1923_v23  ;;  %2374 = vmatpush.msrb.mxu1 %v4390_v37  ;;  %v4430_v37 = vld [vmem:[%s6771_s22 + $0xb8] sm:$0xff] }
 0xc03   :  { %v2079_v11 = vmul.f32 %v4786_v24, %v2074_v63  ;;  %v4402_v24 = vld [vmem:[%s6742_s9 + $0x90] sm:$0xff]  ;;  %v4400_v63 = vld [vmem:[%s6742_s9 + $0x80] sm:$0xff]  ;;  %2332 = vmatpush.msrb.mxu0 %v4380_v22 }
 0xc04   :  { %2414 = vmatpush.msrb.mxu2 %v4402_v24  ;;  %2624 = vmatpush.msra.mxu1 %v4430_v37 }
 0xc05   :  { %v2084_v16 = vmul.f32 %v2079_v11, %v2019_v20 }
 0xc06   :  { %2415 = vmatpush.msrb.mxu2 %v4401_v53 }
 0xc07   :  { %2140 = vmatmul.f32.gmra.mxu3 %v2093_v9  ;;  %v2089_v12 = vadd.f32 1.0, %v2084_v16 }
 0xc08   :  { %2416 = vmatpush.msrb.mxu2 %v4400_v63  ;;  %v4440_v63 = vld [vmem:[%s6740_s7 + $0xb8] sm:$0xff] }
 0xc09   :  { %v2094_v0 = vmul.f32 %v2089_v12, %v1924_v21 }
 0xc0a   :  { %2666 = vmatpush.msra.mxu2 %v4440_v63  ;;  %v4659_v63 = vld [vmem:[%s6744_s10 + $0x4] ss:$0 sm:$0xff] }
 0xc0f   :  { %2143 = vmatmul.f32.gmra.mxu3 %v2094_v0 }
 0xc6e   :  { %v2132_v33 = vpop.f32.mrf.mxu3 }
 0xc6f   :  { %v2133_v26 = vadd.f32 %v4654_v1, %v2132_v33 }
 0xc71   :  { %v5904_v43 = vadd.f32 %v2133_v26, %v5691_v8 }
 0xc73   :  { %v2156_v31 = vsel %vm178_vm1, %v5904_v43, 0.0  ;;  %v2176_v30 = vmul.f32 %v5904_v43, %v5904_v43 }
 0xc74   :  { %2157 = vadd.xlane.f32.xlu0 %v2156_v31 }
 0xc75   :  { %v2181_v13 = vsel %vm178_vm1, %v2176_v30, 0.0 }
 0xc76   :  { %2182 = vadd.xlane.f32.xlu1 %v2181_v13  ;;  %v5987_v13 = vld [vmem:[%s6772_s24 + $0x1] ss:$0 sm:$0xff] }
 0xc77   :  { %v2135_v27 = vpop.f32.mrf.mxu3 }
 0xc78   :  { %v2136_v35 = vadd.f32 %v4654_v1, %v2135_v27 }
 0xc7a   :  { %v5912_v40 = vadd.f32 %v2136_v35, %v5702_v51 }
 0xc7c   :  { %v2159_v41 = vsel %vm178_vm1, %v5912_v40, 0.0  ;;  %v2177_v8 = vmul.f32 %v5912_v40, %v5912_v40 }
 0xc7d   :  { %2160 = vadd.xlane.f32.xlu2 %v2159_v41 }
 0xc7e   :  { %v2184_v56 = vsel %vm178_vm1, %v2177_v8, 0.0 }
 0xc7f   :  { %2185 = vadd.xlane.f32.xlu0 %v2184_v56  ;;  %v5995_v56 = vld [vmem:[%s6773_s27 + $0x1] ss:$0 sm:$0xff] }
 0xc82   :  { %v2138_v48 = vpop.f32.mrf.mxu3 }
 0xc83   :  { %v2139_v32 = vadd.f32 %v4654_v1, %v2138_v48 }
 0xc85   :  { %v5920_v2 = vadd.f32 %v2139_v32, %v5713_v58 }
 0xc87   :  { %v2162_v28 = vsel %vm178_vm1, %v5920_v2, 0.0  ;;  %v2178_v51 = vmul.f32 %v5920_v2, %v5920_v2 }
 0xc88   :  { %2163 = vadd.xlane.f32.xlu1 %v2162_v28 }
 0xc89   :  { %v2187_v55 = vsel %vm178_vm1, %v2178_v51, 0.0 }
 0xc8a   :  { %v2141_v39 = vpop.f32.mrf.mxu3  ;;  %2188 = vadd.xlane.f32.xlu2 %v2187_v55 }
 0xc8b   :  { %v2142_v46 = vadd.f32 %v4654_v1, %v2141_v39 }
 0xc8d   :  { %v5928_v59 = vadd.f32 %v2142_v46, %v5724_v62 }
 0xc8f   :  { %v2165_v57 = vsel %vm178_vm1, %v5928_v59, 0.0  ;;  %v2179_v58 = vmul.f32 %v5928_v59, %v5928_v59 }
 0xc90   :  { %2166 = vadd.xlane.f32.xlu0 %v2165_v57 }
 0xc91   :  { %v2190_v60 = vsel %vm178_vm1, %v2179_v58, 0.0 }
 0xc92   :  { %2191 = vadd.xlane.f32.xlu1 %v2190_v60  ;;  %v2144_v7 = vpop.f32.mrf.mxu3 }
 0xc93   :  { %v2145_v25 = vadd.f32 %v4654_v1, %v2144_v7 }
 0xc95   :  { %v5936_v29 = vadd.f32 %v2145_v25, %v5733_v50 }
 0xc97   :  { %v2168_v36 = vsel %vm191_vm2, %v5936_v29, 0.0  ;;  %v2180_v62 = vmul.f32 %v5936_v29, %v5936_v29 }
 0xc98   :  { %2169 = vadd.xlane.f32.xlu2 %v2168_v36 }
 0xc99   :  { %v2193_v61 = vsel %vm191_vm2, %v2180_v62, 0.0 }
 0xc9a   :  { %2194 = vadd.xlane.f32.xlu0 %v2193_v61 }
 0xce7   :  { %v2158_v4 = vpop.xlane.xlu0 %2157 }
 0xce8   :  { %v2171_v18 = vmul.f32 %v2158_v4, %v5115_v54 }
 0xce9   :  { %v2183_v3 = vpop.xlane.xlu1 %2182 }
 0xcea   :  { %v2201_v50 = vmul.f32 %v2171_v18, %v2171_v18  ;;  %v2196_v10 = vmul.f32 %v2183_v3, %v5115_v54  ;;  %v2211_v30 = vsub.f32 %v5904_v43, %v2171_v18 }
 0xcec   :  { %v2206_v44 = vsub.f32 %v2196_v10, %v2201_v50 }
 0xcee   :  { %v2216_v42 = vadd.f32 1e-05, %v2206_v44 }
 0xcf0   :  { %4787 = vrsqrt.f32 %v2216_v42  ;;  %v2161_v14 = vpop.xlane.xlu2 %2160  ;;  %vm2227_vm11 = vweird.f32 %v2216_v42 }
 0xcf1   :  { %v2172_v23 = vmul.f32 %v2161_v14, %v5115_v54 }
 0xcf2   :  { %v2186_v20 = vpop.xlane.xlu0 %2185 }
 0xcf3   :  { %v2202_v9 = vmul.f32 %v2172_v23, %v2172_v23  ;;  %v2197_v16 = vmul.f32 %v2186_v20, %v5115_v54  ;;  %v2212_v5 = vsub.f32 %v5912_v40, %v2172_v23  ;;  %v4429_v23 = vld [vmem:[%s6771_s22 + $0xb0] sm:$0xff] }
 0xcf4   :  { %2625 = vmatpush.msra.mxu1 %v4429_v23 }
 0xcf5   :  { %v2207_v21 = vsub.f32 %v2197_v16, %v2202_v9  ;;  %v4428_v16 = vld [vmem:[%s6771_s22 + $0xa8] sm:$0xff] }
 0xcf6   :  { %v4788_v11 = vpop.eup %4787  ;;  %2626 = vmatpush.msra.mxu1 %v4428_v16 }
 0xcf7   :  { %v2222_v12 = vmul.f32 %v4788_v11, %v2216_v42  ;;  %v2217_v1 = vadd.f32 1e-05, %v2207_v21  ;;  %vm2228_vm10 = vweird.f32 %v4788_v11 }
 0xcf8   :  { %vm2229_vm12 = vmor %vm2227_vm11, %vm2228_vm10 }
 0xcf9   :  { %v2223_v0 = vmul.f32 %v4788_v11, %v2222_v12  ;;  %4789 = vrsqrt.f32 %v2217_v1  ;;  %vm2237_vm15 = vweird.f32 %v2217_v1 }
 0xcfb   :  { %v2224_v33 = vmul.f32 0.5, %v2223_v0  ;;  %v2164_v27 = vpop.xlane.xlu1 %2163  ;;  %v4438_v0 = vld [vmem:[%s6740_s7 + $0xa8] sm:$0xff] }
 0xcfc   :  { %v5990_v41 = vmul.f32 %v2164_v27, %v5115_v54 }
 0xcfd   :  { %v2225_v26 = vsub.f32 1.5, %v2224_v33  ;;  %v2189_v32 = vpop.xlane.xlu2 %2188 }
 0xcfe   :  { %v2203_v51 = vmul.f32 %v5990_v41, %v5990_v41  ;;  %v2198_v39 = vmul.f32 %v2189_v32, %v5115_v54  ;;  %v2213_v27 = vsub.f32 %v5920_v2, %v5990_v41 }
 0xcff   :  { %v2226_v31 = vmul.f32 %v4788_v11, %v2225_v26  ;;  %v4790_v8 = vpop.eup %4789  ;;  %v4427_v26 = vld [vmem:[%s6771_s22 + $0xa0] sm:$0xff] }
 0xd00   :  { %v2232_v28 = vmul.f32 %v4790_v8, %v2217_v1  ;;  %v2208_v58 = vsub.f32 %v2198_v39, %v2203_v51  ;;  %vm2238_vm14 = vweird.f32 %v4790_v8  ;;  %2627 = vmatpush.msra.mxu1 %v4427_v26 }
 0xd01   :  { %v2230_v35 = vsel %vm2229_vm12, %v4788_v11, %v2226_v31  ;;  %vm2239_vm3 = vmor %vm2237_vm15, %vm2238_vm14  ;;  %v4439_v11 = vld [vmem:[%s6740_s7 + $0xb0] sm:$0xff] }
 0xd02   :  { %v2271_v48 = vmul.f32 %v2230_v35, %v2211_v30  ;;  %v2233_v46 = vmul.f32 %v4790_v8, %v2232_v28  ;;  %v2218_v7 = vadd.f32 1e-05, %v2208_v58  ;;  %2667 = vmatpush.msra.mxu2 %v4439_v11  ;;  %v4437_v30 = vld [vmem:[%s6740_s7 + $0xa0] sm:$0xff] }
 0xd03   :  { %v2167_v25 = vpop.xlane.xlu0 %2166 }
 0xd04   :  { %v2279_v55 = vmul.f32 %v5987_v13, %v2271_v48  ;;  %v2234_v60 = vmul.f32 0.5, %v2233_v46  ;;  %v6009_v62 = vmul.f32 %v2167_v25, %v5115_v54  ;;  %4791 = vrsqrt.f32 %v2218_v7  ;;  %2668 = vmatpush.msra.mxu2 %v4438_v0 }
 0xd05   :  { %v2192_v61 = vpop.xlane.xlu1 %2191  ;;  %vm2247_vm7 = vweird.f32 %v2218_v7 }
 0xd06   :  { %v6002_v57 = vadd.f32 %v5995_v56, %v2279_v55  ;;  %v2235_v36 = vsub.f32 1.5, %v2234_v60  ;;  %v2204_v18 = vmul.f32 %v6009_v62, %v6009_v62  ;;  %v2199_v3 = vmul.f32 %v2192_v61, %v5115_v54  ;;  %2669 = vmatpush.msra.mxu2 %v4437_v30 }
 0xd07   :  { %v2214_v41 = vsub.f32 %v5928_v59, %v6009_v62 }
 0xd08   :  { %4385 = vmatmul.msk.f32.vlgmr.msrb.gmra.mxu0 %vm178_vm1, %v6002_v57  ;;  %4395 = vmatmul.msk.f32.vlgmr.msrb.gmra.mxu1 %vm178_vm1, %v6002_v57  ;;  %v2236_v4 = vmul.f32 %v4790_v8, %v2235_v36  ;;  %v2209_v10 = vsub.f32 %v2199_v3, %v2204_v18 }
 0xd09   :  { %4405 = vmatmul.msk.f32.vlgmr.msrb.gmra.mxu2 %vm178_vm1, %v6002_v57 }
 0xd0a   :  { %v2240_v50 = vsel %vm2239_vm3, %v4790_v8, %v2236_v4  ;;  %v2219_v15 = vadd.f32 1e-05, %v2209_v10  ;;  %v4792_v44 = vpop.eup %4791 }
 0xd0b   :  { %v2272_v49 = vmul.f32 %v2240_v50, %v2212_v5  ;;  %v2170_v45 = vpop.xlane.xlu2 %2169  ;;  %v2242_v24 = vmul.f32 %v4792_v44, %v2218_v7  ;;  %vm2248_vm4 = vweird.f32 %v4792_v44 }
 0xd0c   :  { %4793 = vrsqrt.f32 %v2219_v15  ;;  %v6022_v17 = vmul.f32 %v2170_v45, %v5115_v54  ;;  %vm2249_vm8 = vmor %vm2247_vm7, %vm2248_vm4  ;;  %vm2257_vm10 = vweird.f32 %v2219_v15 }
 0xd0d   :  { %v2280_v6 = vmul.f32 %v5987_v13, %v2272_v49  ;;  %v2195_v19 = vpop.xlane.xlu0 %2194  ;;  %v2243_v53 = vmul.f32 %v4792_v44, %v2242_v24 }
 0xd0e   :  { %v2200_v22 = vmul.f32 %v2195_v19, %v5115_v54  ;;  %v2205_v14 = vmul.f32 %v6022_v17, %v6022_v17  ;;  %v2215_v3 = vsub.f32 %v5936_v29, %v6022_v17  ;;  %v4658_v17 = vld [vmem:[%s6743_s8 + $0x4] ss:$0 sm:$0xff] }
 0xd0f   :  { %v6019_v42 = vadd.f32 %v5995_v56, %v2280_v6  ;;  %v2244_v20 = vmul.f32 0.5, %v2243_v53 }
 0xd10   :  { %v2210_v9 = vsub.f32 %v2200_v22, %v2205_v14 }
 0xd11   :  { %4386 = vmatmul.msk.f32.gmra.mxu0 %vm178_vm1, %v6019_v42  ;;  %4396 = vmatmul.msk.f32.gmra.mxu1 %vm178_vm1, %v6019_v42  ;;  %v2245_v21 = vsub.f32 1.5, %v2244_v20 }
 0xd12   :  { %4406 = vmatmul.msk.f32.gmra.mxu2 %vm178_vm1, %v6019_v42  ;;  %v4794_v12 = vpop.eup %4793  ;;  %v2220_v33 = vadd.f32 1e-05, %v2210_v9 }
 0xd13   :  { %v2252_v1 = vmul.f32 %v4794_v12, %v2219_v15  ;;  %v2246_v31 = vmul.f32 %v4792_v44, %v2245_v21  ;;  %vm2258_vm9 = vweird.f32 %v4794_v12 }
 0xd14   :  { %4795 = vrsqrt.f32 %v2220_v33  ;;  %vm2259_vm11 = vmor %vm2257_vm10, %vm2258_vm9  ;;  %vm2267_vm14 = vweird.f32 %v2220_v33 }
 0xd15   :  { %v2253_v35 = vmul.f32 %v4794_v12, %v2252_v1  ;;  %v2250_v8 = vsel %vm2249_vm8, %v4792_v44, %v2246_v31  ;;  %v4657_v1 = vld [vmem:[%s6741_s6 + $0x4] ss:$0 sm:$0xff] }
 0xd16   :  { %v2273_v48 = vmul.f32 %v2250_v8, %v2213_v27  ;;  %v4450_v27 = vld [vmem:[%s6742_s9 + $0xb8] sm:$0xff] }
 0xd17   :  { %v2254_v32 = vmul.f32 0.5, %v2253_v35  ;;  %v4449_v35 = vld [vmem:[%s6742_s9 + $0xb0] sm:$0xff] }
 0xd18   :  { %v2281_v28 = vmul.f32 %v5987_v13, %v2273_v48  ;;  %v4448_v48 = vld [vmem:[%s6742_s9 + $0xa8] sm:$0xff] }
 0xd19   :  { %v2255_v51 = vsub.f32 1.5, %v2254_v32  ;;  %v4447_v32 = vld [vmem:[%s6742_s9 + $0xa0] sm:$0xff] }
 0xd1a   :  { %v4796_v55 = vpop.eup %4795  ;;  %v6061_v39 = vadd.f32 %v5995_v56, %v2281_v28 }
 0xd1b   :  { %v2256_v46 = vmul.f32 %v4794_v12, %v2255_v51  ;;  %v2262_v58 = vmul.f32 %v4796_v55, %v2220_v33  ;;  %vm2268_vm12 = vweird.f32 %v4796_v55 }
 0xd1c   :  { %4387 = vmatmul.msk.f32.gmra.mxu0 %vm178_vm1, %v6061_v39  ;;  %4397 = vmatmul.msk.f32.gmra.mxu1 %vm178_vm1, %v6061_v39  ;;  %vm2269_vm15 = vmor %vm2267_vm14, %vm2268_vm12 }
 0xd1d   :  { %v2260_v60 = vsel %vm2259_vm11, %v4794_v12, %v2256_v46  ;;  %v2263_v25 = vmul.f32 %v4796_v55, %v2262_v58  ;;  %4407 = vmatmul.msk.f32.gmra.mxu2 %vm178_vm1, %v6061_v39 }
 0xd1e   :  { %v2274_v7 = vmul.f32 %v2260_v60, %v2214_v41 }
 0xd1f   :  { %v2264_v61 = vmul.f32 0.5, %v2263_v25 }
 0xd20   :  { %v2282_v36 = vmul.f32 %v5987_v13, %v2274_v7  ;;  %v4661_v7 = vld [vmem:[%s6743_s8 + $0x5] ss:$0 sm:$0xff] }
 0xd21   :  { %v2265_v62 = vsub.f32 1.5, %v2264_v61 }
 0xd22   :  { %v6073_v4 = vadd.f32 %v5995_v56, %v2282_v36 }
 0xd23   :  { %v2266_v18 = vmul.f32 %v4796_v55, %v2265_v62 }
 0xd24   :  { %4388 = vmatmul.msk.f32.gmra.mxu0 %vm178_vm1, %v6073_v4  ;;  %4398 = vmatmul.msk.f32.gmra.mxu1 %vm178_vm1, %v6073_v4 }
 0xd25   :  { %v2270_v5 = vsel %vm2269_vm15, %v4796_v55, %v2266_v18  ;;  %4408 = vmatmul.msk.f32.gmra.mxu2 %vm178_vm1, %v6073_v4 }
 0xd26   :  { %v2275_v50 = vmul.f32 %v2270_v5, %v2215_v3 }
 0xd28   :  { %v2283_v10 = vmul.f32 %v5987_v13, %v2275_v50 }
 0xd2a   :  { %v6085_v49 = vadd.f32 %v5995_v56, %v2283_v10 }
 0xd2c   :  { %4389 = vmatmul.msk.f32.gmra.mxu0 %vm178_vm1, %v6085_v49  ;;  %4399 = vmatmul.msk.f32.gmra.mxu1 %vm178_vm1, %v6085_v49 }
 0xd2d   :  { %4409 = vmatmul.msk.f32.gmra.mxu2 %vm178_vm1, %v6085_v49 }
 0xd34   :  { %4432 = vmatmul.msk.f32.vlgmr.msra.gmra.mxu1 %vm178_vm1, %v6002_v57 }
 0xd35   :  { %4442 = vmatmul.msk.f32.vlgmr.msra.gmra.mxu2 %vm178_vm1, %v6002_v57 }
 0xd3c   :  { %4433 = vmatmul.msk.f32.gmra.mxu1 %vm178_vm1, %v6019_v42 }
 0xd3d   :  { %4443 = vmatmul.msk.f32.gmra.mxu2 %vm178_vm1, %v6019_v42 }
 0xd44   :  { %4434 = vmatmul.msk.f32.gmra.mxu1 %vm178_vm1, %v6061_v39 }
 0xd45   :  { %4444 = vmatmul.msk.f32.gmra.mxu2 %vm178_vm1, %v6061_v39 }
 0xd4c   :  { %4435 = vmatmul.msk.f32.gmra.mxu1 %vm178_vm1, %v6073_v4 }
 0xd4d   :  { %4445 = vmatmul.msk.f32.gmra.mxu2 %vm178_vm1, %v6073_v4 }
 0xd54   :  { %4436 = vmatmul.msk.f32.gmra.mxu1 %vm178_vm1, %v6085_v49 }
 0xd55   :  { %4446 = vmatmul.msk.f32.gmra.mxu2 %vm178_vm1, %v6085_v49 }
 0xd85   :  { %v2376_v13 = vpop.f32.mrf.mxu1  ;;  %v2334_v20 = vpop.f32.mrf.mxu0 }
 0xd86   :  { %v2377_v26 = vadd.f32 %v4658_v17, %v2376_v13  ;;  %v2335_v30 = vadd.f32 %v4657_v1, %v2334_v20 }
 0xd8c   :  { %v2418_v56 = vpop.f32.mrf.mxu2 }
 0xd8d   :  { %v2419_v33 = vadd.f32 %v4659_v63, %v2418_v56 }
 0xd8e   :  { %v2379_v15 = vpop.f32.mrf.mxu1  ;;  %v2337_v31 = vpop.f32.mrf.mxu0 }
 0xd8f   :  { %v2380_v12 = vadd.f32 %v4658_v17, %v2379_v15  ;;  %v2338_v28 = vadd.f32 %v4657_v1, %v2337_v31 }
 0xd95   :  { %v2421_v44 = vpop.f32.mrf.mxu2 }
 0xd96   :  { %v2422_v21 = vadd.f32 %v4659_v63, %v2421_v44 }
 0xd99   :  { %v2382_v6 = vpop.f32.mrf.mxu1  ;;  %v2340_v51 = vpop.f32.mrf.mxu0 }
 0xd9a   :  { %v2383_v11 = vadd.f32 %v4658_v17, %v2382_v6  ;;  %v2341_v46 = vadd.f32 %v4657_v1, %v2340_v51 }
 0xda0   :  { %v2424_v45 = vpop.f32.mrf.mxu2 }
 0xda1   :  { %v2385_v24 = vpop.f32.mrf.mxu1  ;;  %v2425_v16 = vadd.f32 %v4659_v63, %v2424_v45  ;;  %v2343_v41 = vpop.f32.mrf.mxu0 }
 0xda2   :  { %v2386_v37 = vadd.f32 %v4658_v17, %v2385_v24  ;;  %v2344_v60 = vadd.f32 %v4657_v1, %v2343_v41 }
 0xda8   :  { %v2427_v19 = vpop.f32.mrf.mxu2 }
 0xda9   :  { %v2388_v53 = vpop.f32.mrf.mxu1  ;;  %v2428_v9 = vadd.f32 %v4659_v63, %v2427_v19  ;;  %v2346_v61 = vpop.f32.mrf.mxu0 }
 0xdaa   :  { %v2389_v22 = vadd.f32 %v4658_v17, %v2388_v53  ;;  %v2347_v62 = vadd.f32 %v4657_v1, %v2346_v61 }
 0xdac   :  { %4410 = vmatpush.xpose.msk.msra.mxu3 %vm458_vm5, %v2389_v22 }
 0xdb0   :  { %v2430_v14 = vpop.f32.mrf.mxu2  ;;  %4411 = vmatpush.xpose.msk.msra.mxu3 %vm458_vm5, %v2386_v37 }
 0xdb1   :  { %v2431_v23 = vadd.f32 %v4659_v63, %v2430_v14 }
 0xdb3   :  { %4420 = vmatpush.msk.msra.mxu0 %vm593_vm6, %v2431_v23 }
 0xdb4   :  { %4412 = vmatpush.xpose.msk.msra.mxu3 %vm458_vm5, %v2383_v11 }
 0xdb5   :  { %2580 = vmatpush.msra.mxu0 %v2428_v9 }
 0xdb7   :  { %2581 = vmatpush.msra.mxu0 %v2425_v16  ;;  %v4662_v16 = vld [vmem:[%s6744_s10 + $0x5] ss:$0 sm:$0xff] }
 0xdb8   :  { %v2671_v0 = vpop.f32.mrf.mxu2  ;;  %4413 = vmatpush.xpose.msk.msra.mxu3 %vm458_vm5, %v2380_v12 }
 0xdb9   :  { %2582 = vmatpush.msra.mxu0 %v2422_v21  ;;  %v2672_v50 = vadd.f32 %v4661_v7, %v2671_v0 }
 0xdbb   :  { %2583 = vmatpush.msra.mxu0 %v2419_v33 }
 0xdbc   :  { %4414 = vmatpush.xpose.msk.msra.mxu3 %vm458_vm5, %v2377_v26 }
 0xdbf   :  { %4415 = vmatmul.msk.f32.vlgmr.msra.gmra.mxu3 %vm458_vm5, %v2335_v30 }
 0xdc0   :  { %v2674_v8 = vpop.f32.mrf.mxu2  ;;  %2708 = vmatpush.msrb.mxu3 %v4450_v27 }
 0xdc1   :  { %v2675_v5 = vadd.f32 %v4661_v7, %v2674_v8 }
 0xdc2   :  { %2709 = vmatpush.msrb.mxu3 %v4449_v35 }
 0xdc4   :  { %2710 = vmatpush.msrb.mxu3 %v4448_v48 }
 0xdc6   :  { %2711 = vmatpush.msrb.mxu3 %v4447_v32 }
 0xdc7   :  { %4416 = vmatmul.msk.f32.gmra.mxu3 %vm458_vm5, %v2338_v28 }
 0xdc8   :  { %v2677_v55 = vpop.f32.mrf.mxu2 }
 0xdc9   :  { %v2678_v3 = vadd.f32 %v4661_v7, %v2677_v55 }
 0xdcf   :  { %4417 = vmatmul.msk.f32.gmra.mxu3 %vm458_vm5, %v2341_v46 }
 0xdd0   :  { %v2680_v58 = vpop.f32.mrf.mxu2 }
 0xdd1   :  { %v2681_v18 = vadd.f32 %v4661_v7, %v2680_v58 }
 0xdd7   :  { %4418 = vmatmul.msk.f32.gmra.mxu3 %vm458_vm5, %v2344_v60 }
 0xdd8   :  { %v2683_v25 = vpop.f32.mrf.mxu2 }
 0xdd9   :  { %v2684_v36 = vadd.f32 %v4661_v7, %v2683_v25 }
 0xddb   :  { %4457 = vmatpush.xpose.msk.msrb.mxu0 %vm458_vm5, %v2684_v36 }
 0xddf   :  { %4458 = vmatpush.xpose.msk.msrb.mxu0 %vm458_vm5, %v2681_v18  ;;  %4419 = vmatmul.msk.f32.gmra.mxu3 %vm458_vm5, %v2347_v62 }
 0xde3   :  { %4459 = vmatpush.xpose.msk.msrb.mxu0 %vm458_vm5, %v2678_v3 }
 0xde7   :  { %4460 = vmatpush.xpose.msk.msrb.mxu0 %vm458_vm5, %v2675_v5  ;;  %4452 = vmatmul.msk.f32.vlgmr.msrb.gmra.mxu3 %vm178_vm1, %v6002_v57 }
 0xdeb   :  { %4461 = vmatpush.xpose.msk.msrb.mxu0 %vm458_vm5, %v2672_v50 }
 0xdef   :  { %4453 = vmatmul.msk.f32.gmra.mxu3 %vm178_vm1, %v6019_v42 }
 0xdf7   :  { %4454 = vmatmul.msk.f32.gmra.mxu3 %vm178_vm1, %v6061_v39 }
 0xdff   :  { %4455 = vmatmul.msk.f32.gmra.mxu3 %vm178_vm1, %v6073_v4 }
 0xe07   :  { %4456 = vmatmul.msk.f32.gmra.mxu3 %vm178_vm1, %v6085_v49 }
 0xe42   :  { %v2480_v10 = vpop.f32.mrf.mxu3 }
 0xe43   :  { %v2481_v13 = vadd.f32 %v2480_v10, %v5340_v34 }
 0xe45   :  { %v2495_v56 = vsel %vm521_vm13, %v2481_v13, -inf }
 0xe46   :  { %2496 = vmax.xlane.f32.xlu1 %v2495_v56 }
 0xe4a   :  { %v2483_v15 = vpop.f32.mrf.mxu3 }
 0xe4b   :  { %v2484_v44 = vadd.f32 %v2483_v15, %v5342_v38 }
 0xe4d   :  { %v2498_v6 = vsel %vm521_vm13, %v2484_v44, -inf }
 0xe4e   :  { %2499 = vmax.xlane.f32.xlu2 %v2498_v6 }
 0xe52   :  { %v2486_v45 = vpop.f32.mrf.mxu3 }
 0xe53   :  { %v2487_v24 = vadd.f32 %v2486_v45, %v5348_v47 }
 0xe55   :  { %v2501_v17 = vsel %vm521_vm13, %v2487_v24, -inf }
 0xe56   :  { %2502 = vmax.xlane.f32.xlu0 %v2501_v17 }
 0xe5a   :  { %v2489_v19 = vpop.f32.mrf.mxu3 }
 0xe5b   :  { %v2490_v53 = vadd.f32 %v2489_v19, %v5352_v52 }
 0xe5d   :  { %v2504_v22 = vsel %vm521_vm13, %v2490_v53, -inf }
 0xe5e   :  { %2505 = vmax.xlane.f32.xlu1 %v2504_v22 }
 0xe62   :  { %v2492_v37 = vpop.f32.mrf.mxu3 }
 0xe63   :  { %v2493_v63 = vadd.f32 %v2492_v37, %v5352_v52 }
 0xe65   :  { %v2507_v14 = vsel %vm534_vm0, %v2493_v63, -inf }
 0xe66   :  { %2508 = vmax.xlane.f32.xlu2 %v2507_v14 }
 0xe6a   :  { %v2713_v23 = vpop.f32.mrf.mxu3 }
 0xe6b   :  { %v2714_v26 = vadd.f32 %v4662_v16, %v2713_v23  ;;  %v2629_v23 = vpop.f32.mrf.mxu1 }
 0xe72   :  { %v2716_v20 = vpop.f32.mrf.mxu3 }
 0xe73   :  { %v2717_v33 = vadd.f32 %v4662_v16, %v2716_v20 }
 0xe7a   :  { %v2719_v11 = vpop.f32.mrf.mxu3 }
 0xe7b   :  { %v2720_v1 = vadd.f32 %v4662_v16, %v2719_v11 }
 0xe82   :  { %v2722_v9 = vpop.f32.mrf.mxu3 }
 0xe83   :  { %v2723_v0 = vadd.f32 %v4662_v16, %v2722_v9  ;;  %v4660_v9 = vld [vmem:[%s6741_s6 + $0x5] ss:$0 sm:$0xff] }
 0xe8a   :  { %v2725_v12 = vpop.f32.mrf.mxu3 }
 0xe8b   :  { %v2726_v21 = vadd.f32 %v4662_v16, %v2725_v12  ;;  %v2632_v16 = vpop.f32.mrf.mxu1  ;;  %v2630_v12 = vadd.f32 %v4660_v9, %v2629_v23 }
 0xe8d   :  { %4467 = vmatpush.msk.msrb.mxu1 %vm593_vm6, %v2726_v21  ;;  %v4487_v21 = vld [vmem:[%s6771_s22 + $0xd8] sm:$0xff] }
 0xe8f   :  { %2875 = vmatpush.msrb.mxu1 %v2723_v0  ;;  %v4486_v0 = vld [vmem:[%s6771_s22 + $0xd0] sm:$0xff] }
 0xe91   :  { %2876 = vmatpush.msrb.mxu1 %v2720_v1  ;;  %v4485_v1 = vld [vmem:[%s6771_s22 + $0xc8] sm:$0xff] }
 0xe93   :  { %2877 = vmatpush.msrb.mxu1 %v2717_v33  ;;  %v4484_v33 = vld [vmem:[%s6771_s22 + $0xc0] sm:$0xff] }
 0xe95   :  { %2878 = vmatpush.msrb.mxu1 %v2714_v26  ;;  %v2633_v26 = vadd.f32 %v4660_v9, %v2632_v16 }
 0xeb9   :  { %v2497_v31 = vpop.xlane.xlu1 %2496 }
 0xeba   :  { %v2510_v30 = vsub.f32 %v2481_v13, %v2497_v31  ;;  %v2635_v31 = vpop.f32.mrf.mxu1 }
 0xebc   :  { %v2515_v27 = vmul.f32 1.442695, %v2510_v30  ;;  %v2636_v30 = vadd.f32 %v4660_v9, %v2635_v31 }
 0xebe   :  { %4797 = vpow2.f32 %v2515_v27 }
 0xec1   :  { %v2500_v35 = vpop.xlane.xlu2 %2499 }
 0xec2   :  { %v2511_v8 = vsub.f32 %v2484_v44, %v2500_v35  ;;  %v2638_v27 = vpop.f32.mrf.mxu1 }
 0xec3   :  { %v2639_v35 = vadd.f32 %v4660_v9, %v2638_v27 }
 0xec4   :  { %v4798_v48 = vpop.eup %4797  ;;  %v2517_v32 = vmul.f32 1.442695, %v2511_v8 }
 0xec5   :  { %v2525_v28 = vsel %vm521_vm13, %v4798_v48, 0.0 }
 0xec6   :  { %4799 = vpow2.f32 %v2517_v32  ;;  %2526 = vadd.xlane.f32.xlu0 %v2525_v28  ;;  %v4426_v32 = vld [vmem:[%s6745_s11 + $0x20] sm:$0xff] }
 0xec7   :  { %2974 = vmatpush.msra.mxu3 %v4426_v32 }
 0xec9   :  { %v2503_v51 = vpop.xlane.xlu0 %2502 }
 0xeca   :  { %v2512_v55 = vsub.f32 %v2487_v24, %v2503_v51  ;;  %v2641_v8 = vpop.f32.mrf.mxu1 }
 0xecc   :  { %v4800_v46 = vpop.eup %4799  ;;  %v2519_v41 = vmul.f32 1.442695, %v2512_v55 }
 0xecd   :  { %v2528_v58 = vsel %vm521_vm13, %v4800_v46, 0.0 }
 0xece   :  { %4801 = vpow2.f32 %v2519_v41  ;;  %2529 = vadd.xlane.f32.xlu1 %v2528_v58 }
 0xed1   :  { %v2506_v60 = vpop.xlane.xlu1 %2505 }
 0xed2   :  { %v2513_v7 = vsub.f32 %v2490_v53, %v2506_v60 }
 0xed4   :  { %v4802_v25 = vpop.eup %4801  ;;  %v2521_v36 = vmul.f32 1.442695, %v2513_v7 }
 0xed5   :  { %v2531_v61 = vsel %vm521_vm13, %v4802_v25, 0.0 }
 0xed6   :  { %4803 = vpow2.f32 %v2521_v36  ;;  %2532 = vadd.xlane.f32.xlu2 %v2531_v61 }
 0xed9   :  { %v2509_v62 = vpop.xlane.xlu2 %2508 }
 0xeda   :  { %v2514_v18 = vsub.f32 %v2493_v63, %v2509_v62 }
 0xedc   :  { %v4804_v3 = vpop.eup %4803  ;;  %v2523_v5 = vmul.f32 1.442695, %v2514_v18 }
 0xedd   :  { %v2534_v50 = vsel %vm521_vm13, %v4804_v3, 0.0 }
 0xede   :  { %4805 = vpow2.f32 %v2523_v5  ;;  %2535 = vadd.xlane.f32.xlu0 %v2534_v50 }
 0xee4   :  { %v4806_v10 = vpop.eup %4805 }
 0xee5   :  { %v2537_v13 = vsel %vm534_vm0, %v4806_v10, 0.0 }
 0xee6   :  { %2538 = vadd.xlane.f32.xlu1 %v2537_v13 }
 0xf39   :  { %v2527_v56 = vpop.xlane.xlu0 %2526 }
 0xf3a   :  { %4807 = vrcp.f32 %v2527_v56 }
 0xf40   :  { %v4808_v15 = vpop.eup %4807 }
 0xf41   :  { %v2545_v44 = vmul.f32 %v4808_v15, %v4798_v48  ;;  %v2530_v6 = vpop.xlane.xlu1 %2529  ;;  %v2642_v48 = vadd.f32 %v4660_v9, %v2641_v8 }
 0xf42   :  { %4809 = vrcp.f32 %v2530_v6 }
 0xf43   :  { %4421 = vmatmul.msk.f32.vlgmr.msra.gmra.mxu0 %vm521_vm13, %v2545_v44 }
 0xf44   :  { %3013 = vmatpush.msra.mxu0 %v4487_v21 }
 0xf46   :  { %3014 = vmatpush.msra.mxu0 %v4486_v0 }
 0xf48   :  { %v4810_v45 = vpop.eup %4809  ;;  %3015 = vmatpush.msra.mxu0 %v4485_v1 }
 0xf49   :  { %v2533_v24 = vpop.xlane.xlu2 %2532  ;;  %v2546_v17 = vmul.f32 %v4810_v45, %v4800_v46 }
 0xf4a   :  { %4811 = vrcp.f32 %v2533_v24  ;;  %3016 = vmatpush.msra.mxu0 %v4484_v33 }
 0xf4b   :  { %4422 = vmatmul.msk.f32.gmra.mxu0 %vm521_vm13, %v2546_v17 }
 0xf50   :  { %v4812_v19 = vpop.eup %4811 }
 0xf51   :  { %v2536_v53 = vpop.xlane.xlu0 %2535  ;;  %v2547_v22 = vmul.f32 %v4812_v19, %v4802_v25 }
 0xf52   :  { %4813 = vrcp.f32 %v2536_v53 }
 0xf53   :  { %4423 = vmatmul.msk.f32.gmra.mxu0 %vm521_vm13, %v2547_v22 }
 0xf58   :  { %v4814_v37 = vpop.eup %4813 }
 0xf59   :  { %v2539_v63 = vpop.xlane.xlu1 %2538  ;;  %v2548_v14 = vmul.f32 %v4814_v37, %v4804_v3 }
 0xf5a   :  { %4815 = vrcp.f32 %v2539_v63 }
 0xf5b   :  { %4424 = vmatmul.msk.f32.gmra.mxu0 %vm521_vm13, %v2548_v14 }
 0xf60   :  { %v4816_v20 = vpop.eup %4815 }
 0xf61   :  { %v2549_v11 = vmul.f32 %v4816_v20, %v4806_v10 }
 0xf63   :  { %4425 = vmatmul.msk.f32.gmra.mxu0 %vm521_vm13, %v2549_v11 }
 0xf6b   :  { %4462 = vmatmul.msk.f32.vlgmr.msrb.gmra.mxu0 %vm458_vm5, %v2630_v12 }
 0xf73   :  { %4463 = vmatmul.msk.f32.gmra.mxu0 %vm458_vm5, %v2633_v26 }
 0xf7b   :  { %4464 = vmatmul.msk.f32.gmra.mxu0 %vm458_vm5, %v2636_v30 }
 0xf83   :  { %4465 = vmatmul.msk.f32.gmra.mxu0 %vm458_vm5, %v2639_v35  ;;  %v4497_v35 = vld [vmem:[%s6740_s7 + $0xd8] sm:$0xff] }
 0xf84   :  { %3055 = vmatpush.msra.mxu1 %v4497_v35  ;;  %v4548_v35 = vld [vmem:[%s6740_s7 + $0xf0] sm:$0xff] }
 0xf8b   :  { %4466 = vmatmul.msk.f32.gmra.mxu0 %vm458_vm5, %v2642_v48  ;;  %v4496_v48 = vld [vmem:[%s6740_s7 + $0xd0] sm:$0xff] }
 0xf8c   :  { %3056 = vmatpush.msra.mxu1 %v4496_v48 }
 0xf93   :  { %4489 = vmatmul.msk.f32.vlgmr.msra.gmra.mxu0 %vm178_vm1, %v6002_v57 }
 0xf9b   :  { %4490 = vmatmul.msk.f32.gmra.mxu0 %vm178_vm1, %v6019_v42 }
 0xfa3   :  { %4491 = vmatmul.msk.f32.gmra.mxu0 %vm178_vm1, %v6061_v39 }
 0xfab   :  { %4492 = vmatmul.msk.f32.gmra.mxu0 %vm178_vm1, %v6073_v4 }
 0xfb3   :  { %4493 = vmatmul.msk.f32.gmra.mxu0 %vm178_vm1, %v6085_v49 }
 0xfc0   :  { %v2585_v28 = vpop.f32.mrf.mxu0 }
 0xfc1   :  { %4479 = vmatmul.msk.f32.vlgmr.msra.gmra.mxu3 %vm458_vm5, %v2585_v28 }
 0xfc8   :  { %v2588_v51 = vpop.f32.mrf.mxu0 }
 0xfc9   :  { %4480 = vmatmul.msk.f32.gmra.mxu3 %vm458_vm5, %v2588_v51 }
 0xfd0   :  { %v2591_v55 = vpop.f32.mrf.mxu0 }
 0xfd1   :  { %4481 = vmatmul.msk.f32.gmra.mxu3 %vm458_vm5, %v2591_v55  ;;  %v4495_v55 = vld [vmem:[%s6740_s7 + $0xc8] sm:$0xff] }
 0xfd2   :  { %3057 = vmatpush.msra.mxu1 %v4495_v55 }
 0xfd8   :  { %v2594_v46 = vpop.f32.mrf.mxu0 }
 0xfd9   :  { %4482 = vmatmul.msk.f32.gmra.mxu3 %vm458_vm5, %v2594_v46  ;;  %v4494_v46 = vld [vmem:[%s6740_s7 + $0xc0] sm:$0xff] }
 0xfda   :  { %3058 = vmatpush.msra.mxu1 %v4494_v46 }
 0xfe0   :  { %v2597_v41 = vpop.f32.mrf.mxu0 }
 0xfe1   :  { %4483 = vmatmul.msk.f32.gmra.mxu3 %vm458_vm5, %v2597_v41 }
 0xfe8   :  { %v2775_v58 = vpop.f32.mrf.mxu0 }
 0xfe9   :  { %v2776_v60 = vadd.f32 %v2775_v58, %v5340_v34 }
 0xfeb   :  { %v2790_v7 = vsel %vm521_vm13, %v2776_v60, -inf }
 0xfec   :  { %2791 = vmax.xlane.f32.xlu2 %v2790_v7 }
 0xff0   :  { %v2778_v25 = vpop.f32.mrf.mxu0 }
 0xff1   :  { %v2779_v36 = vadd.f32 %v2778_v25, %v5342_v38 }
 0xff3   :  { %v2793_v61 = vsel %vm521_vm13, %v2779_v36, -inf }
 0xff4   :  { %2794 = vmax.xlane.f32.xlu0 %v2793_v61 }
 0xff8   :  { %v2781_v62 = vpop.f32.mrf.mxu0 }
 0xff9   :  { %v2782_v18 = vadd.f32 %v2781_v62, %v5348_v47 }
 0xffb   :  { %v2796_v3 = vsel %vm521_vm13, %v2782_v18, -inf }
 0xffc   :  { %2797 = vmax.xlane.f32.xlu1 %v2796_v3 }
0x1000   :  { %v2784_v5 = vpop.f32.mrf.mxu0 }
0x1001   :  { %v2785_v50 = vadd.f32 %v2784_v5, %v5352_v52 }
0x1003   :  { %v2799_v10 = vsel %vm521_vm13, %v2785_v50, -inf }
0x1004   :  { %2800 = vmax.xlane.f32.xlu2 %v2799_v10 }
0x1008   :  { %v2787_v13 = vpop.f32.mrf.mxu0 }
0x1009   :  { %v2788_v56 = vadd.f32 %v2787_v13, %v5352_v52  ;;  %v4507_v13 = vld [vmem:[%s6742_s9 + $0xd8] sm:$0xff] }
0x100b   :  { %v2802_v15 = vsel %vm534_vm0, %v2788_v56, -inf }
0x100c   :  { %2803 = vmax.xlane.f32.xlu0 %v2802_v15  ;;  %v4505_v15 = vld [vmem:[%s6742_s9 + $0xc8] sm:$0xff] }
0x105f   :  { %v2792_v44 = vpop.xlane.xlu2 %2791 }
0x1060   :  { %v2805_v6 = vsub.f32 %v2776_v60, %v2792_v44 }
0x1062   :  { %v2810_v45 = vmul.f32 1.442695, %v2805_v6  ;;  %v4504_v6 = vld [vmem:[%s6742_s9 + $0xc0] sm:$0xff] }
0x1064   :  { %4817 = vpow2.f32 %v2810_v45 }
0x1067   :  { %v2795_v24 = vpop.xlane.xlu0 %2794 }
0x1068   :  { %v2806_v17 = vsub.f32 %v2779_v36, %v2795_v24 }
0x106a   :  { %v4818_v19 = vpop.eup %4817  ;;  %v2812_v53 = vmul.f32 1.442695, %v2806_v17 }
0x106b   :  { %v2820_v22 = vsel %vm521_vm13, %v4818_v19, 0.0 }
0x106c   :  { %4819 = vpow2.f32 %v2812_v53  ;;  %2821 = vadd.xlane.f32.xlu1 %v2820_v22  ;;  %v4539_v53 = vld [vmem:[%s6771_s22 + $0xf8] sm:$0xff]  ;;  %v4538_v22 = vld [vmem:[%s6771_s22 + $0xf0] sm:$0xff] }
0x106f   :  { %v2798_v37 = vpop.xlane.xlu1 %2797 }
0x1070   :  { %v2807_v63 = vsub.f32 %v2782_v18, %v2798_v37  ;;  %v4537_v37 = vld [vmem:[%s6771_s22 + $0xe8] sm:$0xff] }
0x1072   :  { %v4820_v14 = vpop.eup %4819  ;;  %v2814_v23 = vmul.f32 1.442695, %v2807_v63  ;;  %v4536_v63 = vld [vmem:[%s6771_s22 + $0xe0] sm:$0xff] }
0x1073   :  { %v2823_v20 = vsel %vm521_vm13, %v4820_v14, 0.0 }
0x1074   :  { %4821 = vpow2.f32 %v2814_v23  ;;  %2824 = vadd.xlane.f32.xlu2 %v2823_v20 }
0x1077   :  { %v2801_v11 = vpop.xlane.xlu2 %2800 }
0x1078   :  { %v2808_v9 = vsub.f32 %v2785_v50, %v2801_v11  ;;  %v4473_v50 = vld [vmem:[%s6745_s11 + $0x28] sm:$0xff]  ;;  %v4664_v11 = vld [vmem:[%s6743_s8 + $0x6] ss:$0 sm:$0xff] }
0x1079   :  { %2927 = vmatpush.msrb.mxu2 %v4473_v50 }
0x107a   :  { %v4822_v16 = vpop.eup %4821  ;;  %v2816_v12 = vmul.f32 1.442695, %v2808_v9 }
0x107b   :  { %v2826_v21 = vsel %vm521_vm13, %v4822_v16, 0.0  ;;  %3097 = vmatpush.msra.mxu2 %v4507_v13 }
0x107c   :  { %4823 = vpow2.f32 %v2816_v12  ;;  %2827 = vadd.xlane.f32.xlu0 %v2826_v21  ;;  %v3018_v21 = vpop.f32.mrf.mxu0 }
0x107f   :  { %v2804_v0 = vpop.xlane.xlu0 %2803 }
0x1080   :  { %v2809_v1 = vsub.f32 %v2788_v56, %v2804_v0  ;;  %v4506_v56 = vld [vmem:[%s6742_s9 + $0xd0] sm:$0xff] }
0x1081   :  { %3098 = vmatpush.msra.mxu2 %v4506_v56 }
0x1082   :  { %v4824_v33 = vpop.eup %4823  ;;  %v2818_v26 = vmul.f32 1.442695, %v2809_v1 }
0x1083   :  { %v2829_v31 = vsel %vm521_vm13, %v4824_v33, 0.0  ;;  %3099 = vmatpush.msra.mxu2 %v4505_v15 }
0x1084   :  { %4825 = vpow2.f32 %v2818_v26  ;;  %2830 = vadd.xlane.f32.xlu1 %v2829_v31  ;;  %v3021_v31 = vpop.f32.mrf.mxu0 }
0x1085   :  { %3100 = vmatpush.msra.mxu2 %v4504_v6  ;;  %v4665_v6 = vld [vmem:[%s6744_s10 + $0x6] ss:$0 sm:$0xff] }
0x108a   :  { %v4826_v30 = vpop.eup %4825 }
0x108b   :  { %v2832_v27 = vsel %vm534_vm0, %v4826_v30, 0.0 }
0x108c   :  { %2833 = vadd.xlane.f32.xlu2 %v2832_v27  ;;  %v4549_v27 = vld [vmem:[%s6740_s7 + $0xf8] sm:$0xff] }
0x10df   :  { %v2822_v8 = vpop.xlane.xlu1 %2821 }
0x10e0   :  { %4827 = vrcp.f32 %v2822_v8  ;;  %v4547_v8 = vld [vmem:[%s6740_s7 + $0xe8] sm:$0xff] }
0x10e6   :  { %v4828_v32 = vpop.eup %4827 }
0x10e7   :  { %v2840_v28 = vmul.f32 %v4828_v32, %v4818_v19  ;;  %v2825_v51 = vpop.xlane.xlu2 %2824  ;;  %v3024_v32 = vpop.f32.mrf.mxu0 }
0x10e8   :  { %4829 = vrcp.f32 %v2825_v51 }
0x10e9   :  { %4468 = vmatmul.msk.f32.vlgmr.msrb.gmra.mxu1 %vm521_vm13, %v2840_v28  ;;  %v4546_v28 = vld [vmem:[%s6740_s7 + $0xe0] sm:$0xff] }
0x10ee   :  { %v4830_v41 = vpop.eup %4829 }
0x10ef   :  { %v2828_v58 = vpop.xlane.xlu0 %2827  ;;  %v2841_v60 = vmul.f32 %v4830_v41, %v4820_v14  ;;  %v3027_v55 = vpop.f32.mrf.mxu0 }
0x10f0   :  { %4831 = vrcp.f32 %v2828_v58 }
0x10f1   :  { %4469 = vmatmul.msk.f32.gmra.mxu1 %vm521_vm13, %v2841_v60  ;;  %v6346_v60 = vpop.f32.mrf.mxu3 }
0x10f6   :  { %v4832_v7 = vpop.eup %4831 }
0x10f7   :  { %v2831_v25 = vpop.xlane.xlu1 %2830  ;;  %v2842_v36 = vmul.f32 %v4832_v7, %v4822_v16  ;;  %v3030_v41 = vpop.f32.mrf.mxu0 }
0x10f8   :  { %4833 = vrcp.f32 %v2831_v25 }
0x10f9   :  { %4470 = vmatmul.msk.f32.gmra.mxu1 %vm521_vm13, %v2842_v36  ;;  %v6351_v25 = vpop.f32.mrf.mxu3 }
0x10fe   :  { %v4834_v61 = vpop.eup %4833 }
0x10ff   :  { %v2834_v62 = vpop.xlane.xlu2 %2833  ;;  %v2843_v18 = vmul.f32 %v4834_v61, %v4824_v33  ;;  %v4663_v33 = vld [vmem:[%s6741_s6 + $0x6] ss:$0 sm:$0xff] }
0x1100   :  { %4835 = vrcp.f32 %v2834_v62  ;;  %v3022_v48 = vadd.f32 %v4663_v33, %v3021_v31  ;;  %v3025_v51 = vadd.f32 %v4663_v33, %v3024_v32  ;;  %v3028_v46 = vadd.f32 %v4663_v33, %v3027_v55  ;;  %v4667_v32 = vld [vmem:[%s6743_s8 + $0x7] ss:$0 sm:$0xff] }
0x1101   :  { %4471 = vmatmul.msk.f32.gmra.mxu1 %vm521_vm13, %v2843_v18  ;;  %v3031_v58 = vadd.f32 %v4663_v33, %v3030_v41  ;;  %v6359_v61 = vpop.f32.mrf.mxu3 }
0x1106   :  { %v4836_v3 = vpop.eup %4835 }
0x1107   :  { %v2844_v5 = vmul.f32 %v4836_v3, %v4826_v30  ;;  %v3019_v30 = vadd.f32 %v4663_v33, %v3018_v21 }
0x1109   :  { %4472 = vmatmul.msk.f32.gmra.mxu1 %vm521_vm13, %v2844_v5  ;;  %v6365_v18 = vpop.f32.mrf.mxu3 }
0x1111   :  { %4499 = vmatmul.msk.f32.vlgmr.msra.gmra.mxu1 %vm178_vm1, %v6002_v57  ;;  %v2988_v5 = vpop.f32.mrf.mxu3 }
0x1119   :  { %4500 = vmatmul.msk.f32.gmra.mxu1 %vm178_vm1, %v6019_v42 }
0x1121   :  { %4501 = vmatmul.msk.f32.gmra.mxu1 %vm178_vm1, %v6061_v39 }
0x1129   :  { %4502 = vmatmul.msk.f32.gmra.mxu1 %vm178_vm1, %v6073_v4 }
0x1131   :  { %4503 = vmatmul.msk.f32.gmra.mxu1 %vm178_vm1, %v6085_v49 }
0x1166   :  { %v2880_v10 = vpop.f32.mrf.mxu1 }
0x1167   :  { %4474 = vmatmul.msk.f32.vlgmr.msrb.gmra.mxu2 %vm458_vm5, %v2880_v10 }
0x1168   :  { %3360 = vmatpush.msrb.mxu2 %v4539_v53 }
0x116a   :  { %3361 = vmatpush.msrb.mxu2 %v4538_v22 }
0x116c   :  { %3362 = vmatpush.msrb.mxu2 %v4537_v37 }
0x116e   :  { %v2883_v44 = vpop.f32.mrf.mxu1  ;;  %3363 = vmatpush.msrb.mxu2 %v4536_v63 }
0x116f   :  { %4475 = vmatmul.msk.f32.gmra.mxu2 %vm458_vm5, %v2883_v44 }
0x1176   :  { %v2886_v45 = vpop.f32.mrf.mxu1 }
0x1177   :  { %4476 = vmatmul.msk.f32.gmra.mxu2 %vm458_vm5, %v2886_v45 }
0x117e   :  { %v2889_v24 = vpop.f32.mrf.mxu1 }
0x117f   :  { %4477 = vmatmul.msk.f32.gmra.mxu2 %vm458_vm5, %v2889_v24 }
0x1186   :  { %v2892_v17 = vpop.f32.mrf.mxu1 }
0x1187   :  { %4478 = vmatmul.msk.f32.gmra.mxu2 %vm458_vm5, %v2892_v17 }
0x118e   :  { %v3060_v19 = vpop.f32.mrf.mxu1 }
0x118f   :  { %4509 = vmatmul.msk.f32.vlgmr.msra.gmra.mxu2 %vm178_vm1, %v6002_v57  ;;  %v3061_v26 = vadd.f32 %v4664_v11, %v3060_v19 }
0x1196   :  { %v3063_v14 = vpop.f32.mrf.mxu1 }
0x1197   :  { %4510 = vmatmul.msk.f32.gmra.mxu2 %vm178_vm1, %v6019_v42  ;;  %v3064_v1 = vadd.f32 %v4664_v11, %v3063_v14 }
0x119e   :  { %v3066_v23 = vpop.f32.mrf.mxu1 }
0x119f   :  { %4511 = vmatmul.msk.f32.gmra.mxu2 %vm178_vm1, %v6061_v39  ;;  %v3067_v0 = vadd.f32 %v4664_v11, %v3066_v23 }
0x11a6   :  { %v3069_v20 = vpop.f32.mrf.mxu1 }
0x11a7   :  { %4512 = vmatmul.msk.f32.gmra.mxu2 %vm178_vm1, %v6073_v4  ;;  %v3070_v12 = vadd.f32 %v4664_v11, %v3069_v20 }
0x11ae   :  { %v3072_v9 = vpop.f32.mrf.mxu1 }
0x11af   :  { %v3073_v16 = vadd.f32 %v4664_v11, %v3072_v9  ;;  %4513 = vmatmul.msk.f32.gmra.mxu2 %vm178_vm1, %v6085_v49 }
0x11b1   :  { %4514 = vmatpush.xpose.msk.msrb.mxu3 %vm458_vm5, %v3073_v16 }
0x11b5   :  { %4515 = vmatpush.xpose.msk.msrb.mxu3 %vm458_vm5, %v3070_v12 }
0x11b7   :  { %4541 = vmatmul.msk.f32.vlgmr.msrb.gmra.mxu2 %vm178_vm1, %v6002_v57 }
0x11b9   :  { %4516 = vmatpush.xpose.msk.msrb.mxu3 %vm458_vm5, %v3067_v0 }
0x11bd   :  { %4517 = vmatpush.xpose.msk.msrb.mxu3 %vm458_vm5, %v3064_v1 }
0x11bf   :  { %4542 = vmatmul.msk.f32.gmra.mxu2 %vm178_vm1, %v6019_v42 }
0x11c1   :  { %4518 = vmatpush.xpose.msk.msrb.mxu3 %vm458_vm5, %v3061_v26 }
0x11c4   :  { %4519 = vmatmul.msk.f32.vlgmr.msrb.gmra.mxu3 %vm458_vm5, %v3019_v30 }
0x11c5   :  { %3402 = vmatpush.msra.mxu3 %v4549_v27  ;;  %v4530_v27 = vld [vmem:[%s6745_s11 + $0x30] sm:$0xff] }
0x11c6   :  { %3316 = vmatpush.msrb.mxu1 %v4530_v27 }
0x11c7   :  { %4543 = vmatmul.msk.f32.gmra.mxu2 %vm178_vm1, %v6061_v39  ;;  %3403 = vmatpush.msra.mxu3 %v4548_v35 }
0x11c9   :  { %3404 = vmatpush.msra.mxu3 %v4547_v8 }
0x11cb   :  { %3405 = vmatpush.msra.mxu3 %v4546_v28 }
0x11cc   :  { %4520 = vmatmul.msk.f32.gmra.mxu3 %vm458_vm5, %v3022_v48 }
0x11cf   :  { %4544 = vmatmul.msk.f32.gmra.mxu2 %vm178_vm1, %v6073_v4 }
0x11d4   :  { %4521 = vmatmul.msk.f32.gmra.mxu3 %vm458_vm5, %v3025_v51 }
0x11d7   :  { %4545 = vmatmul.msk.f32.gmra.mxu2 %vm178_vm1, %v6085_v49 }
0x11dc   :  { %4522 = vmatmul.msk.f32.gmra.mxu3 %vm458_vm5, %v3028_v46 }
0x11e4   :  { %4523 = vmatmul.msk.f32.gmra.mxu3 %vm458_vm5, %v3031_v58 }
0x11ea   :  { %v6349_v7 = vpop.f32.mrf.mxu2 }
0x11ec   :  { %4551 = vmatmul.msk.f32.vlgmr.msra.gmra.mxu3 %vm178_vm1, %v6002_v57 }
0x11f2   :  { %v6355_v36 = vpop.f32.mrf.mxu2 }
0x11f4   :  { %4552 = vmatmul.msk.f32.gmra.mxu3 %vm178_vm1, %v6019_v42 }
0x11fa   :  { %v6361_v62 = vpop.f32.mrf.mxu2 }
0x11fc   :  { %4553 = vmatmul.msk.f32.gmra.mxu3 %vm178_vm1, %v6061_v39 }
0x1202   :  { %v6367_v3 = vpop.f32.mrf.mxu2 }
0x1204   :  { %4554 = vmatmul.msk.f32.gmra.mxu3 %vm178_vm1, %v6073_v4 }
0x120a   :  { %v2941_v50 = vpop.f32.mrf.mxu2 }
0x120b   :  { %v6371_v10 = vadd.f32 %v2988_v5, %v2941_v50 }
0x120c   :  { %4555 = vmatmul.msk.f32.gmra.mxu3 %vm178_vm1, %v6085_v49 }
0x1212   :  { %v3102_v13 = vpop.f32.mrf.mxu2 }
0x1213   :  { %v3103_v22 = vadd.f32 %v4665_v6, %v3102_v13 }
0x121a   :  { %v3105_v56 = vpop.f32.mrf.mxu2 }
0x121b   :  { %v3106_v53 = vadd.f32 %v4665_v6, %v3105_v56 }
0x1222   :  { %v3108_v15 = vpop.f32.mrf.mxu2 }
0x1223   :  { %v3109_v19 = vadd.f32 %v4665_v6, %v3108_v15 }
0x122a   :  { %v3111_v44 = vpop.f32.mrf.mxu2 }
0x122b   :  { %v3112_v17 = vadd.f32 %v4665_v6, %v3111_v44 }
0x1232   :  { %v3114_v45 = vpop.f32.mrf.mxu2 }
0x1233   :  { %v3115_v24 = vadd.f32 %v4665_v6, %v3114_v45 }
0x1235   :  { %4524 = vmatpush.msk.msrb.mxu0 %vm593_vm6, %v3115_v24 }
0x1237   :  { %3264 = vmatpush.msrb.mxu0 %v3112_v17 }
0x1239   :  { %3265 = vmatpush.msrb.mxu0 %v3109_v19 }
0x123b   :  { %3266 = vmatpush.msrb.mxu0 %v3106_v53 }
0x123d   :  { %3267 = vmatpush.msrb.mxu0 %v3103_v22 }
0x1247   :  { %v3164_v37 = vpop.f32.mrf.mxu3 }
0x1248   :  { %v3165_v63 = vadd.f32 %v3164_v37, %v5340_v34 }
0x124a   :  { %v3179_v14 = vsel %vm521_vm13, %v3165_v63, -inf }
0x124b   :  { %3180 = vmax.xlane.f32.xlu0 %v3179_v14 }
0x124f   :  { %v3167_v23 = vpop.f32.mrf.mxu3 }
0x1250   :  { %v3168_v20 = vadd.f32 %v3167_v23, %v5342_v38 }
0x1252   :  { %v3182_v11 = vsel %vm521_vm13, %v3168_v20, -inf }
0x1253   :  { %3183 = vmax.xlane.f32.xlu1 %v3182_v11 }
0x1257   :  { %v3170_v9 = vpop.f32.mrf.mxu3 }
0x1258   :  { %v3171_v16 = vadd.f32 %v3170_v9, %v5348_v47 }
0x125a   :  { %v3185_v12 = vsel %vm521_vm13, %v3171_v16, -inf }
0x125b   :  { %3186 = vmax.xlane.f32.xlu2 %v3185_v12 }
0x125f   :  { %v3173_v21 = vpop.f32.mrf.mxu3 }
0x1260   :  { %v3174_v0 = vadd.f32 %v3173_v21, %v5352_v52 }
0x1262   :  { %v3188_v1 = vsel %vm521_vm13, %v3174_v0, -inf }
0x1263   :  { %3189 = vmax.xlane.f32.xlu0 %v3188_v1 }
0x1267   :  { %v3176_v33 = vpop.f32.mrf.mxu3 }
0x1268   :  { %v3177_v26 = vadd.f32 %v3176_v33, %v5352_v52 }
0x126a   :  { %v3191_v31 = vsel %vm534_vm0, %v3177_v26, -inf }
0x126b   :  { %3192 = vmax.xlane.f32.xlu1 %v3191_v31 }
0x126f   :  { %v3407_v30 = vpop.f32.mrf.mxu3 }
0x1270   :  { %v3408_v58 = vadd.f32 %v4667_v32, %v3407_v30 }
0x1277   :  { %v3410_v35 = vpop.f32.mrf.mxu3 }
0x1278   :  { %v3411_v41 = vadd.f32 %v4667_v32, %v3410_v35  ;;  %v4558_v35 = vld [vmem:[%s6742_s9 + $0xf0] sm:$0xff] }
0x127f   :  { %v3413_v8 = vpop.f32.mrf.mxu3 }
0x1280   :  { %v3414_v46 = vadd.f32 %v4667_v32, %v3413_v8  ;;  %v4557_v8 = vld [vmem:[%s6742_s9 + $0xe8] sm:$0xff] }
0x1287   :  { %v3416_v48 = vpop.f32.mrf.mxu3 }
0x1288   :  { %v3417_v55 = vadd.f32 %v4667_v32, %v3416_v48  ;;  %v4556_v48 = vld [vmem:[%s6742_s9 + $0xe0] sm:$0xff] }
0x128f   :  { %v3419_v28 = vpop.f32.mrf.mxu3 }
0x1290   :  { %v3420_v51 = vadd.f32 %v4667_v32, %v3419_v28 }
0x1292   :  { %4566 = vmatpush.xpose.msk.msra.mxu1 %vm458_vm5, %v3420_v51 }
0x1296   :  { %4567 = vmatpush.xpose.msk.msra.mxu1 %vm458_vm5, %v3417_v55 }
0x129a   :  { %4568 = vmatpush.xpose.msk.msra.mxu1 %vm458_vm5, %v3414_v46 }
0x129e   :  { %4569 = vmatpush.xpose.msk.msra.mxu1 %vm458_vm5, %v3411_v41 }
0x12a2   :  { %4570 = vmatpush.xpose.msk.msra.mxu1 %vm458_vm5, %v3408_v58 }
0x12be   :  { %v3181_v5 = vpop.xlane.xlu0 %3180 }
0x12bf   :  { %v3194_v50 = vsub.f32 %v3165_v63, %v3181_v5 }
0x12c1   :  { %v3199_v13 = vmul.f32 1.442695, %v3194_v50 }
0x12c3   :  { %4837 = vpow2.f32 %v3199_v13 }
0x12c6   :  { %v3184_v56 = vpop.xlane.xlu1 %3183 }
0x12c7   :  { %v3195_v15 = vsub.f32 %v3168_v20, %v3184_v56 }
0x12c9   :  { %v4838_v44 = vpop.eup %4837  ;;  %v3201_v6 = vmul.f32 1.442695, %v3195_v15 }
0x12ca   :  { %v3209_v45 = vsel %vm521_vm13, %v4838_v44, 0.0 }
0x12cb   :  { %4839 = vpow2.f32 %v3201_v6  ;;  %3210 = vadd.xlane.f32.xlu2 %v3209_v45 }
0x12ce   :  { %v3187_v24 = vpop.xlane.xlu2 %3186 }
0x12cf   :  { %v3196_v17 = vsub.f32 %v3171_v16, %v3187_v24 }
0x12d1   :  { %v4840_v19 = vpop.eup %4839  ;;  %v3203_v53 = vmul.f32 1.442695, %v3196_v17 }
0x12d2   :  { %v3212_v22 = vsel %vm521_vm13, %v4840_v19, 0.0 }
0x12d3   :  { %4841 = vpow2.f32 %v3203_v53  ;;  %3213 = vadd.xlane.f32.xlu0 %v3212_v22 }
0x12d6   :  { %v3190_v37 = vpop.xlane.xlu0 %3189 }
0x12d7   :  { %v3197_v63 = vsub.f32 %v3174_v0, %v3190_v37 }
0x12d9   :  { %v4842_v14 = vpop.eup %4841  ;;  %v3205_v23 = vmul.f32 1.442695, %v3197_v63 }
0x12da   :  { %v3215_v20 = vsel %vm521_vm13, %v4842_v14, 0.0 }
0x12db   :  { %4843 = vpow2.f32 %v3205_v23  ;;  %3216 = vadd.xlane.f32.xlu1 %v3215_v20 }
0x12de   :  { %v3193_v11 = vpop.xlane.xlu1 %3192 }
0x12df   :  { %v3198_v9 = vsub.f32 %v3177_v26, %v3193_v11  ;;  %v4559_v26 = vld [vmem:[%s6742_s9 + $0xf8] sm:$0xff] }
0x12e0   :  { %3444 = vmatpush.msra.mxu0 %v4559_v26  ;;  %v2980_v26 = vadd.f32 %v6351_v25, %v6355_v36 }
0x12e1   :  { %v4844_v12 = vpop.eup %4843  ;;  %v3207_v21 = vmul.f32 1.442695, %v3198_v9  ;;  %v4668_v9 = vld [vmem:[%s6744_s10 + $0x7] ss:$0 sm:$0xff] }
0x12e2   :  { %v3218_v16 = vsel %vm521_vm13, %v4844_v12, 0.0  ;;  %3445 = vmatpush.msra.mxu0 %v4558_v35 }
0x12e3   :  { %4845 = vpow2.f32 %v3207_v21  ;;  %3219 = vadd.xlane.f32.xlu2 %v3218_v16 }
0x12e4   :  { %3446 = vmatpush.msra.mxu0 %v4557_v8 }
0x12e6   :  { %3447 = vmatpush.msra.mxu0 %v4556_v48  ;;  %v2983_v48 = vadd.f32 %v6359_v61, %v6361_v62 }
0x12e9   :  { %v4846_v1 = vpop.eup %4845 }
0x12ea   :  { %v3221_v33 = vsel %vm534_vm0, %v4846_v1, 0.0 }
0x12eb   :  { %3222 = vadd.xlane.f32.xlu0 %v3221_v33 }
0x133e   :  { %v3211_v31 = vpop.xlane.xlu2 %3210 }
0x133f   :  { %4847 = vrcp.f32 %v3211_v31 }
0x1345   :  { %v4848_v0 = vpop.eup %4847 }
0x1346   :  { %v3229_v30 = vmul.f32 %v4848_v0, %v4838_v44  ;;  %v3214_v27 = vpop.xlane.xlu0 %3213  ;;  %v2977_v0 = vadd.f32 %v6346_v60, %v6349_v7 }
0x1347   :  { %4849 = vrcp.f32 %v3214_v27 }
0x1348   :  { %4525 = vmatmul.msk.f32.vlgmr.msrb.gmra.mxu0 %vm521_vm13, %v3229_v30 }
0x134d   :  { %v4850_v32 = vpop.eup %4849 }
0x134e   :  { %v3217_v28 = vpop.xlane.xlu1 %3216  ;;  %v3230_v51 = vmul.f32 %v4850_v32, %v4840_v19 }
0x134f   :  { %4851 = vrcp.f32 %v3217_v28 }
0x1350   :  { %4526 = vmatmul.msk.f32.gmra.mxu0 %vm521_vm13, %v3230_v51  ;;  %v2986_v51 = vadd.f32 %v6365_v18, %v6367_v3 }
0x1355   :  { %v4852_v55 = vpop.eup %4851 }
0x1356   :  { %v3220_v46 = vpop.xlane.xlu2 %3219  ;;  %v3231_v41 = vmul.f32 %v4852_v55, %v4842_v14 }
0x1357   :  { %4853 = vrcp.f32 %v3220_v46 }
0x1358   :  { %4527 = vmatmul.msk.f32.gmra.mxu0 %vm521_vm13, %v3231_v41 }
0x135d   :  { %v4854_v58 = vpop.eup %4853 }
0x135e   :  { %v3223_v5 = vpop.xlane.xlu0 %3222  ;;  %v3232_v50 = vmul.f32 %v4854_v58, %v4844_v12 }
0x135f   :  { %4855 = vrcp.f32 %v3223_v5 }
0x1360   :  { %4528 = vmatmul.msk.f32.gmra.mxu0 %vm521_vm13, %v3232_v50 }
0x1365   :  { %v4856_v13 = vpop.eup %4855 }
0x1366   :  { %v3233_v56 = vmul.f32 %v4856_v13, %v4846_v1 }
0x1368   :  { %4529 = vmatmul.msk.f32.gmra.mxu0 %vm521_vm13, %v3233_v56 }
0x1370   :  { %4561 = vmatmul.msk.f32.vlgmr.msra.gmra.mxu0 %vm178_vm1, %v6002_v57 }
0x1378   :  { %4562 = vmatmul.msk.f32.gmra.mxu0 %vm178_vm1, %v6019_v42  ;;  %v3365_v42 = vpop.f32.mrf.mxu2 }
0x1380   :  { %4563 = vmatmul.msk.f32.gmra.mxu0 %vm178_vm1, %v6061_v39 }
0x1388   :  { %4564 = vmatmul.msk.f32.gmra.mxu0 %vm178_vm1, %v6073_v4  ;;  %v4666_v4 = vld [vmem:[%s6741_s6 + $0x7] ss:$0 sm:$0xff] }
0x1389   :  { %v3366_v45 = vadd.f32 %v4666_v4, %v3365_v42 }
0x1390   :  { %4565 = vmatmul.msk.f32.gmra.mxu0 %vm178_vm1, %v6085_v49  ;;  %v3368_v49 = vpop.f32.mrf.mxu2 }
0x1391   :  { %v3369_v17 = vadd.f32 %v4666_v4, %v3368_v49 }
0x1398   :  { %v3371_v19 = vpop.f32.mrf.mxu2 }
0x1399   :  { %v3372_v22 = vadd.f32 %v4666_v4, %v3371_v19 }
0x13a0   :  { %v3374_v63 = vpop.f32.mrf.mxu2 }
0x13a1   :  { %v3375_v14 = vadd.f32 %v4666_v4, %v3374_v63 }
0x13a8   :  { %v3377_v20 = vpop.f32.mrf.mxu2 }
0x13a9   :  { %v3378_v11 = vadd.f32 %v4666_v4, %v3377_v20 }
0x13c5   :  { %v3269_v15 = vpop.f32.mrf.mxu0 }
0x13c6   :  { %4531 = vmatmul.msk.f32.vlgmr.msrb.gmra.mxu1 %vm458_vm5, %v3269_v15 }
0x13cd   :  { %v3272_v44 = vpop.f32.mrf.mxu0 }
0x13ce   :  { %4532 = vmatmul.msk.f32.gmra.mxu1 %vm458_vm5, %v3272_v44 }
0x13d5   :  { %v3275_v6 = vpop.f32.mrf.mxu0 }
0x13d6   :  { %4533 = vmatmul.msk.f32.gmra.mxu1 %vm458_vm5, %v3275_v6 }
0x13dd   :  { %v3278_v57 = vpop.f32.mrf.mxu0 }
0x13de   :  { %4534 = vmatmul.msk.f32.gmra.mxu1 %vm458_vm5, %v3278_v57 }
0x13e5   :  { %v3281_v39 = vpop.f32.mrf.mxu0 }
0x13e6   :  { %4535 = vmatmul.msk.f32.gmra.mxu1 %vm458_vm5, %v3281_v39 }
0x13ed   :  { %v3449_v24 = vpop.f32.mrf.mxu0 }
0x13ee   :  { %4571 = vmatmul.msk.f32.vlgmr.msra.gmra.mxu1 %vm458_vm5, %v3366_v45  ;;  %v3450_v31 = vadd.f32 %v4668_v9, %v3449_v24 }
0x13f5   :  { %v3452_v53 = vpop.f32.mrf.mxu0 }
0x13f6   :  { %4572 = vmatmul.msk.f32.gmra.mxu1 %vm458_vm5, %v3369_v17  ;;  %v3453_v33 = vadd.f32 %v4668_v9, %v3452_v53 }
0x13fd   :  { %v3455_v37 = vpop.f32.mrf.mxu0 }
0x13fe   :  { %4573 = vmatmul.msk.f32.gmra.mxu1 %vm458_vm5, %v3372_v22  ;;  %v3456_v1 = vadd.f32 %v4668_v9, %v3455_v37 }
0x1405   :  { %v3458_v23 = vpop.f32.mrf.mxu0 }
0x1406   :  { %4574 = vmatmul.msk.f32.gmra.mxu1 %vm458_vm5, %v3375_v14  ;;  %v3459_v16 = vadd.f32 %v4668_v9, %v3458_v23 }
0x140d   :  { %v3461_v12 = vpop.f32.mrf.mxu0 }
0x140e   :  { %v3462_v21 = vadd.f32 %v4668_v9, %v3461_v12  ;;  %4575 = vmatmul.msk.f32.gmra.mxu1 %vm458_vm5, %v3378_v11  ;;  %v4582_v11 = vld [vmem:[%s6745_s11 + $0x38] sm:$0xff] }
0x140f   :  { %3663 = vmatpush.msrb.mxu3 %v4582_v11 }
0x1410   :  { %4576 = vmatpush.msk.msra.mxu2 %vm593_vm6, %v3462_v21 }
0x1412   :  { %3611 = vmatpush.msra.mxu2 %v3459_v16 }
0x1414   :  { %3612 = vmatpush.msra.mxu2 %v3456_v1 }
0x1416   :  { %3613 = vmatpush.msra.mxu2 %v3453_v33 }
0x1418   :  { %3614 = vmatpush.msra.mxu2 %v3450_v31 }
0x1443   :  { %v3318_v30 = vpop.f32.mrf.mxu1 }
0x1444   :  { %v6451_v27 = vadd.f32 %v3318_v30, %v2977_v0 }
0x144b   :  { %v3321_v35 = vpop.f32.mrf.mxu1 }
0x144c   :  { %v6455_v8 = vadd.f32 %v3321_v35, %v2980_v26 }
0x1453   :  { %v3324_v32 = vpop.f32.mrf.mxu1 }
0x1454   :  { %v6459_v28 = vadd.f32 %v3324_v32, %v2983_v48 }
0x145b   :  { %v3327_v55 = vpop.f32.mrf.mxu1 }
0x145c   :  { %v6463_v60 = vadd.f32 %v3327_v55, %v2986_v51 }
0x1463   :  { %v3330_v7 = vpop.f32.mrf.mxu1 }
0x1464   :  { %v6466_v46 = vadd.f32 %v3330_v7, %v6371_v10 }
0x146b   :  { %v3511_v25 = vpop.f32.mrf.mxu1 }
0x146c   :  { %v3512_v36 = vadd.f32 %v3511_v25, %v5340_v34 }
0x146e   :  { %v3526_v41 = vsel %vm521_vm13, %v3512_v36, -inf }
0x146f   :  { %3527 = vmax.xlane.f32.xlu1 %v3526_v41 }
0x1473   :  { %v3514_v61 = vpop.f32.mrf.mxu1 }
0x1474   :  { %v3515_v62 = vadd.f32 %v3514_v61, %v5342_v38 }
0x1476   :  { %v3529_v58 = vsel %vm521_vm13, %v3515_v62, -inf }
0x1477   :  { %3530 = vmax.xlane.f32.xlu0 %v3529_v58 }
0x147b   :  { %v3517_v18 = vpop.f32.mrf.mxu1 }
0x147c   :  { %v3518_v3 = vadd.f32 %v3517_v18, %v5348_v47 }
0x147e   :  { %v3532_v5 = vsel %vm521_vm13, %v3518_v3, -inf }
0x147f   :  { %3533 = vmax.xlane.f32.xlu1 %v3532_v5  ;;  %v6498_v5 = vld [vmem:[%s6746_s12 + $0x1] ss:$0 sm:$0xff] }
0x1483   :  { %v3520_v10 = vpop.f32.mrf.mxu1 }
0x1484   :  { %v3521_v39 = vadd.f32 %v3520_v10, %v5352_v52 }
0x1486   :  { %v3535_v19 = vsel %vm521_vm13, %v3521_v39, -inf }
0x148b   :  { %v3523_v50 = vpop.f32.mrf.mxu1 }
0x148c   :  { %v3524_v13 = vadd.f32 %v3523_v50, %v5352_v52 }
0x148e   :  { %v3538_v34 = vsel %vm534_vm0, %v3524_v13, -inf }
0x148f   :  { %3539 = vmax.xlane.f32.xlu0 %v3538_v34 }
0x14e2   :  { %v3528_v56 = vpop.xlane.xlu1 %3527 }
0x14e3   :  { %v3541_v15 = vsub.f32 %v3512_v36, %v3528_v56 }
0x14e5   :  { %v3546_v44 = vmul.f32 1.442695, %v3541_v15 }
0x14e7   :  { %4857 = vpow2.f32 %v3546_v44 }
0x14ea   :  { %v3531_v38 = vpop.xlane.xlu0 %3530 }
0x14eb   :  { %v3542_v6 = vsub.f32 %v3515_v62, %v3531_v38 }
0x14ed   :  { %v4858_v57 = vpop.eup %4857  ;;  %v3548_v42 = vmul.f32 1.442695, %v3542_v6 }
0x14ee   :  { %v3556_v47 = vsel %vm521_vm13, %v4858_v57, 0.0 }
0x14ef   :  { %4859 = vpow2.f32 %v3548_v42  ;;  %3557 = vadd.xlane.f32.xlu2 %v3556_v47 }
0x14f2   :  { %v3534_v4 = vpop.xlane.xlu1 %3533 }
0x14f3   :  { %v3543_v49 = vsub.f32 %v3518_v3, %v3534_v4 }
0x14f5   :  { %v4860_v45 = vpop.eup %4859  ;;  %v3550_v24 = vmul.f32 1.442695, %v3543_v49 }
0x14f6   :  { %v3559_v17 = vsel %vm521_vm13, %v4860_v45, 0.0 }
0x14f7   :  { %4861 = vpow2.f32 %v3550_v24  ;;  %3560 = vadd.xlane.f32.xlu1 %v3559_v17  ;;  %3536 = vmax.xlane.f32.xlu2 %v3535_v19  ;;  %v4592_v17 = vld [vmem:[%s6750_s15 + $0x28] sm:$0xff] }
0x14fd   :  { %v4862_v53 = vpop.eup %4861 }
0x14fe   :  { %v3562_v22 = vsel %vm521_vm13, %v4862_v53, 0.0 }
0x14ff   :  { %3563 = vadd.xlane.f32.xlu2 %v3562_v22 }
0x1502   :  { %v3540_v37 = vpop.xlane.xlu0 %3539 }
0x1503   :  { %v3545_v63 = vsub.f32 %v3524_v13, %v3540_v37 }
0x1505   :  { %v3554_v14 = vmul.f32 1.442695, %v3545_v63 }
0x1507   :  { %4863 = vpow2.f32 %v3554_v14 }
0x150d   :  { %v4864_v52 = vpop.eup %4863 }
0x150e   :  { %v3568_v23 = vsel %vm534_vm0, %v4864_v52, 0.0 }
0x150f   :  { %3569 = vadd.xlane.f32.xlu1 %v3568_v23 }
0x1562   :  { %v3558_v20 = vpop.xlane.xlu2 %3557 }
0x1563   :  { %4865 = vrcp.f32 %v3558_v20 }
0x1569   :  { %v4866_v9 = vpop.eup %4865 }
0x156a   :  { %v3576_v12 = vmul.f32 %v4866_v9, %v4858_v57  ;;  %v3537_v21 = vpop.xlane.xlu2 %3536  ;;  %v3561_v16 = vpop.xlane.xlu1 %3560 }
0x156b   :  { %v3544_v1 = vsub.f32 %v3521_v39, %v3537_v21  ;;  %4867 = vrcp.f32 %v3561_v16 }
0x156c   :  { %4577 = vmatmul.msk.f32.vlgmr.msra.gmra.mxu2 %vm521_vm13, %v3576_v12 }
0x156d   :  { %v3552_v33 = vmul.f32 1.442695, %v3544_v1 }
0x156f   :  { %4869 = vpow2.f32 %v3552_v33 }
0x1571   :  { %v4868_v31 = vpop.eup %4867 }
0x1572   :  { %v3564_v0 = vpop.xlane.xlu2 %3563  ;;  %v3577_v30 = vmul.f32 %v4868_v31, %v4860_v45 }
0x1573   :  { %4871 = vrcp.f32 %v3564_v0 }
0x1574   :  { %4578 = vmatmul.msk.f32.gmra.mxu2 %vm521_vm13, %v3577_v30 }
0x1575   :  { %v4870_v26 = vpop.eup %4869 }
0x1576   :  { %v3565_v35 = vsel %vm521_vm13, %v4870_v26, 0.0 }
0x1577   :  { %3566 = vadd.xlane.f32.xlu0 %v3565_v35 }
0x1579   :  { %v4872_v48 = vpop.eup %4871 }
0x157a   :  { %v3578_v32 = vmul.f32 %v4872_v48, %v4862_v53  ;;  %v4591_v53 = vld [vmem:[%s6750_s15 + $0x20] sm:$0xff] }
0x157c   :  { %4579 = vmatmul.msk.f32.gmra.mxu2 %vm521_vm13, %v3578_v32 }
0x1582   :  { %v3570_v55 = vpop.xlane.xlu1 %3569 }
0x15ea   :  { %v3567_v51 = vpop.xlane.xlu0 %3566 }
0x15eb   :  { %4873 = vrcp.f32 %v3567_v51 }
0x15ec   :  { %4875 = vrcp.f32 %v3570_v55 }
0x15ef   :  { %v3616_v7 = vpop.f32.mrf.mxu2 }
0x15f0   :  { %4583 = vmatmul.msk.f32.vlgmr.msrb.gmra.mxu3 %vm458_vm5, %v3616_v7 }
0x15f1   :  { %v4874_v25 = vpop.eup %4873 }
0x15f2   :  { %v3579_v36 = vmul.f32 %v4874_v25, %v4870_v26  ;;  %v4876_v41 = vpop.eup %4875 }
0x15f3   :  { %v3580_v62 = vmul.f32 %v4876_v41, %v4864_v52 }
0x15f4   :  { %4580 = vmatmul.msk.f32.gmra.mxu2 %vm521_vm13, %v3579_v36 }
0x15f7   :  { %v3619_v61 = vpop.f32.mrf.mxu2 }
0x15f8   :  { %4584 = vmatmul.msk.f32.gmra.mxu3 %vm458_vm5, %v3619_v61 }
0x15fc   :  { %4581 = vmatmul.msk.f32.gmra.mxu2 %vm521_vm13, %v3580_v62 }
0x15ff   :  { %v3622_v58 = vpop.f32.mrf.mxu2 }
0x1600   :  { %4585 = vmatmul.msk.f32.gmra.mxu3 %vm458_vm5, %v3622_v58 }
0x1673   :  { %v3665_v18 = vpop.f32.mrf.mxu3 }
0x1674   :  { %v3680_v3 = vadd.f32 %v3665_v18, %v6451_v27 }
0x1676   :  { %v3685_v10 = vadd.f32 %v3680_v3, %v5904_v43 }
0x1677   :  { %v3625_v50 = vpop.f32.mrf.mxu2 }
0x1678   :  { %v6502_v13 = vadd.f32 %v6498_v5, %v3685_v10  ;;  %4586 = vmatmul.msk.f32.gmra.mxu3 %vm458_vm5, %v3625_v50 }
0x167a   :  { %v3704_v34 = vsel %vm178_vm1, %v6502_v13, 0.0  ;;  %v3724_v56 = vmul.f32 %v6502_v13, %v6502_v13 }
0x167b   :  { %3705 = vadd.xlane.f32.xlu2 %v3704_v34  ;;  %v3668_v27 = vpop.f32.mrf.mxu3 }
0x167c   :  { %v3681_v15 = vadd.f32 %v3668_v27, %v6455_v8  ;;  %v3729_v44 = vsel %vm178_vm1, %v3724_v56, 0.0 }
0x167d   :  { %3730 = vadd.xlane.f32.xlu0 %v3729_v44 }
0x167e   :  { %v3686_v43 = vadd.f32 %v3681_v15, %v5912_v40  ;;  %v6573_v15 = vld [vmem:[%s6747_s13 + $0x1] ss:$0 sm:$0xff] }
0x167f   :  { %v3628_v38 = vpop.f32.mrf.mxu2 }
0x1680   :  { %v6513_v6 = vadd.f32 %v6498_v5, %v3686_v43  ;;  %4587 = vmatmul.msk.f32.gmra.mxu3 %vm458_vm5, %v3628_v38  ;;  %v6581_v38 = vld [vmem:[%s6748_s14 + $0x1] ss:$0 sm:$0xff] }
0x1682   :  { %v3707_v57 = vsel %vm178_vm1, %v6513_v6, 0.0  ;;  %v3725_v42 = vmul.f32 %v6513_v6, %v6513_v6 }
0x1683   :  { %3708 = vadd.xlane.f32.xlu1 %v3707_v57  ;;  %v3671_v47 = vpop.f32.mrf.mxu3 }
0x1684   :  { %v3682_v8 = vadd.f32 %v3671_v47, %v6459_v28  ;;  %v3732_v39 = vsel %vm178_vm1, %v3725_v42, 0.0  ;;  %v4594_v28 = vld [vmem:[%s6750_s15 + $0x38] sm:$0xff] }
0x1685   :  { %3733 = vadd.xlane.f32.xlu2 %v3732_v39  ;;  %3877 = vmatpush.msrb.mxu0 %v4594_v28 }
0x1686   :  { %v3687_v40 = vadd.f32 %v3682_v8, %v5920_v2  ;;  %v4593_v2 = vld [vmem:[%s6750_s15 + $0x30] sm:$0xff] }
0x1687   :  { %3878 = vmatpush.msrb.mxu0 %v4593_v2 }
0x1688   :  { %v6524_v4 = vadd.f32 %v6498_v5, %v3687_v40 }
0x1689   :  { %3879 = vmatpush.msrb.mxu0 %v4592_v17 }
0x168a   :  { %v3710_v49 = vsel %vm178_vm1, %v6524_v4, 0.0  ;;  %v3726_v45 = vmul.f32 %v6524_v4, %v6524_v4 }
0x168b   :  { %3711 = vadd.xlane.f32.xlu0 %v3710_v49  ;;  %3880 = vmatpush.msrb.mxu0 %v4591_v53 }
0x168c   :  { %v3735_v24 = vsel %vm178_vm1, %v3726_v45, 0.0 }
0x168d   :  { %3736 = vadd.xlane.f32.xlu1 %v3735_v24 }
0x16ee   :  { %v3706_v19 = vpop.xlane.xlu2 %3705 }
0x16ef   :  { %v3719_v22 = vmul.f32 %v3706_v19, %v5115_v54 }
0x16f0   :  { %v3731_v37 = vpop.xlane.xlu0 %3730 }
0x16f1   :  { %v3749_v63 = vmul.f32 %v3719_v22, %v3719_v22  ;;  %v3744_v14 = vmul.f32 %v3731_v37, %v5115_v54  ;;  %v3759_v27 = vsub.f32 %v6502_v13, %v3719_v22 }
0x16f3   :  { %v3754_v52 = vsub.f32 %v3744_v14, %v3749_v63 }
0x16f5   :  { %v3764_v23 = vadd.f32 1e-05, %v3754_v52 }
0x16f6   :  { %v3709_v20 = vpop.xlane.xlu1 %3708 }
0x16f7   :  { %4877 = vrsqrt.f32 %v3764_v23  ;;  %v6546_v11 = vmul.f32 %v3709_v20, %v5115_v54  ;;  %vm3775_vm6 = vweird.f32 %v3764_v23 }
0x16f8   :  { %v3734_v9 = vpop.xlane.xlu2 %3733 }
0x16f9   :  { %v3750_v12 = vmul.f32 %v6546_v11, %v6546_v11  ;;  %v3745_v21 = vmul.f32 %v3734_v9, %v5115_v54  ;;  %v3760_v28 = vsub.f32 %v6513_v6, %v6546_v11  ;;  %v4621_v9 = vld [vmem:[%s6752_s17 + $0xf8] sm:$0xff] }
0x16fa   :  { %4094 = vmatpush.msrb.mxu1 %v4621_v9 }
0x16fb   :  { %v3755_v16 = vsub.f32 %v3745_v21, %v3750_v12  ;;  %v3674_v1 = vpop.f32.mrf.mxu3 }
0x16fc   :  { %v3683_v33 = vadd.f32 %v3674_v1, %v6463_v60 }
0x16fd   :  { %v4878_v31 = vpop.eup %4877  ;;  %v3765_v0 = vadd.f32 1e-05, %v3755_v16 }
0x16fe   :  { %v3770_v30 = vmul.f32 %v4878_v31, %v3764_v23  ;;  %v3688_v26 = vadd.f32 %v3683_v33, %v5928_v59  ;;  %v3712_v35 = vpop.xlane.xlu0 %3711  ;;  %vm3776_vm5 = vweird.f32 %v4878_v31 }
0x16ff   :  { %4879 = vrsqrt.f32 %v3765_v0  ;;  %v6554_v48 = vmul.f32 %v3712_v35, %v5115_v54  ;;  %vm3777_vm13 = vmor %vm3775_vm6, %vm3776_vm5  ;;  %vm3785_vm3 = vweird.f32 %v3765_v0 }
0x1700   :  { %v3771_v32 = vmul.f32 %v4878_v31, %v3770_v30  ;;  %v6557_v51 = vadd.f32 %v6498_v5, %v3688_v26  ;;  %v3737_v55 = vpop.xlane.xlu1 %3736  ;;  %v4618_v26 = vld [vmem:[%s6752_s17 + $0xe0] sm:$0xff] }
0x1701   :  { %v3751_v7 = vmul.f32 %v6554_v48, %v6554_v48  ;;  %v3746_v60 = vmul.f32 %v3737_v55, %v5115_v54  ;;  %v3761_v52 = vsub.f32 %v6524_v4, %v6554_v48  ;;  %v4620_v4 = vld [vmem:[%s6752_s17 + $0xf0] sm:$0xff] }
0x1702   :  { %v3772_v25 = vmul.f32 0.5, %v3771_v32  ;;  %v3713_v36 = vsel %vm178_vm1, %v6557_v51, 0.0  ;;  %v3727_v59 = vmul.f32 %v6557_v51, %v6557_v51  ;;  %4095 = vmatpush.msrb.mxu1 %v4620_v4  ;;  %v4617_v32 = vld [vmem:[%s6752_s17 + $0xd8] sm:$0xff] }
0x1703   :  { %v3756_v41 = vsub.f32 %v3746_v60, %v3751_v7  ;;  %3714 = vadd.xlane.f32.xlu2 %v3713_v36  ;;  %v3677_v61 = vpop.f32.mrf.mxu3 }
0x1704   :  { %v3773_v62 = vsub.f32 1.5, %v3772_v25  ;;  %v3684_v58 = vadd.f32 %v3677_v61, %v6466_v46  ;;  %v3738_v18 = vsel %vm178_vm1, %v3727_v59, 0.0  ;;  %v4616_v25 = vld [vmem:[%s6752_s17 + $0xd0] sm:$0xff]  ;;  %v4615_v59 = vld [vmem:[%s6752_s17 + $0xc8] sm:$0xff] }
0x1705   :  { %v4880_v3 = vpop.eup %4879  ;;  %v3766_v10 = vadd.f32 1e-05, %v3756_v41  ;;  %3739 = vadd.xlane.f32.xlu0 %v3738_v18 }
0x1706   :  { %v3774_v50 = vmul.f32 %v4878_v31, %v3773_v62  ;;  %v3780_v34 = vmul.f32 %v4880_v3, %v3765_v0  ;;  %v3689_v56 = vadd.f32 %v3684_v58, %v5936_v29  ;;  %vm3786_vm0 = vweird.f32 %v4880_v3  ;;  %v4619_v0 = vld [vmem:[%s6752_s17 + $0xe8] sm:$0xff]  ;;  %v4614_v62 = vld [vmem:[%s6752_s17 + $0xc0] sm:$0xff] }
0x1707   :  { %4881 = vrsqrt.f32 %v3766_v10  ;;  %vm3787_vm4 = vmor %vm3785_vm3, %vm3786_vm0  ;;  %vm3795_vm7 = vweird.f32 %v3766_v10  ;;  %4096 = vmatpush.msrb.mxu1 %v4619_v0 }
0x1708   :  { %v3778_v46 = vsel %vm3777_vm13, %v4878_v31, %v3774_v50  ;;  %v3781_v44 = vmul.f32 %v4880_v3, %v3780_v34  ;;  %v6576_v43 = vadd.f32 %v6498_v5, %v3689_v56  ;;  %v4611_v34 = vld [vmem:[%s6752_s17 + $0xa8] sm:$0xff] }
0x1709   :  { %v3819_v29 = vmul.f32 %v3778_v46, %v3759_v27  ;;  %4097 = vmatpush.msrb.mxu1 %v4618_v26 }
0x170a   :  { %v3782_v57 = vmul.f32 0.5, %v3781_v44  ;;  %v3716_v42 = vsel %vm191_vm2, %v6576_v43, 0.0  ;;  %v3728_v47 = vmul.f32 %v6576_v43, %v6576_v43 }
0x170b   :  { %v3827_v8 = vmul.f32 %v6573_v15, %v3819_v29  ;;  %3717 = vadd.xlane.f32.xlu1 %v3716_v42  ;;  %4098 = vmatpush.msrb.mxu1 %v4617_v32  ;;  %v4610_v29 = vld [vmem:[%s6752_s17 + $0xa0] sm:$0xff] }
0x170c   :  { %v3783_v39 = vsub.f32 1.5, %v3782_v57  ;;  %v3741_v5 = vsel %vm191_vm2, %v3728_v47, 0.0 }
0x170d   :  { %v4882_v40 = vpop.eup %4881  ;;  %v3835_v49 = vadd.f32 %v6581_v38, %v3827_v8  ;;  %3742 = vadd.xlane.f32.xlu2 %v3741_v5  ;;  %4099 = vmatpush.msrb.mxu1 %v4616_v25 }
0x170e   :  { %v3784_v45 = vmul.f32 %v4880_v3, %v3783_v39  ;;  %v3790_v24 = vmul.f32 %v4882_v40, %v3766_v10  ;;  %vm3796_vm2 = vweird.f32 %v4882_v40  ;;  %v4612_v10 = vld [vmem:[%s6752_s17 + $0xb0] sm:$0xff]  ;;  %v4609_v39 = vld [vmem:[%s6752_s17 + $0x98] sm:$0xff] }
0x170f   :  { %4596 = vmatmul.msk.f32.vlgmr.msrb.gmra.mxu0 %vm178_vm1, %v3835_v49  ;;  %vm3797_vm8 = vmor %vm3795_vm7, %vm3796_vm2  ;;  %4100 = vmatpush.msrb.mxu1 %v4615_v59 }
0x1710   :  { %v3788_v2 = vsel %vm3787_vm4, %v4880_v3, %v3784_v45  ;;  %v3791_v17 = vmul.f32 %v4882_v40, %v3790_v24  ;;  %v6639_v3 = vld [vmem:[%s6749_s16 + $0x1] ss:$0 sm:$0xff]  ;;  %v4608_v24 = vld [vmem:[%s6752_s17 + $0x90] sm:$0xff] }
0x1711   :  { %v3820_v19 = vmul.f32 %v3788_v2, %v3760_v28  ;;  %4101 = vmatpush.msrb.mxu1 %v4614_v62 }
0x1712   :  { %v3792_v53 = vmul.f32 0.5, %v3791_v17  ;;  %v4606_v17 = vld [vmem:[%s6752_s17 + $0x80] sm:$0xff] }
0x1713   :  { %v3828_v22 = vmul.f32 %v6573_v15, %v3820_v19 }
0x1714   :  { %v3793_v37 = vsub.f32 1.5, %v3792_v53 }
0x1715   :  { %v3836_v63 = vadd.f32 %v6581_v38, %v3828_v22 }
0x1716   :  { %v3794_v14 = vmul.f32 %v4882_v40, %v3793_v37 }
0x1717   :  { %4597 = vmatmul.msk.f32.gmra.mxu0 %vm178_vm1, %v3836_v63 }
0x1718   :  { %v3798_v6 = vsel %vm3797_vm8, %v4882_v40, %v3794_v14 }
0x1719   :  { %v3821_v23 = vmul.f32 %v3798_v6, %v3761_v52 }
0x171b   :  { %v3829_v20 = vmul.f32 %v6573_v15, %v3821_v23 }
0x171d   :  { %v3837_v11 = vadd.f32 %v6581_v38, %v3829_v20 }
0x171f   :  { %4598 = vmatmul.msk.f32.gmra.mxu0 %vm178_vm1, %v3837_v11 }
0x1776   :  { %v3715_v12 = vpop.xlane.xlu2 %3714 }
0x1777   :  { %v3722_v21 = vmul.f32 %v3715_v12, %v5115_v54 }
0x1778   :  { %v3740_v16 = vpop.xlane.xlu0 %3739 }
0x1779   :  { %v3752_v1 = vmul.f32 %v3722_v21, %v3722_v21  ;;  %v3747_v33 = vmul.f32 %v3740_v16, %v5115_v54  ;;  %v3762_v47 = vsub.f32 %v6557_v51, %v3722_v21  ;;  %v4607_v51 = vld [vmem:[%s6752_s17 + $0x88] sm:$0xff] }
0x177b   :  { %v3757_v31 = vsub.f32 %v3747_v33, %v3752_v1 }
0x177d   :  { %v3767_v30 = vadd.f32 1e-05, %v3757_v31 }
0x177e   :  { %v3718_v35 = vpop.xlane.xlu1 %3717 }
0x177f   :  { %4883 = vrsqrt.f32 %v3767_v30  ;;  %v6616_v48 = vmul.f32 %v3718_v35, %v5115_v54  ;;  %vm3805_vm10 = vweird.f32 %v3767_v30 }
0x1780   :  { %v3743_v55 = vpop.xlane.xlu2 %3742 }
0x1781   :  { %v3753_v7 = vmul.f32 %v6616_v48, %v6616_v48  ;;  %v3748_v60 = vmul.f32 %v3743_v55, %v5115_v54  ;;  %v4613_v54 = vld [vmem:[%s6752_s17 + $0xb8] sm:$0xff]  ;;  %v3763_v20 = vsub.f32 %v6576_v43, %v6616_v48 }
0x1782   :  { %4102 = vmatpush.msrb.mxu1 %v4613_v54 }
0x1783   :  { %v3758_v36 = vsub.f32 %v3748_v60, %v3753_v7 }
0x1784   :  { %4103 = vmatpush.msrb.mxu1 %v4612_v10 }
0x1785   :  { %v4884_v41 = vpop.eup %4883  ;;  %v3768_v61 = vadd.f32 1e-05, %v3758_v36 }
0x1786   :  { %v3800_v58 = vmul.f32 %v4884_v41, %v3767_v30  ;;  %vm3806_vm9 = vweird.f32 %v4884_v41  ;;  %4104 = vmatpush.msrb.mxu1 %v4611_v34 }
0x1787   :  { %4885 = vrsqrt.f32 %v3768_v61  ;;  %vm3807_vm11 = vmor %vm3805_vm10, %vm3806_vm9  ;;  %vm3815_vm14 = vweird.f32 %v3768_v61 }
0x1788   :  { %v3801_v18 = vmul.f32 %v4884_v41, %v3800_v58  ;;  %4105 = vmatpush.msrb.mxu1 %v4610_v29 }
0x178a   :  { %v3802_v50 = vmul.f32 0.5, %v3801_v18  ;;  %4106 = vmatpush.msrb.mxu1 %v4609_v39 }
0x178c   :  { %v3803_v56 = vsub.f32 1.5, %v3802_v50  ;;  %v3882_v27 = vpop.f32.mrf.mxu0  ;;  %4107 = vmatpush.msrb.mxu1 %v4608_v24 }
0x178d   :  { %v4886_v46 = vpop.eup %4885  ;;  %v6648_v44 = vadd.f32 %v6639_v3, %v3882_v27 }
0x178e   :  { %v3804_v57 = vmul.f32 %v4884_v41, %v3803_v56  ;;  %v3810_v42 = vmul.f32 %v4886_v46, %v3768_v61  ;;  %vm3816_vm12 = vweird.f32 %v4886_v46  ;;  %4108 = vmatpush.msrb.mxu1 %v4607_v51 }
0x178f   :  { %v3902_v8 = vmul.f32 0.70710677, %v6648_v44  ;;  %vm3817_vm15 = vmor %vm3815_vm14, %vm3816_vm12 }
0x1790   :  { %v3808_v5 = vsel %vm3807_vm11, %v4884_v41, %v3804_v57  ;;  %v3811_v40 = vmul.f32 %v4886_v46, %v3810_v42  ;;  %4109 = vmatpush.msrb.mxu1 %v4606_v17 }
0x1791   :  { %v6658_v49 = vclamps-f32 %v3902_v8, 4.0  ;;  %v3822_v45 = vmul.f32 %v3808_v5, %v3762_v47 }
0x1792   :  { %v3812_v28 = vmul.f32 0.5, %v3811_v40 }
0x1793   :  { %v3917_v2 = vmul.f32 %v6658_v49, %v6658_v49  ;;  %v3830_v37 = vmul.f32 %v6573_v15, %v3822_v45 }
0x1794   :  { %v3813_v19 = vsub.f32 1.5, %v3812_v28  ;;  %v3885_v53 = vpop.f32.mrf.mxu0 }
0x1795   :  { %v3922_v22 = vmul.f32 %v3917_v2, %v3917_v2  ;;  %v3942_v14 = vmul.f32 -5.6925062e-05, %v3917_v2  ;;  %v4007_v52 = vmul.f32 -0.00021337405, %v3917_v2  ;;  %v6673_v6 = vadd.f32 %v6639_v3, %v3885_v53 }
0x1796   :  { %v3814_v63 = vmul.f32 %v4886_v46, %v3813_v19  ;;  %v3952_v23 = vmul.f32 2.7706815e-08, %v3917_v2  ;;  %v3997_v12 = vmul.f32 -0.0073733293, %v3917_v2  ;;  %v3838_v1 = vadd.f32 %v6581_v38, %v3830_v37 }
0x1797   :  { %v4012_v9 = vadd.f32 -0.001682827, %v4007_v52  ;;  %v4017_v21 = vmul.f32 -1.45660715e-05, %v3922_v22  ;;  %v3903_v4 = vmul.f32 0.70710677, %v6673_v6  ;;  %v3927_v58 = vmul.f32 %v3922_v22, %v3922_v22 }
0x1798   :  { %v3818_v11 = vsel %vm3817_vm15, %v4886_v46, %v3814_v63  ;;  %v3947_v16 = vadd.f32 -0.00073499064, %v3942_v14  ;;  %v3957_v31 = vadd.f32 -2.101024e-06, %v3952_v23  ;;  %v3962_v0 = vmul.f32 -2.7261424e-10, %v3922_v22  ;;  %4599 = vmatmul.msk.f32.gmra.mxu0 %vm178_vm1, %v3838_v1 }
0x1799   :  { %v3823_v33 = vmul.f32 %v3818_v11, %v3763_v20  ;;  %v4022_v30 = vadd.f32 %v4017_v21, %v4012_v9  ;;  %v6679_v26 = vclamps-f32 %v3903_v4, 4.0  ;;  %v3932_v35 = vmul.f32 -0.0029546, %v3917_v2 }
0x179a   :  { %v4002_v48 = vadd.f32 -0.014264739, %v3997_v12  ;;  %v3967_v25 = vadd.f32 %v3962_v0, %v3957_v31  ;;  %v3977_v36 = vmul.f32 %v3947_v16, %v3922_v22  ;;  %v3897_v31 = vmul.f32 0.5, %v6648_v44 }
0x179b   :  { %v3831_v43 = vmul.f32 %v6573_v15, %v3823_v33  ;;  %v4027_v55 = vmul.f32 %v4022_v30, %v3922_v22  ;;  %v3918_v7 = vmul.f32 %v6679_v26, %v6679_v26  ;;  %v3937_v54 = vadd.f32 -0.016096033, %v3932_v35 }
0x179c   :  { %v3888_v32 = vpop.f32.mrf.mxu0  ;;  %v3972_v18 = vmul.f32 %v3967_v25, %v3927_v58 }
0x179d   :  { %v6686_v60 = vadd.f32 %v6639_v3, %v3888_v32  ;;  %v4032_v59 = vadd.f32 %v4027_v55, %v4002_v48  ;;  %v3923_v41 = vmul.f32 %v3918_v7, %v3918_v7  ;;  %v3839_v62 = vadd.f32 %v6581_v38, %v3831_v43 }
0x179e   :  { %v3982_v10 = vadd.f32 %v3977_v36, %v3937_v54  ;;  %v4008_v50 = vmul.f32 -0.00021337405, %v3918_v7  ;;  %v3943_v56 = vmul.f32 -5.6925062e-05, %v3918_v7  ;;  %v3953_v27 = vmul.f32 2.7706815e-08, %v3918_v7 }
0x179f   :  { %v3904_v61 = vmul.f32 0.70710677, %v6686_v60  ;;  %4887 = vrcp.f32 %v4032_v59  ;;  %v4018_v34 = vmul.f32 -1.45660715e-05, %v3923_v41  ;;  %v3998_v29 = vmul.f32 -0.0073733293, %v3918_v7 }
0x17a0   :  { %4600 = vmatmul.msk.f32.gmra.mxu0 %vm178_vm1, %v3839_v62  ;;  %v4013_v57 = vadd.f32 -0.001682827, %v4008_v50  ;;  %v3987_v38 = vadd.f32 %v3982_v10, %v3972_v18  ;;  %v3948_v40 = vadd.f32 -0.00073499064, %v3943_v56  ;;  %v3958_v45 = vadd.f32 -2.101024e-06, %v3953_v27 }
0x17a1   :  { %v6690_v15 = vclamps-f32 %v3904_v61, 4.0  ;;  %v3963_v24 = vmul.f32 -2.7261424e-10, %v3923_v41  ;;  %v3933_v28 = vmul.f32 -0.0029546, %v3918_v7  ;;  %v3928_v9 = vmul.f32 %v3923_v41, %v3923_v41 }
0x17a2   :  { %v4023_v8 = vadd.f32 %v4018_v34, %v4013_v57  ;;  %v4003_v2 = vadd.f32 -0.014264739, %v3998_v29  ;;  %v3992_v52 = vmul.f32 %v6658_v49, %v3987_v38  ;;  %v3978_v11 = vmul.f32 %v3948_v40, %v3923_v41 }
0x17a3   :  { %v3919_v46 = vmul.f32 %v6690_v15, %v6690_v15  ;;  %v3968_v20 = vadd.f32 %v3963_v24, %v3958_v45  ;;  %v3938_v12 = vadd.f32 -0.016096033, %v3933_v28 }
0x17a4   :  { %v4028_v17 = vmul.f32 %v4023_v8, %v3923_v41 }
0x17a5   :  { %v4888_v42 = vpop.eup %4887  ;;  %v3924_v47 = vmul.f32 %v3919_v46, %v3919_v46  ;;  %v4009_v39 = vmul.f32 -0.00021337405, %v3919_v46  ;;  %v3944_v51 = vmul.f32 -5.6925062e-05, %v3919_v46  ;;  %v3954_v53 = vmul.f32 2.7706815e-08, %v3919_v46 }
0x17a6   :  { %v4042_v5 = vmul.f32 %v4888_v42, %v4032_v59  ;;  %v4033_v37 = vadd.f32 %v4028_v17, %v4003_v2  ;;  %v3999_v63 = vmul.f32 -0.0073733293, %v3919_v46  ;;  %v3973_v32 = vmul.f32 %v3968_v20, %v3928_v9 }
0x17a7   :  { %v4014_v22 = vadd.f32 -0.001682827, %v4009_v39  ;;  %v4019_v14 = vmul.f32 -1.45660715e-05, %v3924_v47  ;;  %v3949_v16 = vadd.f32 -0.00073499064, %v3944_v51  ;;  %v3983_v43 = vadd.f32 %v3978_v11, %v3938_v12 }
0x17a8   :  { %v4047_v19 = vsub.f32 2.0, %v4042_v5  ;;  %4889 = vrcp.f32 %v4033_v37  ;;  %v3959_v1 = vadd.f32 -2.101024e-06, %v3954_v53  ;;  %v3964_v33 = vmul.f32 -2.7261424e-10, %v3924_v47 }
0x17a9   :  { %v4024_v21 = vadd.f32 %v4019_v14, %v4014_v22  ;;  %v4004_v0 = vadd.f32 -0.014264739, %v3999_v63  ;;  %v3934_v48 = vmul.f32 -0.0029546, %v3919_v46  ;;  %v3979_v25 = vmul.f32 %v3949_v16, %v3924_v47 }
0x17aa   :  { %v4052_v23 = vmul.f32 %v4888_v42, %v4047_v19  ;;  %v3969_v7 = vadd.f32 %v3964_v33, %v3959_v1  ;;  %v3988_v59 = vadd.f32 %v3983_v43, %v3973_v32  ;;  %v3929_v41 = vmul.f32 %v3924_v47, %v3924_v47  ;;  %v4673_v43 = vld [vmem:[%s6751_s18 + $0x1] ss:$0 sm:$0xff] }
0x17ab   :  { %v4029_v30 = vmul.f32 %v4024_v21, %v3924_v47  ;;  %v3939_v61 = vadd.f32 -0.016096033, %v3934_v48  ;;  %v3898_v46 = vmul.f32 0.5, %v6673_v6  ;;  %v3899_v39 = vmul.f32 0.5, %v6686_v60  ;;  %v4125_v6 = vld [vmem:[%s6753_s19 + $0x10] sm:$0xff]  ;;  %v4123_v60 = vld [vmem:[%s6753_s19] sm:$0xff] }
0x17ac   :  { %v4057_v4 = vmul.f32 %v4052_v23, %v3992_v52  ;;  %v3974_v58 = vmul.f32 %v3969_v7, %v3929_v41  ;;  %v3993_v18 = vmul.f32 %v6679_v26, %v3988_v59  ;;  %v4126_v26 = vld [vmem:[%s6753_s19 + $0x18] sm:$0xff] }
0x17ad   :  { %v4034_v49 = vadd.f32 %v4029_v30, %v4004_v0  ;;  %v3984_v54 = vadd.f32 %v3979_v25, %v3939_v61  ;;  %4146 = vmatpush.msrb.mxu2 %v4126_v26 }
0x17ae   :  { %v4062_v35 = vadd.f32 1.0, %v4057_v4  ;;  %v4890_v36 = vpop.eup %4889 }
0x17af   :  { %4891 = vrcp.f32 %v4034_v49  ;;  %v4043_v62 = vmul.f32 %v4890_v36, %v4033_v37  ;;  %v3989_v34 = vadd.f32 %v3984_v54, %v3974_v58  ;;  %4147 = vmatpush.msrb.mxu2 %v4125_v6 }
0x17b0   :  { %v4067_v55 = vmul.f32 %v4062_v35, %v3897_v31 }
0x17b1   :  { %v4048_v44 = vsub.f32 2.0, %v4043_v62  ;;  %v3994_v42 = vmul.f32 %v6690_v15, %v3989_v34  ;;  %v4124_v15 = vld [vmem:[%s6753_s19 + $0x8] sm:$0xff] }
0x17b2   :  { %4110 = vmatmul.f32.vlgmr.msrb.gmra.mxu1 %v4067_v55  ;;  %4148 = vmatpush.msrb.mxu2 %v4124_v15 }
0x17b3   :  { %v4053_v10 = vmul.f32 %v4890_v36, %v4048_v44 }
0x17b4   :  { %4149 = vmatpush.msrb.mxu2 %v4123_v60 }
0x17b5   :  { %v4892_v50 = vpop.eup %4891  ;;  %v4058_v56 = vmul.f32 %v4053_v10, %v3993_v18 }
0x17b6   :  { %v4044_v27 = vmul.f32 %v4892_v50, %v4034_v49 }
0x17b7   :  { %v4063_v29 = vadd.f32 1.0, %v4058_v56 }
0x17b8   :  { %v4049_v57 = vsub.f32 2.0, %v4044_v27 }
0x17b9   :  { %v4068_v38 = vmul.f32 %v4063_v29, %v3898_v46 }
0x17ba   :  { %v4054_v47 = vmul.f32 %v4892_v50, %v4049_v57 }
0x17bb   :  { %4113 = vmatmul.f32.gmra.mxu1 %v4068_v38 }
0x17bc   :  { %v4059_v8 = vmul.f32 %v4054_v47, %v3994_v42 }
0x17be   :  { %v4064_v5 = vadd.f32 1.0, %v4059_v8 }
0x17c0   :  { %v4069_v40 = vmul.f32 %v4064_v5, %v3899_v39 }
0x17c3   :  { %4115 = vmatmul.f32.gmra.mxu1 %v4069_v40 }
0x1815   :  { %v3891_v45 = vpop.f32.mrf.mxu0 }
0x1816   :  { %v6714_v24 = vadd.f32 %v6639_v3, %v3891_v45 }
0x1818   :  { %v3905_v28 = vmul.f32 0.70710677, %v6714_v24 }
0x181a   :  { %v4604_v51 = vclamps-f32 %v3905_v28, 4.0  ;;  %v3900_v28 = vmul.f32 0.5, %v6714_v24  ;;  %v4674_v24 = vld [vmem:[%s6754_s20] ss:$0 sm:$0xff] }
0x181c   :  { %v3920_v2 = vmul.f32 %v4604_v51, %v4604_v51 }
0x181d   :  { %v3894_v17 = vpop.f32.mrf.mxu0 }
0x181e   :  { %v3925_v19 = vmul.f32 %v3920_v2, %v3920_v2  ;;  %v6718_v53 = vadd.f32 %v6639_v3, %v3894_v17  ;;  %v4010_v22 = vmul.f32 -0.00021337405, %v3920_v2  ;;  %v3945_v37 = vmul.f32 -5.6925062e-05, %v3920_v2 }
0x181f   :  { %v3955_v63 = vmul.f32 2.7706815e-08, %v3920_v2  ;;  %v4000_v52 = vmul.f32 -0.0073733293, %v3920_v2  ;;  %v3935_v1 = vmul.f32 -0.0029546, %v3920_v2 }
0x1820   :  { %v3906_v14 = vmul.f32 0.70710677, %v6718_v53  ;;  %v4015_v23 = vadd.f32 -0.001682827, %v4010_v22  ;;  %v4020_v20 = vmul.f32 -1.45660715e-05, %v3925_v19  ;;  %v3930_v7 = vmul.f32 %v3925_v19, %v3925_v19 }
0x1821   :  { %v3950_v12 = vadd.f32 -0.00073499064, %v3945_v37  ;;  %v3960_v21 = vadd.f32 -2.101024e-06, %v3955_v63  ;;  %v3965_v4 = vmul.f32 -2.7261424e-10, %v3925_v19 }
0x1822   :  { %v4605_v11 = vclamps-f32 %v3906_v14, 4.0  ;;  %v4025_v9 = vadd.f32 %v4020_v20, %v4015_v23  ;;  %v4005_v33 = vadd.f32 -0.014264739, %v4000_v52  ;;  %v3940_v48 = vadd.f32 -0.016096033, %v3935_v1 }
0x1823   :  { %v3970_v35 = vadd.f32 %v3965_v4, %v3960_v21  ;;  %v3980_v32 = vmul.f32 %v3950_v12, %v3925_v19 }
0x1824   :  { %v3921_v16 = vmul.f32 %v4605_v11, %v4605_v11  ;;  %v4030_v31 = vmul.f32 %v4025_v9, %v3925_v19 }
0x1825   :  { %v3975_v41 = vmul.f32 %v3970_v35, %v3930_v7  ;;  %v3985_v61 = vadd.f32 %v3980_v32, %v3940_v48 }
0x1826   :  { %v3926_v0 = vmul.f32 %v3921_v16, %v3921_v16  ;;  %v4035_v3 = vadd.f32 %v4030_v31, %v4005_v33  ;;  %v4011_v30 = vmul.f32 -0.00021337405, %v3921_v16  ;;  %v3946_v49 = vmul.f32 -5.6925062e-05, %v3921_v16 }
0x1827   :  { %v3956_v55 = vmul.f32 2.7706815e-08, %v3921_v16  ;;  %v4001_v25 = vmul.f32 -0.0073733293, %v3921_v16  ;;  %v3936_v27 = vmul.f32 -0.0029546, %v3921_v16  ;;  %v3990_v29 = vadd.f32 %v3985_v61, %v3975_v41 }
0x1828   :  { %4893 = vrcp.f32 %v4035_v3  ;;  %v4016_v36 = vadd.f32 -0.001682827, %v4011_v30  ;;  %v4021_v59 = vmul.f32 -1.45660715e-05, %v3926_v0  ;;  %v3951_v54 = vadd.f32 -0.00073499064, %v3946_v49 }
0x1829   :  { %v3961_v44 = vadd.f32 -2.101024e-06, %v3956_v55  ;;  %v3966_v18 = vmul.f32 -2.7261424e-10, %v3926_v0  ;;  %v4006_v50 = vadd.f32 -0.014264739, %v4001_v25  ;;  %v3931_v39 = vmul.f32 %v3926_v0, %v3926_v0 }
0x182a   :  { %v4026_v58 = vadd.f32 %v4021_v59, %v4016_v36  ;;  %v3981_v47 = vmul.f32 %v3951_v54, %v3926_v0  ;;  %v3941_v5 = vadd.f32 -0.016096033, %v3936_v27  ;;  %v3995_v40 = vmul.f32 %v4604_v51, %v3990_v29 }
0x182b   :  { %v3971_v38 = vadd.f32 %v3966_v18, %v3961_v44  ;;  %v3901_v51 = vmul.f32 0.5, %v6718_v53 }
0x182c   :  { %v4031_v34 = vmul.f32 %v4026_v58, %v3926_v0  ;;  %v3986_v15 = vadd.f32 %v3981_v47, %v3941_v5 }
0x182d   :  { %v3976_v6 = vmul.f32 %v3971_v38, %v3931_v39 }
0x182e   :  { %v4894_v56 = vpop.eup %4893  ;;  %v4036_v42 = vadd.f32 %v4031_v34, %v4006_v50 }
0x182f   :  { %v4111_v62 = vpop.f32.mrf.mxu1  ;;  %v4045_v57 = vmul.f32 %v4894_v56, %v4035_v3  ;;  %v3991_v17 = vadd.f32 %v3986_v15, %v3976_v6 }
0x1830   :  { %v4112_v10 = vadd.f32 %v4673_v43, %v4111_v62  ;;  %4895 = vrcp.f32 %v4036_v42 }
0x1831   :  { %v4050_v8 = vsub.f32 2.0, %v4045_v57  ;;  %v3996_v63 = vmul.f32 %v4605_v11, %v3991_v17 }
0x1832   :  { %v4122_v46 = vadd.f32 %v4112_v10, %v6502_v13 }
0x1833   :  { %v4055_v26 = vmul.f32 %v4894_v56, %v4050_v8 }
0x1834   :  { %4623 = vmatmul.msk.f32.vlgmr.msrb.gmra.mxu2 %vm178_vm1, %v4122_v46 }
0x1835   :  { %v4060_v60 = vmul.f32 %v4055_v26, %v3995_v40 }
0x1836   :  { %v4896_v45 = vpop.eup %4895 }
0x1837   :  { %v4065_v2 = vadd.f32 1.0, %v4060_v60  ;;  %v4046_v19 = vmul.f32 %v4896_v45, %v4036_v42 }
0x1838   :  { %v4114_v13 = vpop.f32.mrf.mxu1 }
0x1839   :  { %v4070_v22 = vmul.f32 %v4065_v2, %v3900_v28  ;;  %v4051_v37 = vsub.f32 2.0, %v4046_v19 }
0x183b   :  { %4117 = vmatmul.f32.gmra.mxu1 %v4070_v22  ;;  %v4056_v14 = vmul.f32 %v4896_v45, %v4051_v37 }
0x183d   :  { %v4061_v52 = vmul.f32 %v4056_v14, %v3996_v63 }
0x183f   :  { %v4066_v20 = vadd.f32 1.0, %v4061_v52 }
0x1840   :  { %v4116_v23 = vpop.f32.mrf.mxu1 }
0x1841   :  { %v4071_v9 = vmul.f32 %v4066_v20, %v3901_v51 }
0x1843   :  { %4119 = vmatmul.f32.gmra.mxu1 %v4071_v9 }
0x18b7   :  { %v4151_v12 = vpop.f32.mrf.mxu2 }
0x18b8   :  { %v4152_v21 = vadd.f32 %v4674_v24, %v4151_v12  ;;  %v4118_v4 = vpop.f32.mrf.mxu1 }
0x18ba   :  { %4154 = vmax.xlane.f32.xlu0 %v4152_v21 }
0x18c0   :  { %v4120_v16 = vpop.f32.mrf.mxu1 }
0x192d   :  { %v4155_v1 = vpop.xlane.xlu0 %4154 }
0x192e   :  { %v4156_v33 = vsub.f32 %v4152_v21, %v4155_v1 }
0x1930   :  { %v4157_v11 = vmul.f32 1.442695, %v4156_v33 }
0x1932   :  { %4897 = vpow2.f32 %v4157_v11 }
0x1938   :  { %v4898_v31 = vpop.eup %4897 }
0x1939   :  { %4159 = vadd.xlane.f32.xlu1 %v4898_v31 }
0x19ac   :  { %v4160_v0 = vpop.xlane.xlu1 %4159 }
0x19ad   :  { %4899 = vrcp.f32 %v4160_v0 }
0x19b3   :  { %v4900_v53 = vpop.eup %4899 }
0x19b4   :  { %v4162_v3 = vmul.f32 %v4900_v53, %v4898_v31 }
0x19b6   :  { %4163 = vst [vmem:[%s6755_s21] sm:$0xff] %v4162_v3 }

</bundles_post_ra>
